<compile_context>
chip_gen: v5e
topology: v5e:2x2
jax: 0.10.0
libtpu: 0.0.40
codegen_flags: <defaults>
</compile_context>

<pallas_src>
import jax
import jax.numpy as jnp
from jax.experimental import pallas as pl
from jax.experimental.pallas import tpu as pltpu


# ----------------------------------------------------------------------------
# Helpers
# ----------------------------------------------------------------------------
def _bf(x):
    return x.astype(jnp.bfloat16)


def _dot(a, b):
    return jnp.dot(a, b, preferred_element_type=jnp.float32)


# ----------------------------------------------------------------------------
# Fused GNN_mol kernel (one grid step == one graph)
# ----------------------------------------------------------------------------
def _gnn_mol_kernel(
    # per-graph blocked data (leading graph axis squeezed by BlockSpec)
    node_oh_ref, pos_enc_ref, edge_oh_ref, src_oh_ref, dst_oh_ref, dstT_oh_ref,
    # encoders + positional-encoding MLP weights (VMEM-resident)
    atom_tab_ref, bond_tab_ref, pe_w1h_ref, pe_w1p_ref, pe_b1_ref,
    pe_w2_ref, pe_b2_ref,
    # stacked GatedGCN layer params
    w_abde_ref, b_abde_ref, w_c_ref, b_c_ref,
    bnh_s_ref, bnh_b_ref, bne_s_ref, bne_b_ref,
    # predictor MLP
    pr_w1_ref, pr_b1_ref, pr_w2_ref, pr_b2_ref,
    # output (1, 128) padded logits for this graph
    out_ref,
):
    num_layer = w_abde_ref.shape[0]
    D = pe_w2_ref.shape[1]

    src_oh = src_oh_ref[...]      # (E, N) bf16 local one-hot: edge -> source node
    dst_oh = dst_oh_ref[...]      # (E, N) bf16 local one-hot: edge -> dest node
    dstT_oh = dstT_oh_ref[...]    # (N, E) bf16 pre-transposed scatter operand

    # ---- atom / bond encoders: sum of embeddings == one-hot @ table ----
    h = _dot(node_oh_ref[...], atom_tab_ref[...])        # (N, D) f32
    e = _dot(edge_oh_ref[...], bond_tab_ref[...])        # (E, D) f32

    # ---- positional-encoding MLP; W1 pre-split so no lane concat is needed ----
    z = (_dot(_bf(h), pe_w1h_ref[...])
         + _dot(_bf(pos_enc_ref[...]), pe_w1p_ref[...])
         + pe_b1_ref[...])
    z = jnp.maximum(z, 0.0)
    h = _dot(_bf(z), pe_w2_ref[...]) + pe_b2_ref[...]    # (N, D)

    # ---- GatedGCN layers: h / e stay resident across all layers ----
    for l in range(num_layer):
        # Fused A|B|D|E projection: a single (D, 4D) matmul keeps the MXU full.
        proj = _dot(_bf(h), w_abde_ref[l]) + b_abde_ref[l]        # (N, 4D)
        Ah = proj[:, 0 * D:1 * D]
        Eh = proj[:, 3 * D:4 * D]
        Ce = _dot(_bf(e), w_c_ref[l]) + b_c_ref[l]                # (E, D)

        # Gathers as small local one-hot matmuls (exact in bf16).
        bd_u = _dot(src_oh, _bf(proj[:, 1 * D:3 * D]))            # (E, 2D): B|D at src
        Bh_u = bd_u[:, :D]
        Dh_u = bd_u[:, D:]
        Eh_v = _dot(dst_oh, _bf(Eh))                              # (E, D):  E at dst

        e_new = Dh_u + Eh_v + Ce                                  # (E, D) f32
        sigma = jax.nn.sigmoid(e_new)

        # Scatter-add to destination nodes: both sums share one matmul and the
        # pre-transposed (N, E) operand keeps it on the plain MXU path.
        packed = jnp.concatenate([sigma * Bh_u, sigma], axis=-1)  # (E, 2D)
        agg = _dot(dstT_oh, _bf(packed))                          # (N, 2D) f32
        # TODO(synk): DGL skips the reduce for zero-in-degree nodes (keeps h);
        # such nodes here get Ah + 0, same as the previous dense version.
        h_new = Ah + agg[:, :D] / (agg[:, D:] + 1e-6)

        # BatchNorm (eval, folded into scale/shift) + ReLU + residual.
        h_new = jnp.maximum(h_new * bnh_s_ref[l] + bnh_b_ref[l], 0.0)
        e_new = jnp.maximum(e_new * bne_s_ref[l] + bne_b_ref[l], 0.0)
        h = h + h_new
        e = e + e_new

    # ---- per-graph mean pooling over nodes and edges ----
    hg = jnp.concatenate([jnp.mean(h, axis=0, keepdims=True),
                          jnp.mean(e, axis=0, keepdims=True)], axis=-1)  # (1, 2D)

    # ---- predictor MLP; output padded to 128 lanes for a lane-dense store ----
    z = jnp.maximum(_dot(_bf(hg), pr_w1_ref[...]) + pr_b1_ref[...], 0.0)
    logits = _dot(_bf(z), pr_w2_ref[...]) + pr_b2_ref[...]               # (1, 128)
    out_ref[...] = logits.astype(out_ref.dtype)


# ----------------------------------------------------------------------------
# pallas_call wrapper
# ----------------------------------------------------------------------------
def _per_graph_spec(arr):
    """Blocked per graph: leading (graph) axis squeezed, rest full extent."""
    zeros = (0,) * (arr.ndim - 1)
    return pl.BlockSpec((None,) + tuple(arr.shape[1:]), lambda b: (b,) + zeros)


def _resident_spec(arr):
    """Whole array resident in VMEM (constant block index across the grid)."""
    zeros = (0,) * arr.ndim
    return pl.BlockSpec(tuple(arr.shape), lambda b: zeros)


def gnn_mol_forward(params, data, num_tasks):
    data_args = (data["node_oh"], data["pos_enc"], data["edge_oh"],
                 data["src_oh"], data["dst_oh"], data["dstT_oh"])
    weight_args = (params["atom_table"], params["bond_table"],
                   params["pe_w1h"], params["pe_w1p"], params["pe_b1"],
                   params["pe_w2"], params["pe_b2"],
                   params["w_abde"], params["b_abde"],
                   params["w_c"], params["b_c"],
                   params["bnh_s"], params["bnh_b"],
                   params["bne_s"], params["bne_b"],
                   params["pr_w1"], params["pr_b1"],
                   params["pr_w2"], params["pr_b2"])
    B = data["node_oh"].shape[0]
    out_pad = params["pr_w2"].shape[1]

    out = pl.pallas_call(
        _gnn_mol_kernel,
        out_shape=jax.ShapeDtypeStruct((B, 1, out_pad), jnp.float32),
        grid=(B,),
        in_specs=([_per_graph_spec(a) for a in data_args]
                  + [_resident_spec(w) for w in weight_args]),
        out_specs=pl.BlockSpec((None, 1, out_pad), lambda b: (b, 0, 0)),
        compiler_params=pltpu.CompilerParams(
            dimension_semantics=("parallel",),        # megacore sharding on v7x
            vmem_limit_bytes=32 * 1024 * 1024),       # fits v7x's 64 MiB VMEM
    )(*data_args, *weight_args)
    return out[:, 0, :num_tasks]


# ----------------------------------------------------------------------------
# Parameter construction (deterministic, PyTorch-like init)
# ----------------------------------------------------------------------------
def _linear_init(key, fan_in, fan_out):
    kw, kb = jax.random.split(key)
    bound = 1.0 / jnp.sqrt(float(fan_in))
    w = jax.random.uniform(kw, (fan_in, fan_out), jnp.float32, -bound, bound)
    b = jax.random.uniform(kb, (1, fan_out), jnp.float32, -bound, bound)
    return w, b


def make_params(key, emb_dim, hidden_dim, num_layer, pos_enc_dim, num_tasks,
                atom_dims, bond_dims, out_pad=128):
    keys = iter(jax.random.split(key, 8 + 6 * num_layer))
    p = {}

    # Atom / Bond encoders: concat-of-embedding-tables (bf16 MXU operands).
    p["atom_table"] = _bf(jax.random.normal(
        next(keys), (sum(atom_dims), emb_dim), jnp.float32))
    p["bond_table"] = _bf(jax.random.normal(
        next(keys), (sum(bond_dims), emb_dim), jnp.float32))

    # Positional-encoding MLP; W1 split into [emb | pos_enc] halves.
    pe_w1, pe_b1 = _linear_init(next(keys), emb_dim + pos_enc_dim, hidden_dim)
    p["pe_w1h"] = _bf(pe_w1[:emb_dim])
    p["pe_w1p"] = _bf(pe_w1[emb_dim:])
    p["pe_b1"] = pe_b1
    pe_w2, pe_b2 = _linear_init(next(keys), hidden_dim, emb_dim)
    p["pe_w2"] = _bf(pe_w2)
    p["pe_b2"] = pe_b2

    # GatedGCN layers: A|B|D|E fused into one weight; all layers stacked.
    w_abde, b_abde, w_c, b_c = [], [], [], []
    for _ in range(num_layer):
        ws, bs = [], []
        for _name in "ABDE":
            w, b = _linear_init(next(keys), emb_dim, emb_dim)
            ws.append(w)
            bs.append(b)
        w_abde.append(jnp.concatenate(ws, axis=1))
        b_abde.append(jnp.concatenate(bs, axis=1))
        wc, bc = _linear_init(next(keys), emb_dim, emb_dim)
        w_c.append(wc)
        b_c.append(bc)
    p["w_abde"] = _bf(jnp.stack(w_abde))        # (L, D, 4D) bf16
    p["b_abde"] = jnp.stack(b_abde)             # (L, 1, 4D) f32
    p["w_c"] = _bf(jnp.stack(w_c))              # (L, D, D)  bf16
    p["b_c"] = jnp.stack(b_c)                   # (L, 1, D)  f32

    # BatchNorm1d eval-mode fold (running_mean=0, running_var=1, gamma=1, beta=0).
    # TODO(synk): recompute scale/shift if trained running stats are loaded.
    scale = jnp.full((num_layer, 1, emb_dim), 1.0 / jnp.sqrt(1.0 + 1e-5),
                     jnp.float32)
    shift = jnp.zeros((num_layer, 1, emb_dim), jnp.float32)
    p["bnh_s"], p["bnh_b"] = scale, shift
    p["bne_s"], p["bne_b"] = scale, shift

    # Predictor MLP; final layer padded to `out_pad` lanes (sliced outside).
    pr_w1, pr_b1 = _linear_init(next(keys), 2 * emb_dim, hidden_dim)
    pr_w2, pr_b2 = _linear_init(next(keys), hidden_dim, num_tasks)
    pad = out_pad - num_tasks
    p["pr_w1"] = _bf(pr_w1)
    p["pr_b1"] = pr_b1
    p["pr_w2"] = _bf(jnp.pad(pr_w2, ((0, 0), (0, pad))))
    p["pr_b2"] = jnp.pad(pr_b2, ((0, 0), (0, pad)))
    return p


# ----------------------------------------------------------------------------
# Driver
# ----------------------------------------------------------------------------
if __name__ == "__main__":
    key = jax.random.PRNGKey(0)

    emb_dim = 128
    hidden_dim = 4 * emb_dim
    num_layer = 3
    pos_enc_dim = 10
    num_tasks = 4
    atom_dims = [7, 5, 3]          # synthetic per-feature vocab sizes
    bond_dims = [5, 3]

    # B graphs, each with a fixed block of nodes / edges (block-diagonal
    # batching): message passing never crosses graphs, so the kernel tiles by
    # graph and the incidence matrices stay local ([E_pg, N_pg], not [E, N]).
    B, n_pg, e_pg = 4, 32, 64

    k_feat, k_edge, k_pe, k_src, k_dst, k_par = jax.random.split(key, 6)

    # Integer categorical node / edge features -> concatenated one-hots.
    node_feats = jnp.stack(
        [jax.random.randint(jax.random.fold_in(k_feat, i), (B, n_pg), 0, d)
         for i, d in enumerate(atom_dims)], axis=-1)               # (B, n_pg, 3)
    edge_feats = jnp.stack(
        [jax.random.randint(jax.random.fold_in(k_edge, i), (B, e_pg), 0, d)
         for i, d in enumerate(bond_dims)], axis=-1)               # (B, e_pg, 2)
    node_oh = jnp.concatenate(
        [jax.nn.one_hot(node_feats[..., i], d, dtype=jnp.bfloat16)
         for i, d in enumerate(atom_dims)], axis=-1)               # (B, n_pg, 15)
    edge_oh = jnp.concatenate(
        [jax.nn.one_hot(edge_feats[..., i], d, dtype=jnp.bfloat16)
         for i, d in enumerate(bond_dims)], axis=-1)               # (B, e_pg, 8)

    # Laplacian positional encodings.
    pos_enc = jax.random.normal(k_pe, (B, n_pg, pos_enc_dim), jnp.float32)

    # Graph structure: local (per-graph) edge endpoints; exact 0/1 in bf16.
    src_idx = jax.random.randint(k_src, (B, e_pg), 0, n_pg)
    dst_idx = jax.random.randint(k_dst, (B, e_pg), 0, n_pg)
    src_oh = jax.nn.one_hot(src_idx, n_pg, dtype=jnp.bfloat16)     # (B, e_pg, n_pg)
    dst_oh = jax.nn.one_hot(dst_idx, n_pg, dtype=jnp.bfloat16)     # (B, e_pg, n_pg)
    dstT_oh = jnp.swapaxes(dst_oh, 1, 2)                           # (B, n_pg, e_pg)

    data = dict(node_oh=node_oh, pos_enc=pos_enc, edge_oh=edge_oh,
                src_oh=src_oh, dst_oh=dst_oh, dstT_oh=dstT_oh)

    params = make_params(k_par, emb_dim, hidden_dim, num_layer, pos_enc_dim,
                         num_tasks, atom_dims, bond_dims)

    out = gnn_mol_forward(params, data, num_tasks)
    out = jax.block_until_ready(out)
    assert out.shape == (B, num_tasks), out.shape
    assert bool(jnp.all(jnp.isfinite(out)))
    print("KERNEL_OK")
</pallas_src>

<mosaic_0001>
module attributes {stable_mosaic.version = 11 : i64} {
  func.func @_gnn_mol_kernel(%arg0: i32, %arg1: memref<1x32x15xbf16, #tpu.memory_space<vmem>>, %arg2: memref<1x32x10xf32, #tpu.memory_space<vmem>>, %arg3: memref<1x64x8xbf16, #tpu.memory_space<vmem>>, %arg4: memref<1x64x32xbf16, #tpu.memory_space<vmem>>, %arg5: memref<1x64x32xbf16, #tpu.memory_space<vmem>>, %arg6: memref<1x32x64xbf16, #tpu.memory_space<vmem>>, %arg7: memref<15x128xbf16, #tpu.memory_space<vmem>>, %arg8: memref<8x128xbf16, #tpu.memory_space<vmem>>, %arg9: memref<128x512xbf16, #tpu.memory_space<vmem>>, %arg10: memref<10x512xbf16, #tpu.memory_space<vmem>>, %arg11: memref<1x512xf32, #tpu.memory_space<vmem>>, %arg12: memref<512x128xbf16, #tpu.memory_space<vmem>>, %arg13: memref<1x128xf32, #tpu.memory_space<vmem>>, %arg14: memref<3x128x512xbf16, #tpu.memory_space<vmem>>, %arg15: memref<3x1x512xf32, #tpu.memory_space<vmem>>, %arg16: memref<3x128x128xbf16, #tpu.memory_space<vmem>>, %arg17: memref<3x1x128xf32, #tpu.memory_space<vmem>>, %arg18: memref<3x1x128xf32, #tpu.memory_space<vmem>>, %arg19: memref<3x1x128xf32, #tpu.memory_space<vmem>>, %arg20: memref<3x1x128xf32, #tpu.memory_space<vmem>>, %arg21: memref<3x1x128xf32, #tpu.memory_space<vmem>>, %arg22: memref<256x512xbf16, #tpu.memory_space<vmem>>, %arg23: memref<1x512xf32, #tpu.memory_space<vmem>>, %arg24: memref<512x128xbf16, #tpu.memory_space<vmem>>, %arg25: memref<1x128xf32, #tpu.memory_space<vmem>>, %arg26: memref<1x1x128xf32, #tpu.memory_space<vmem>>) attributes {dimension_semantics = [#tpu.dimension_semantics<parallel>], iteration_bounds = array<i64: 4>, scalar_prefetch = 0 : i64, scratch_operands = 0 : i64, tpu.core_type = #tpu.core_type<tc>, window_params = [{transform_indices = @transform_0, window_bounds = array<i64: 1, 32, 15>}, {transform_indices = @transform_1, window_bounds = array<i64: 1, 32, 10>}, {transform_indices = @transform_2, window_bounds = array<i64: 1, 64, 8>}, {transform_indices = @transform_3, window_bounds = array<i64: 1, 64, 32>}, {transform_indices = @transform_4, window_bounds = array<i64: 1, 64, 32>}, {transform_indices = @transform_5, window_bounds = array<i64: 1, 32, 64>}, {pipeline_mode = #tpu.pipeline_mode<synchronous>, transform_indices = @transform_6, window_bounds = array<i64: 15, 128>}, {pipeline_mode = #tpu.pipeline_mode<synchronous>, transform_indices = @transform_7, window_bounds = array<i64: 8, 128>}, {pipeline_mode = #tpu.pipeline_mode<synchronous>, transform_indices = @transform_8, window_bounds = array<i64: 128, 512>}, {pipeline_mode = #tpu.pipeline_mode<synchronous>, transform_indices = @transform_9, window_bounds = array<i64: 10, 512>}, {pipeline_mode = #tpu.pipeline_mode<synchronous>, transform_indices = @transform_10, window_bounds = array<i64: 1, 512>}, {pipeline_mode = #tpu.pipeline_mode<synchronous>, transform_indices = @transform_11, window_bounds = array<i64: 512, 128>}, {pipeline_mode = #tpu.pipeline_mode<synchronous>, transform_indices = @transform_12, window_bounds = array<i64: 1, 128>}, {pipeline_mode = #tpu.pipeline_mode<synchronous>, transform_indices = @transform_13, window_bounds = array<i64: 3, 128, 512>}, {pipeline_mode = #tpu.pipeline_mode<synchronous>, transform_indices = @transform_14, window_bounds = array<i64: 3, 1, 512>}, {pipeline_mode = #tpu.pipeline_mode<synchronous>, transform_indices = @transform_15, window_bounds = array<i64: 3, 128, 128>}, {pipeline_mode = #tpu.pipeline_mode<synchronous>, transform_indices = @transform_16, window_bounds = array<i64: 3, 1, 128>}, {pipeline_mode = #tpu.pipeline_mode<synchronous>, transform_indices = @transform_17, window_bounds = array<i64: 3, 1, 128>}, {pipeline_mode = #tpu.pipeline_mode<synchronous>, transform_indices = @transform_18, window_bounds = array<i64: 3, 1, 128>}, {pipeline_mode = #tpu.pipeline_mode<synchronous>, transform_indices = @transform_19, window_bounds = array<i64: 3, 1, 128>}, {pipeline_mode = #tpu.pipeline_mode<synchronous>, transform_indices = @transform_20, window_bounds = array<i64: 3, 1, 128>}, {pipeline_mode = #tpu.pipeline_mode<synchronous>, transform_indices = @transform_21, window_bounds = array<i64: 256, 512>}, {pipeline_mode = #tpu.pipeline_mode<synchronous>, transform_indices = @transform_22, window_bounds = array<i64: 1, 512>}, {pipeline_mode = #tpu.pipeline_mode<synchronous>, transform_indices = @transform_23, window_bounds = array<i64: 512, 128>}, {pipeline_mode = #tpu.pipeline_mode<synchronous>, transform_indices = @transform_24, window_bounds = array<i64: 1, 128>}, {transform_indices = @transform_25, window_bounds = array<i64: 1, 1, 128>}]} {
    %c0 = arith.constant 0 : index
    %c0_0 = arith.constant 0 : index
    %c0_1 = arith.constant 0 : index
    %0 = vector.load %arg4[%c0, %c0_0, %c0_1] : memref<1x64x32xbf16, #tpu.memory_space<vmem>>, vector<1x64x32xbf16>
    %1 = vector.shape_cast %0 : vector<1x64x32xbf16> to vector<64x32xbf16>
    %c0_2 = arith.constant 0 : index
    %c0_3 = arith.constant 0 : index
    %c0_4 = arith.constant 0 : index
    %2 = vector.load %arg5[%c0_2, %c0_3, %c0_4] : memref<1x64x32xbf16, #tpu.memory_space<vmem>>, vector<1x64x32xbf16>
    %3 = vector.shape_cast %2 : vector<1x64x32xbf16> to vector<64x32xbf16>
    %c0_5 = arith.constant 0 : index
    %c0_6 = arith.constant 0 : index
    %c0_7 = arith.constant 0 : index
    %4 = vector.load %arg6[%c0_5, %c0_6, %c0_7] : memref<1x32x64xbf16, #tpu.memory_space<vmem>>, vector<1x32x64xbf16>
    %5 = vector.shape_cast %4 : vector<1x32x64xbf16> to vector<32x64xbf16>
    %c0_8 = arith.constant 0 : index
    %c0_9 = arith.constant 0 : index
    %c0_10 = arith.constant 0 : index
    %6 = vector.load %arg1[%c0_8, %c0_9, %c0_10] : memref<1x32x15xbf16, #tpu.memory_space<vmem>>, vector<1x32x15xbf16>
    %7 = vector.shape_cast %6 : vector<1x32x15xbf16> to vector<32x15xbf16>
    %c0_11 = arith.constant 0 : index
    %c0_12 = arith.constant 0 : index
    %8 = vector.load %arg7[%c0_11, %c0_12] : memref<15x128xbf16, #tpu.memory_space<vmem>>, vector<15x128xbf16>
    %cst = arith.constant dense<0.000000e+00> : vector<32x128xf32>
    %9 = tpu.matmul %7, %8, %cst {dimension_numbers = #tpu.dot_dimension_numbers<[1], [0], [0], [1], [0, 0, 1, 1], [], []>} : vector<32x15xbf16>, vector<15x128xbf16>, vector<32x128xf32> -> vector<32x128xf32>
    %c0_13 = arith.constant 0 : index
    %c0_14 = arith.constant 0 : index
    %c0_15 = arith.constant 0 : index
    %10 = vector.load %arg3[%c0_13, %c0_14, %c0_15] : memref<1x64x8xbf16, #tpu.memory_space<vmem>>, vector<1x64x8xbf16>
    %11 = vector.shape_cast %10 : vector<1x64x8xbf16> to vector<64x8xbf16>
    %c0_16 = arith.constant 0 : index
    %c0_17 = arith.constant 0 : index
    %12 = vector.load %arg8[%c0_16, %c0_17] : memref<8x128xbf16, #tpu.memory_space<vmem>>, vector<8x128xbf16>
    %cst_18 = arith.constant dense<0.000000e+00> : vector<64x128xf32>
    %13 = tpu.matmul %11, %12, %cst_18 {dimension_numbers = #tpu.dot_dimension_numbers<[1], [0], [0], [1], [0, 0, 1, 1], [], []>} : vector<64x8xbf16>, vector<8x128xbf16>, vector<64x128xf32> -> vector<64x128xf32>
    %14 = arith.truncf %9 : vector<32x128xf32> to vector<32x128xbf16>
    %c0_19 = arith.constant 0 : index
    %c0_20 = arith.constant 0 : index
    %15 = vector.load %arg9[%c0_19, %c0_20] : memref<128x512xbf16, #tpu.memory_space<vmem>>, vector<128x512xbf16>
    %cst_21 = arith.constant dense<0.000000e+00> : vector<32x512xf32>
    %16 = tpu.matmul %14, %15, %cst_21 {dimension_numbers = #tpu.dot_dimension_numbers<[1], [0], [0], [1], [0, 0, 1, 1], [], []>} : vector<32x128xbf16>, vector<128x512xbf16>, vector<32x512xf32> -> vector<32x512xf32>
    %c0_22 = arith.constant 0 : index
    %c0_23 = arith.constant 0 : index
    %c0_24 = arith.constant 0 : index
    %17 = vector.load %arg2[%c0_22, %c0_23, %c0_24] : memref<1x32x10xf32, #tpu.memory_space<vmem>>, vector<1x32x10xf32>
    %18 = vector.shape_cast %17 : vector<1x32x10xf32> to vector<32x10xf32>
    %19 = arith.truncf %18 : vector<32x10xf32> to vector<32x10xbf16>
    %c0_25 = arith.constant 0 : index
    %c0_26 = arith.constant 0 : index
    %20 = vector.load %arg10[%c0_25, %c0_26] : memref<10x512xbf16, #tpu.memory_space<vmem>>, vector<10x512xbf16>
    %cst_27 = arith.constant dense<0.000000e+00> : vector<32x512xf32>
    %21 = tpu.matmul %19, %20, %cst_27 {dimension_numbers = #tpu.dot_dimension_numbers<[1], [0], [0], [1], [0, 0, 1, 1], [], []>} : vector<32x10xbf16>, vector<10x512xbf16>, vector<32x512xf32> -> vector<32x512xf32>
    %22 = arith.addf %16, %21 : vector<32x512xf32>
    %c0_28 = arith.constant 0 : index
    %c0_29 = arith.constant 0 : index
    %23 = vector.load %arg11[%c0_28, %c0_29] : memref<1x512xf32, #tpu.memory_space<vmem>>, vector<1x512xf32>
    %24 = vector.broadcast %23 : vector<1x512xf32> to vector<32x512xf32>
    %25 = arith.addf %22, %24 : vector<32x512xf32>
    %cst_30 = arith.constant 0.000000e+00 : f32
    %26 = vector.broadcast %cst_30 : f32 to vector<32x512xf32>
    %27 = arith.maximumf %25, %26 : vector<32x512xf32>
    %28 = arith.truncf %27 : vector<32x512xf32> to vector<32x512xbf16>
    %c0_31 = arith.constant 0 : index
    %c0_32 = arith.constant 0 : index
    %29 = vector.load %arg12[%c0_31, %c0_32] : memref<512x128xbf16, #tpu.memory_space<vmem>>, vector<512x128xbf16>
    %cst_33 = arith.constant dense<0.000000e+00> : vector<32x128xf32>
    %30 = tpu.matmul %28, %29, %cst_33 {dimension_numbers = #tpu.dot_dimension_numbers<[1], [0], [0], [1], [0, 0, 1, 1], [], []>} : vector<32x512xbf16>, vector<512x128xbf16>, vector<32x128xf32> -> vector<32x128xf32>
    %c0_34 = arith.constant 0 : index
    %c0_35 = arith.constant 0 : index
    %31 = vector.load %arg13[%c0_34, %c0_35] : memref<1x128xf32, #tpu.memory_space<vmem>>, vector<1x128xf32>
    %32 = vector.broadcast %31 : vector<1x128xf32> to vector<32x128xf32>
    %33 = arith.addf %30, %32 : vector<32x128xf32>
    %34 = arith.truncf %33 : vector<32x128xf32> to vector<32x128xbf16>
    %c0_36 = arith.constant 0 : index
    %c0_37 = arith.constant 0 : index
    %c0_38 = arith.constant 0 : index
    %35 = vector.load %arg14[%c0_36, %c0_37, %c0_38] : memref<3x128x512xbf16, #tpu.memory_space<vmem>>, vector<1x128x512xbf16>
    %36 = vector.shape_cast %35 : vector<1x128x512xbf16> to vector<128x512xbf16>
    %cst_39 = arith.constant dense<0.000000e+00> : vector<32x512xf32>
    %37 = tpu.matmul %34, %36, %cst_39 {dimension_numbers = #tpu.dot_dimension_numbers<[1], [0], [0], [1], [0, 0, 1, 1], [], []>} : vector<32x128xbf16>, vector<128x512xbf16>, vector<32x512xf32> -> vector<32x512xf32>
    %c0_40 = arith.constant 0 : index
    %c0_41 = arith.constant 0 : index
    %c0_42 = arith.constant 0 : index
    %38 = vector.load %arg15[%c0_40, %c0_41, %c0_42] : memref<3x1x512xf32, #tpu.memory_space<vmem>>, vector<1x1x512xf32>
    %39 = vector.shape_cast %38 : vector<1x1x512xf32> to vector<1x512xf32>
    %40 = vector.broadcast %39 : vector<1x512xf32> to vector<32x512xf32>
    %41 = arith.addf %37, %40 : vector<32x512xf32>
    %42 = vector.extract_strided_slice %41 {offsets = [0, 0], sizes = [32, 128], strides = [1, 1]} : vector<32x512xf32> to vector<32x128xf32>
    %43 = vector.extract_strided_slice %41 {offsets = [0, 384], sizes = [32, 128], strides = [1, 1]} : vector<32x512xf32> to vector<32x128xf32>
    %44 = arith.truncf %13 : vector<64x128xf32> to vector<64x128xbf16>
    %c0_43 = arith.constant 0 : index
    %c0_44 = arith.constant 0 : index
    %c0_45 = arith.constant 0 : index
    %45 = vector.load %arg16[%c0_43, %c0_44, %c0_45] : memref<3x128x128xbf16, #tpu.memory_space<vmem>>, vector<1x128x128xbf16>
    %46 = vector.shape_cast %45 : vector<1x128x128xbf16> to vector<128x128xbf16>
    %cst_46 = arith.constant dense<0.000000e+00> : vector<64x128xf32>
    %47 = tpu.matmul %44, %46, %cst_46 {dimension_numbers = #tpu.dot_dimension_numbers<[1], [0], [0], [1], [0, 0, 1, 1], [], []>} : vector<64x128xbf16>, vector<128x128xbf16>, vector<64x128xf32> -> vector<64x128xf32>
    %c0_47 = arith.constant 0 : index
    %c0_48 = arith.constant 0 : index
    %c0_49 = arith.constant 0 : index
    %48 = vector.load %arg17[%c0_47, %c0_48, %c0_49] : memref<3x1x128xf32, #tpu.memory_space<vmem>>, vector<1x1x128xf32>
    %49 = vector.shape_cast %48 : vector<1x1x128xf32> to vector<1x128xf32>
    %50 = vector.broadcast %49 : vector<1x128xf32> to vector<64x128xf32>
    %51 = arith.addf %47, %50 : vector<64x128xf32>
    %52 = vector.extract_strided_slice %41 {offsets = [0, 128], sizes = [32, 256], strides = [1, 1]} : vector<32x512xf32> to vector<32x256xf32>
    %53 = arith.truncf %52 : vector<32x256xf32> to vector<32x256xbf16>
    %cst_50 = arith.constant dense<0.000000e+00> : vector<64x256xf32>
    %54 = tpu.matmul %1, %53, %cst_50 {dimension_numbers = #tpu.dot_dimension_numbers<[1], [0], [0], [1], [0, 0, 1, 1], [], []>} : vector<64x32xbf16>, vector<32x256xbf16>, vector<64x256xf32> -> vector<64x256xf32>
    %55 = vector.extract_strided_slice %54 {offsets = [0, 0], sizes = [64, 128], strides = [1, 1]} : vector<64x256xf32> to vector<64x128xf32>
    %56 = vector.extract_strided_slice %54 {offsets = [0, 128], sizes = [64, 128], strides = [1, 1]} : vector<64x256xf32> to vector<64x128xf32>
    %57 = arith.truncf %43 : vector<32x128xf32> to vector<32x128xbf16>
    %cst_51 = arith.constant dense<0.000000e+00> : vector<64x128xf32>
    %58 = tpu.matmul %3, %57, %cst_51 {dimension_numbers = #tpu.dot_dimension_numbers<[1], [0], [0], [1], [0, 0, 1, 1], [], []>} : vector<64x32xbf16>, vector<32x128xbf16>, vector<64x128xf32> -> vector<64x128xf32>
    %59 = arith.addf %56, %58 : vector<64x128xf32>
    %60 = arith.addf %59, %51 : vector<64x128xf32>
    %61 = arith.negf %60 : vector<64x128xf32>
    %62 = math.exp %61 : vector<64x128xf32>
    %cst_52 = arith.constant 1.000000e+00 : f32
    %63 = vector.broadcast %cst_52 : f32 to vector<64x128xf32>
    %64 = arith.addf %63, %62 : vector<64x128xf32>
    %65 = arith.divf %63, %64 : vector<64x128xf32>
    %66 = arith.mulf %65, %55 : vector<64x128xf32>
    %67 = tpu.concatenate %66, %65 in 1 : vector<64x128xf32>, vector<64x128xf32> -> vector<64x256xf32>
    %68 = arith.truncf %67 : vector<64x256xf32> to vector<64x256xbf16>
    %cst_53 = arith.constant dense<0.000000e+00> : vector<32x256xf32>
    %69 = tpu.matmul %5, %68, %cst_53 {dimension_numbers = #tpu.dot_dimension_numbers<[1], [0], [0], [1], [0, 0, 1, 1], [], []>} : vector<32x64xbf16>, vector<64x256xbf16>, vector<32x256xf32> -> vector<32x256xf32>
    %70 = vector.extract_strided_slice %69 {offsets = [0, 0], sizes = [32, 128], strides = [1, 1]} : vector<32x256xf32> to vector<32x128xf32>
    %71 = vector.extract_strided_slice %69 {offsets = [0, 128], sizes = [32, 128], strides = [1, 1]} : vector<32x256xf32> to vector<32x128xf32>
    %cst_54 = arith.constant 9.99999997E-7 : f32
    %72 = vector.broadcast %cst_54 : f32 to vector<32x128xf32>
    %73 = arith.addf %71, %72 : vector<32x128xf32>
    %74 = arith.divf %70, %73 : vector<32x128xf32>
    %75 = arith.addf %42, %74 : vector<32x128xf32>
    %c0_55 = arith.constant 0 : index
    %c0_56 = arith.constant 0 : index
    %c0_57 = arith.constant 0 : index
    %76 = vector.load %arg18[%c0_55, %c0_56, %c0_57] : memref<3x1x128xf32, #tpu.memory_space<vmem>>, vector<1x1x128xf32>
    %77 = vector.shape_cast %76 : vector<1x1x128xf32> to vector<1x128xf32>
    %78 = vector.broadcast %77 : vector<1x128xf32> to vector<32x128xf32>
    %79 = arith.mulf %75, %78 : vector<32x128xf32>
    %c0_58 = arith.constant 0 : index
    %c0_59 = arith.constant 0 : index
    %c0_60 = arith.constant 0 : index
    %80 = vector.load %arg19[%c0_58, %c0_59, %c0_60] : memref<3x1x128xf32, #tpu.memory_space<vmem>>, vector<1x1x128xf32>
    %81 = vector.shape_cast %80 : vector<1x1x128xf32> to vector<1x128xf32>
    %82 = vector.broadcast %81 : vector<1x128xf32> to vector<32x128xf32>
    %83 = arith.addf %79, %82 : vector<32x128xf32>
    %cst_61 = arith.constant 0.000000e+00 : f32
    %84 = vector.broadcast %cst_61 : f32 to vector<32x128xf32>
    %85 = arith.maximumf %83, %84 : vector<32x128xf32>
    %c0_62 = arith.constant 0 : index
    %c0_63 = arith.constant 0 : index
    %c0_64 = arith.constant 0 : index
    %86 = vector.load %arg20[%c0_62, %c0_63, %c0_64] : memref<3x1x128xf32, #tpu.memory_space<vmem>>, vector<1x1x128xf32>
    %87 = vector.shape_cast %86 : vector<1x1x128xf32> to vector<1x128xf32>
    %88 = vector.broadcast %87 : vector<1x128xf32> to vector<64x128xf32>
    %89 = arith.mulf %60, %88 : vector<64x128xf32>
    %c0_65 = arith.constant 0 : index
    %c0_66 = arith.constant 0 : index
    %c0_67 = arith.constant 0 : index
    %90 = vector.load %arg21[%c0_65, %c0_66, %c0_67] : memref<3x1x128xf32, #tpu.memory_space<vmem>>, vector<1x1x128xf32>
    %91 = vector.shape_cast %90 : vector<1x1x128xf32> to vector<1x128xf32>
    %92 = vector.broadcast %91 : vector<1x128xf32> to vector<64x128xf32>
    %93 = arith.addf %89, %92 : vector<64x128xf32>
    %cst_68 = arith.constant 0.000000e+00 : f32
    %94 = vector.broadcast %cst_68 : f32 to vector<64x128xf32>
    %95 = arith.maximumf %93, %94 : vector<64x128xf32>
    %96 = arith.addf %33, %85 : vector<32x128xf32>
    %97 = arith.addf %13, %95 : vector<64x128xf32>
    %98 = arith.truncf %96 : vector<32x128xf32> to vector<32x128xbf16>
    %c1 = arith.constant 1 : index
    %c0_69 = arith.constant 0 : index
    %c0_70 = arith.constant 0 : index
    %99 = vector.load %arg14[%c1, %c0_69, %c0_70] : memref<3x128x512xbf16, #tpu.memory_space<vmem>>, vector<1x128x512xbf16>
    %100 = vector.shape_cast %99 : vector<1x128x512xbf16> to vector<128x512xbf16>
    %cst_71 = arith.constant dense<0.000000e+00> : vector<32x512xf32>
    %101 = tpu.matmul %98, %100, %cst_71 {dimension_numbers = #tpu.dot_dimension_numbers<[1], [0], [0], [1], [0, 0, 1, 1], [], []>} : vector<32x128xbf16>, vector<128x512xbf16>, vector<32x512xf32> -> vector<32x512xf32>
    %c1_72 = arith.constant 1 : index
    %c0_73 = arith.constant 0 : index
    %c0_74 = arith.constant 0 : index
    %102 = vector.load %arg15[%c1_72, %c0_73, %c0_74] : memref<3x1x512xf32, #tpu.memory_space<vmem>>, vector<1x1x512xf32>
    %103 = vector.shape_cast %102 : vector<1x1x512xf32> to vector<1x512xf32>
    %104 = vector.broadcast %103 : vector<1x512xf32> to vector<32x512xf32>
    %105 = arith.addf %101, %104 : vector<32x512xf32>
    %106 = vector.extract_strided_slice %105 {offsets = [0, 0], sizes = [32, 128], strides = [1, 1]} : vector<32x512xf32> to vector<32x128xf32>
    %107 = vector.extract_strided_slice %105 {offsets = [0, 384], sizes = [32, 128], strides = [1, 1]} : vector<32x512xf32> to vector<32x128xf32>
    %108 = arith.truncf %97 : vector<64x128xf32> to vector<64x128xbf16>
    %c1_75 = arith.constant 1 : index
    %c0_76 = arith.constant 0 : index
    %c0_77 = arith.constant 0 : index
    %109 = vector.load %arg16[%c1_75, %c0_76, %c0_77] : memref<3x128x128xbf16, #tpu.memory_space<vmem>>, vector<1x128x128xbf16>
    %110 = vector.shape_cast %109 : vector<1x128x128xbf16> to vector<128x128xbf16>
    %cst_78 = arith.constant dense<0.000000e+00> : vector<64x128xf32>
    %111 = tpu.matmul %108, %110, %cst_78 {dimension_numbers = #tpu.dot_dimension_numbers<[1], [0], [0], [1], [0, 0, 1, 1], [], []>} : vector<64x128xbf16>, vector<128x128xbf16>, vector<64x128xf32> -> vector<64x128xf32>
    %c1_79 = arith.constant 1 : index
    %c0_80 = arith.constant 0 : index
    %c0_81 = arith.constant 0 : index
    %112 = vector.load %arg17[%c1_79, %c0_80, %c0_81] : memref<3x1x128xf32, #tpu.memory_space<vmem>>, vector<1x1x128xf32>
    %113 = vector.shape_cast %112 : vector<1x1x128xf32> to vector<1x128xf32>
    %114 = vector.broadcast %113 : vector<1x128xf32> to vector<64x128xf32>
    %115 = arith.addf %111, %114 : vector<64x128xf32>
    %116 = vector.extract_strided_slice %105 {offsets = [0, 128], sizes = [32, 256], strides = [1, 1]} : vector<32x512xf32> to vector<32x256xf32>
    %117 = arith.truncf %116 : vector<32x256xf32> to vector<32x256xbf16>
    %cst_82 = arith.constant dense<0.000000e+00> : vector<64x256xf32>
    %118 = tpu.matmul %1, %117, %cst_82 {dimension_numbers = #tpu.dot_dimension_numbers<[1], [0], [0], [1], [0, 0, 1, 1], [], []>} : vector<64x32xbf16>, vector<32x256xbf16>, vector<64x256xf32> -> vector<64x256xf32>
    %119 = vector.extract_strided_slice %118 {offsets = [0, 0], sizes = [64, 128], strides = [1, 1]} : vector<64x256xf32> to vector<64x128xf32>
    %120 = vector.extract_strided_slice %118 {offsets = [0, 128], sizes = [64, 128], strides = [1, 1]} : vector<64x256xf32> to vector<64x128xf32>
    %121 = arith.truncf %107 : vector<32x128xf32> to vector<32x128xbf16>
    %cst_83 = arith.constant dense<0.000000e+00> : vector<64x128xf32>
    %122 = tpu.matmul %3, %121, %cst_83 {dimension_numbers = #tpu.dot_dimension_numbers<[1], [0], [0], [1], [0, 0, 1, 1], [], []>} : vector<64x32xbf16>, vector<32x128xbf16>, vector<64x128xf32> -> vector<64x128xf32>
    %123 = arith.addf %120, %122 : vector<64x128xf32>
    %124 = arith.addf %123, %115 : vector<64x128xf32>
    %125 = arith.negf %124 : vector<64x128xf32>
    %126 = math.exp %125 : vector<64x128xf32>
    %cst_84 = arith.constant 1.000000e+00 : f32
    %127 = vector.broadcast %cst_84 : f32 to vector<64x128xf32>
    %128 = arith.addf %127, %126 : vector<64x128xf32>
    %129 = arith.divf %127, %128 : vector<64x128xf32>
    %130 = arith.mulf %129, %119 : vector<64x128xf32>
    %131 = tpu.concatenate %130, %129 in 1 : vector<64x128xf32>, vector<64x128xf32> -> vector<64x256xf32>
    %132 = arith.truncf %131 : vector<64x256xf32> to vector<64x256xbf16>
    %cst_85 = arith.constant dense<0.000000e+00> : vector<32x256xf32>
    %133 = tpu.matmul %5, %132, %cst_85 {dimension_numbers = #tpu.dot_dimension_numbers<[1], [0], [0], [1], [0, 0, 1, 1], [], []>} : vector<32x64xbf16>, vector<64x256xbf16>, vector<32x256xf32> -> vector<32x256xf32>
    %134 = vector.extract_strided_slice %133 {offsets = [0, 0], sizes = [32, 128], strides = [1, 1]} : vector<32x256xf32> to vector<32x128xf32>
    %135 = vector.extract_strided_slice %133 {offsets = [0, 128], sizes = [32, 128], strides = [1, 1]} : vector<32x256xf32> to vector<32x128xf32>
    %cst_86 = arith.constant 9.99999997E-7 : f32
    %136 = vector.broadcast %cst_86 : f32 to vector<32x128xf32>
    %137 = arith.addf %135, %136 : vector<32x128xf32>
    %138 = arith.divf %134, %137 : vector<32x128xf32>
    %139 = arith.addf %106, %138 : vector<32x128xf32>
    %c1_87 = arith.constant 1 : index
    %c0_88 = arith.constant 0 : index
    %c0_89 = arith.constant 0 : index
    %140 = vector.load %arg18[%c1_87, %c0_88, %c0_89] : memref<3x1x128xf32, #tpu.memory_space<vmem>>, vector<1x1x128xf32>
    %141 = vector.shape_cast %140 : vector<1x1x128xf32> to vector<1x128xf32>
    %142 = vector.broadcast %141 : vector<1x128xf32> to vector<32x128xf32>
    %143 = arith.mulf %139, %142 : vector<32x128xf32>
    %c1_90 = arith.constant 1 : index
    %c0_91 = arith.constant 0 : index
    %c0_92 = arith.constant 0 : index
    %144 = vector.load %arg19[%c1_90, %c0_91, %c0_92] : memref<3x1x128xf32, #tpu.memory_space<vmem>>, vector<1x1x128xf32>
    %145 = vector.shape_cast %144 : vector<1x1x128xf32> to vector<1x128xf32>
    %146 = vector.broadcast %145 : vector<1x128xf32> to vector<32x128xf32>
    %147 = arith.addf %143, %146 : vector<32x128xf32>
    %cst_93 = arith.constant 0.000000e+00 : f32
    %148 = vector.broadcast %cst_93 : f32 to vector<32x128xf32>
    %149 = arith.maximumf %147, %148 : vector<32x128xf32>
    %c1_94 = arith.constant 1 : index
    %c0_95 = arith.constant 0 : index
    %c0_96 = arith.constant 0 : index
    %150 = vector.load %arg20[%c1_94, %c0_95, %c0_96] : memref<3x1x128xf32, #tpu.memory_space<vmem>>, vector<1x1x128xf32>
    %151 = vector.shape_cast %150 : vector<1x1x128xf32> to vector<1x128xf32>
    %152 = vector.broadcast %151 : vector<1x128xf32> to vector<64x128xf32>
    %153 = arith.mulf %124, %152 : vector<64x128xf32>
    %c1_97 = arith.constant 1 : index
    %c0_98 = arith.constant 0 : index
    %c0_99 = arith.constant 0 : index
    %154 = vector.load %arg21[%c1_97, %c0_98, %c0_99] : memref<3x1x128xf32, #tpu.memory_space<vmem>>, vector<1x1x128xf32>
    %155 = vector.shape_cast %154 : vector<1x1x128xf32> to vector<1x128xf32>
    %156 = vector.broadcast %155 : vector<1x128xf32> to vector<64x128xf32>
    %157 = arith.addf %153, %156 : vector<64x128xf32>
    %cst_100 = arith.constant 0.000000e+00 : f32
    %158 = vector.broadcast %cst_100 : f32 to vector<64x128xf32>
    %159 = arith.maximumf %157, %158 : vector<64x128xf32>
    %160 = arith.addf %96, %149 : vector<32x128xf32>
    %161 = arith.addf %97, %159 : vector<64x128xf32>
    %162 = arith.truncf %160 : vector<32x128xf32> to vector<32x128xbf16>
    %c2 = arith.constant 2 : index
    %c0_101 = arith.constant 0 : index
    %c0_102 = arith.constant 0 : index
    %163 = vector.load %arg14[%c2, %c0_101, %c0_102] : memref<3x128x512xbf16, #tpu.memory_space<vmem>>, vector<1x128x512xbf16>
    %164 = vector.shape_cast %163 : vector<1x128x512xbf16> to vector<128x512xbf16>
    %cst_103 = arith.constant dense<0.000000e+00> : vector<32x512xf32>
    %165 = tpu.matmul %162, %164, %cst_103 {dimension_numbers = #tpu.dot_dimension_numbers<[1], [0], [0], [1], [0, 0, 1, 1], [], []>} : vector<32x128xbf16>, vector<128x512xbf16>, vector<32x512xf32> -> vector<32x512xf32>
    %c2_104 = arith.constant 2 : index
    %c0_105 = arith.constant 0 : index
    %c0_106 = arith.constant 0 : index
    %166 = vector.load %arg15[%c2_104, %c0_105, %c0_106] : memref<3x1x512xf32, #tpu.memory_space<vmem>>, vector<1x1x512xf32>
    %167 = vector.shape_cast %166 : vector<1x1x512xf32> to vector<1x512xf32>
    %168 = vector.broadcast %167 : vector<1x512xf32> to vector<32x512xf32>
    %169 = arith.addf %165, %168 : vector<32x512xf32>
    %170 = vector.extract_strided_slice %169 {offsets = [0, 0], sizes = [32, 128], strides = [1, 1]} : vector<32x512xf32> to vector<32x128xf32>
    %171 = vector.extract_strided_slice %169 {offsets = [0, 384], sizes = [32, 128], strides = [1, 1]} : vector<32x512xf32> to vector<32x128xf32>
    %172 = arith.truncf %161 : vector<64x128xf32> to vector<64x128xbf16>
    %c2_107 = arith.constant 2 : index
    %c0_108 = arith.constant 0 : index
    %c0_109 = arith.constant 0 : index
    %173 = vector.load %arg16[%c2_107, %c0_108, %c0_109] : memref<3x128x128xbf16, #tpu.memory_space<vmem>>, vector<1x128x128xbf16>
    %174 = vector.shape_cast %173 : vector<1x128x128xbf16> to vector<128x128xbf16>
    %cst_110 = arith.constant dense<0.000000e+00> : vector<64x128xf32>
    %175 = tpu.matmul %172, %174, %cst_110 {dimension_numbers = #tpu.dot_dimension_numbers<[1], [0], [0], [1], [0, 0, 1, 1], [], []>} : vector<64x128xbf16>, vector<128x128xbf16>, vector<64x128xf32> -> vector<64x128xf32>
    %c2_111 = arith.constant 2 : index
    %c0_112 = arith.constant 0 : index
    %c0_113 = arith.constant 0 : index
    %176 = vector.load %arg17[%c2_111, %c0_112, %c0_113] : memref<3x1x128xf32, #tpu.memory_space<vmem>>, vector<1x1x128xf32>
    %177 = vector.shape_cast %176 : vector<1x1x128xf32> to vector<1x128xf32>
    %178 = vector.broadcast %177 : vector<1x128xf32> to vector<64x128xf32>
    %179 = arith.addf %175, %178 : vector<64x128xf32>
    %180 = vector.extract_strided_slice %169 {offsets = [0, 128], sizes = [32, 256], strides = [1, 1]} : vector<32x512xf32> to vector<32x256xf32>
    %181 = arith.truncf %180 : vector<32x256xf32> to vector<32x256xbf16>
    %cst_114 = arith.constant dense<0.000000e+00> : vector<64x256xf32>
    %182 = tpu.matmul %1, %181, %cst_114 {dimension_numbers = #tpu.dot_dimension_numbers<[1], [0], [0], [1], [0, 0, 1, 1], [], []>} : vector<64x32xbf16>, vector<32x256xbf16>, vector<64x256xf32> -> vector<64x256xf32>
    %183 = vector.extract_strided_slice %182 {offsets = [0, 0], sizes = [64, 128], strides = [1, 1]} : vector<64x256xf32> to vector<64x128xf32>
    %184 = vector.extract_strided_slice %182 {offsets = [0, 128], sizes = [64, 128], strides = [1, 1]} : vector<64x256xf32> to vector<64x128xf32>
    %185 = arith.truncf %171 : vector<32x128xf32> to vector<32x128xbf16>
    %cst_115 = arith.constant dense<0.000000e+00> : vector<64x128xf32>
    %186 = tpu.matmul %3, %185, %cst_115 {dimension_numbers = #tpu.dot_dimension_numbers<[1], [0], [0], [1], [0, 0, 1, 1], [], []>} : vector<64x32xbf16>, vector<32x128xbf16>, vector<64x128xf32> -> vector<64x128xf32>
    %187 = arith.addf %184, %186 : vector<64x128xf32>
    %188 = arith.addf %187, %179 : vector<64x128xf32>
    %189 = arith.negf %188 : vector<64x128xf32>
    %190 = math.exp %189 : vector<64x128xf32>
    %cst_116 = arith.constant 1.000000e+00 : f32
    %191 = vector.broadcast %cst_116 : f32 to vector<64x128xf32>
    %192 = arith.addf %191, %190 : vector<64x128xf32>
    %193 = arith.divf %191, %192 : vector<64x128xf32>
    %194 = arith.mulf %193, %183 : vector<64x128xf32>
    %195 = tpu.concatenate %194, %193 in 1 : vector<64x128xf32>, vector<64x128xf32> -> vector<64x256xf32>
    %196 = arith.truncf %195 : vector<64x256xf32> to vector<64x256xbf16>
    %cst_117 = arith.constant dense<0.000000e+00> : vector<32x256xf32>
    %197 = tpu.matmul %5, %196, %cst_117 {dimension_numbers = #tpu.dot_dimension_numbers<[1], [0], [0], [1], [0, 0, 1, 1], [], []>} : vector<32x64xbf16>, vector<64x256xbf16>, vector<32x256xf32> -> vector<32x256xf32>
    %198 = vector.extract_strided_slice %197 {offsets = [0, 0], sizes = [32, 128], strides = [1, 1]} : vector<32x256xf32> to vector<32x128xf32>
    %199 = vector.extract_strided_slice %197 {offsets = [0, 128], sizes = [32, 128], strides = [1, 1]} : vector<32x256xf32> to vector<32x128xf32>
    %cst_118 = arith.constant 9.99999997E-7 : f32
    %200 = vector.broadcast %cst_118 : f32 to vector<32x128xf32>
    %201 = arith.addf %199, %200 : vector<32x128xf32>
    %202 = arith.divf %198, %201 : vector<32x128xf32>
    %203 = arith.addf %170, %202 : vector<32x128xf32>
    %c2_119 = arith.constant 2 : index
    %c0_120 = arith.constant 0 : index
    %c0_121 = arith.constant 0 : index
    %204 = vector.load %arg18[%c2_119, %c0_120, %c0_121] : memref<3x1x128xf32, #tpu.memory_space<vmem>>, vector<1x1x128xf32>
    %205 = vector.shape_cast %204 : vector<1x1x128xf32> to vector<1x128xf32>
    %206 = vector.broadcast %205 : vector<1x128xf32> to vector<32x128xf32>
    %207 = arith.mulf %203, %206 : vector<32x128xf32>
    %c2_122 = arith.constant 2 : index
    %c0_123 = arith.constant 0 : index
    %c0_124 = arith.constant 0 : index
    %208 = vector.load %arg19[%c2_122, %c0_123, %c0_124] : memref<3x1x128xf32, #tpu.memory_space<vmem>>, vector<1x1x128xf32>
    %209 = vector.shape_cast %208 : vector<1x1x128xf32> to vector<1x128xf32>
    %210 = vector.broadcast %209 : vector<1x128xf32> to vector<32x128xf32>
    %211 = arith.addf %207, %210 : vector<32x128xf32>
    %cst_125 = arith.constant 0.000000e+00 : f32
    %212 = vector.broadcast %cst_125 : f32 to vector<32x128xf32>
    %213 = arith.maximumf %211, %212 : vector<32x128xf32>
    %c2_126 = arith.constant 2 : index
    %c0_127 = arith.constant 0 : index
    %c0_128 = arith.constant 0 : index
    %214 = vector.load %arg20[%c2_126, %c0_127, %c0_128] : memref<3x1x128xf32, #tpu.memory_space<vmem>>, vector<1x1x128xf32>
    %215 = vector.shape_cast %214 : vector<1x1x128xf32> to vector<1x128xf32>
    %216 = vector.broadcast %215 : vector<1x128xf32> to vector<64x128xf32>
    %217 = arith.mulf %188, %216 : vector<64x128xf32>
    %c2_129 = arith.constant 2 : index
    %c0_130 = arith.constant 0 : index
    %c0_131 = arith.constant 0 : index
    %218 = vector.load %arg21[%c2_129, %c0_130, %c0_131] : memref<3x1x128xf32, #tpu.memory_space<vmem>>, vector<1x1x128xf32>
    %219 = vector.shape_cast %218 : vector<1x1x128xf32> to vector<1x128xf32>
    %220 = vector.broadcast %219 : vector<1x128xf32> to vector<64x128xf32>
    %221 = arith.addf %217, %220 : vector<64x128xf32>
    %cst_132 = arith.constant 0.000000e+00 : f32
    %222 = vector.broadcast %cst_132 : f32 to vector<64x128xf32>
    %223 = arith.maximumf %221, %222 : vector<64x128xf32>
    %224 = arith.addf %160, %213 : vector<32x128xf32>
    %225 = arith.addf %161, %223 : vector<64x128xf32>
    %cst_133 = arith.constant dense<0.000000e+00> : vector<128xf32>
    %226 = vector.multi_reduction <add>, %224, %cst_133 [0] : vector<32x128xf32> to vector<128xf32>
    %227 = vector.shape_cast %226 : vector<128xf32> to vector<1x128xf32>
    %cst_134 = arith.constant 3.200000e+01 : f32
    %228 = vector.broadcast %cst_134 : f32 to vector<1x128xf32>
    %229 = arith.divf %227, %228 : vector<1x128xf32>
    %cst_135 = arith.constant dense<0.000000e+00> : vector<128xf32>
    %230 = vector.multi_reduction <add>, %225, %cst_135 [0] : vector<64x128xf32> to vector<128xf32>
    %231 = vector.shape_cast %230 : vector<128xf32> to vector<1x128xf32>
    %cst_136 = arith.constant 6.400000e+01 : f32
    %232 = vector.broadcast %cst_136 : f32 to vector<1x128xf32>
    %233 = arith.divf %231, %232 : vector<1x128xf32>
    %234 = tpu.concatenate %229, %233 in 1 : vector<1x128xf32>, vector<1x128xf32> -> vector<1x256xf32>
    %235 = arith.truncf %234 : vector<1x256xf32> to vector<1x256xbf16>
    %c0_137 = arith.constant 0 : index
    %c0_138 = arith.constant 0 : index
    %236 = vector.load %arg22[%c0_137, %c0_138] : memref<256x512xbf16, #tpu.memory_space<vmem>>, vector<256x512xbf16>
    %cst_139 = arith.constant dense<0.000000e+00> : vector<1x512xf32>
    %237 = tpu.matmul %235, %236, %cst_139 {dimension_numbers = #tpu.dot_dimension_numbers<[1], [0], [0], [1], [0, 0, 1, 1], [], []>} : vector<1x256xbf16>, vector<256x512xbf16>, vector<1x512xf32> -> vector<1x512xf32>
    %c0_140 = arith.constant 0 : index
    %c0_141 = arith.constant 0 : index
    %238 = vector.load %arg23[%c0_140, %c0_141] : memref<1x512xf32, #tpu.memory_space<vmem>>, vector<1x512xf32>
    %239 = arith.addf %237, %238 : vector<1x512xf32>
    %cst_142 = arith.constant 0.000000e+00 : f32
    %240 = vector.broadcast %cst_142 : f32 to vector<1x512xf32>
    %241 = arith.maximumf %239, %240 : vector<1x512xf32>
    %242 = arith.truncf %241 : vector<1x512xf32> to vector<1x512xbf16>
    %c0_143 = arith.constant 0 : index
    %c0_144 = arith.constant 0 : index
    %243 = vector.load %arg24[%c0_143, %c0_144] : memref<512x128xbf16, #tpu.memory_space<vmem>>, vector<512x128xbf16>
    %cst_145 = arith.constant dense<0.000000e+00> : vector<1x128xf32>
    %244 = tpu.matmul %242, %243, %cst_145 {dimension_numbers = #tpu.dot_dimension_numbers<[1], [0], [0], [1], [0, 0, 1, 1], [], []>} : vector<1x512xbf16>, vector<512x128xbf16>, vector<1x128xf32> -> vector<1x128xf32>
    %c0_146 = arith.constant 0 : index
    %c0_147 = arith.constant 0 : index
    %245 = vector.load %arg25[%c0_146, %c0_147] : memref<1x128xf32, #tpu.memory_space<vmem>>, vector<1x128xf32>
    %246 = arith.addf %244, %245 : vector<1x128xf32>
    %c0_148 = arith.constant 0 : index
    %c0_149 = arith.constant 0 : index
    %c0_150 = arith.constant 0 : index
    %247 = vector.load %arg26[%c0_148, %c0_149, %c0_150] : memref<1x1x128xf32, #tpu.memory_space<vmem>>, vector<1x1x128xf32>
    %248 = vector.shape_cast %247 : vector<1x1x128xf32> to vector<1x128xf32>
    %249 = vector.shape_cast %246 : vector<1x128xf32> to vector<1x1x128xf32>
    tpu.vector_store %arg26[%c0_148, %c0_149, %c0_150], %249 {strides = array<i32>} : memref<1x1x128xf32, #tpu.memory_space<vmem>>, vector<1x1x128xf32>,
    return
  }
  func.func @transform_0(%arg0: i32) -> (i32, i32, i32) {
    %c0_i32 = arith.constant 0 : i32
    %c0_i32_0 = arith.constant 0 : i32
    %c0_i32_1 = arith.constant 0 : i32
    return %arg0, %c0_i32, %c0_i32_0 : i32, i32, i32
  }
  func.func @transform_1(%arg0: i32) -> (i32, i32, i32) {
    %c0_i32 = arith.constant 0 : i32
    %c0_i32_0 = arith.constant 0 : i32
    %c0_i32_1 = arith.constant 0 : i32
    return %arg0, %c0_i32, %c0_i32_0 : i32, i32, i32
  }
  func.func @transform_2(%arg0: i32) -> (i32, i32, i32) {
    %c0_i32 = arith.constant 0 : i32
    %c0_i32_0 = arith.constant 0 : i32
    %c0_i32_1 = arith.constant 0 : i32
    return %arg0, %c0_i32, %c0_i32_0 : i32, i32, i32
  }
  func.func @transform_3(%arg0: i32) -> (i32, i32, i32) {
    %c0_i32 = arith.constant 0 : i32
    %c0_i32_0 = arith.constant 0 : i32
    %c0_i32_1 = arith.constant 0 : i32
    return %arg0, %c0_i32, %c0_i32_0 : i32, i32, i32
  }
  func.func @transform_4(%arg0: i32) -> (i32, i32, i32) {
    %c0_i32 = arith.constant 0 : i32
    %c0_i32_0 = arith.constant 0 : i32
    %c0_i32_1 = arith.constant 0 : i32
    return %arg0, %c0_i32, %c0_i32_0 : i32, i32, i32
  }
  func.func @transform_5(%arg0: i32) -> (i32, i32, i32) {
    %c0_i32 = arith.constant 0 : i32
    %c0_i32_0 = arith.constant 0 : i32
    %c0_i32_1 = arith.constant 0 : i32
    return %arg0, %c0_i32, %c0_i32_0 : i32, i32, i32
  }
  func.func @transform_6(%arg0: i32) -> (i32, i32) {
    %c0_i32 = arith.constant 0 : i32
    %c0_i32_0 = arith.constant 0 : i32
    %c0_i32_1 = arith.constant 0 : i32
    return %c0_i32, %c0_i32_0 : i32, i32
  }
  func.func @transform_7(%arg0: i32) -> (i32, i32) {
    %c0_i32 = arith.constant 0 : i32
    %c0_i32_0 = arith.constant 0 : i32
    %c0_i32_1 = arith.constant 0 : i32
    return %c0_i32, %c0_i32_0 : i32, i32
  }
  func.func @transform_8(%arg0: i32) -> (i32, i32) {
    %c0_i32 = arith.constant 0 : i32
    %c0_i32_0 = arith.constant 0 : i32
    %c0_i32_1 = arith.constant 0 : i32
    return %c0_i32, %c0_i32_0 : i32, i32
  }
  func.func @transform_9(%arg0: i32) -> (i32, i32) {
    %c0_i32 = arith.constant 0 : i32
    %c0_i32_0 = arith.constant 0 : i32
    %c0_i32_1 = arith.constant 0 : i32
    return %c0_i32, %c0_i32_0 : i32, i32
  }
  func.func @transform_10(%arg0: i32) -> (i32, i32) {
    %c0_i32 = arith.constant 0 : i32
    %c0_i32_0 = arith.constant 0 : i32
    %c0_i32_1 = arith.constant 0 : i32
    return %c0_i32, %c0_i32_0 : i32, i32
  }
  func.func @transform_11(%arg0: i32) -> (i32, i32) {
    %c0_i32 = arith.constant 0 : i32
    %c0_i32_0 = arith.constant 0 : i32
    %c0_i32_1 = arith.constant 0 : i32
    return %c0_i32, %c0_i32_0 : i32, i32
  }
  func.func @transform_12(%arg0: i32) -> (i32, i32) {
    %c0_i32 = arith.constant 0 : i32
    %c0_i32_0 = arith.constant 0 : i32
    %c0_i32_1 = arith.constant 0 : i32
    return %c0_i32, %c0_i32_0 : i32, i32
  }
  func.func @transform_13(%arg0: i32) -> (i32, i32, i32) {
    %c0_i32 = arith.constant 0 : i32
    %c0_i32_0 = arith.constant 0 : i32
    %c0_i32_1 = arith.constant 0 : i32
    %c0_i32_2 = arith.constant 0 : i32
    return %c0_i32, %c0_i32_0, %c0_i32_1 : i32, i32, i32
  }
  func.func @transform_14(%arg0: i32) -> (i32, i32, i32) {
    %c0_i32 = arith.constant 0 : i32
    %c0_i32_0 = arith.constant 0 : i32
    %c0_i32_1 = arith.constant 0 : i32
    %c0_i32_2 = arith.constant 0 : i32
    return %c0_i32, %c0_i32_0, %c0_i32_1 : i32, i32, i32
  }
  func.func @transform_15(%arg0: i32) -> (i32, i32, i32) {
    %c0_i32 = arith.constant 0 : i32
    %c0_i32_0 = arith.constant 0 : i32
    %c0_i32_1 = arith.constant 0 : i32
    %c0_i32_2 = arith.constant 0 : i32
    return %c0_i32, %c0_i32_0, %c0_i32_1 : i32, i32, i32
  }
  func.func @transform_16(%arg0: i32) -> (i32, i32, i32) {
    %c0_i32 = arith.constant 0 : i32
    %c0_i32_0 = arith.constant 0 : i32
    %c0_i32_1 = arith.constant 0 : i32
    %c0_i32_2 = arith.constant 0 : i32
    return %c0_i32, %c0_i32_0, %c0_i32_1 : i32, i32, i32
  }
  func.func @transform_17(%arg0: i32) -> (i32, i32, i32) {
    %c0_i32 = arith.constant 0 : i32
    %c0_i32_0 = arith.constant 0 : i32
    %c0_i32_1 = arith.constant 0 : i32
    %c0_i32_2 = arith.constant 0 : i32
    return %c0_i32, %c0_i32_0, %c0_i32_1 : i32, i32, i32
  }
  func.func @transform_18(%arg0: i32) -> (i32, i32, i32) {
    %c0_i32 = arith.constant 0 : i32
    %c0_i32_0 = arith.constant 0 : i32
    %c0_i32_1 = arith.constant 0 : i32
    %c0_i32_2 = arith.constant 0 : i32
    return %c0_i32, %c0_i32_0, %c0_i32_1 : i32, i32, i32
  }
  func.func @transform_19(%arg0: i32) -> (i32, i32, i32) {
    %c0_i32 = arith.constant 0 : i32
    %c0_i32_0 = arith.constant 0 : i32
    %c0_i32_1 = arith.constant 0 : i32
    %c0_i32_2 = arith.constant 0 : i32
    return %c0_i32, %c0_i32_0, %c0_i32_1 : i32, i32, i32
  }
  func.func @transform_20(%arg0: i32) -> (i32, i32, i32) {
    %c0_i32 = arith.constant 0 : i32
    %c0_i32_0 = arith.constant 0 : i32
    %c0_i32_1 = arith.constant 0 : i32
    %c0_i32_2 = arith.constant 0 : i32
    return %c0_i32, %c0_i32_0, %c0_i32_1 : i32, i32, i32
  }
  func.func @transform_21(%arg0: i32) -> (i32, i32) {
    %c0_i32 = arith.constant 0 : i32
    %c0_i32_0 = arith.constant 0 : i32
    %c0_i32_1 = arith.constant 0 : i32
    return %c0_i32, %c0_i32_0 : i32, i32
  }
  func.func @transform_22(%arg0: i32) -> (i32, i32) {
    %c0_i32 = arith.constant 0 : i32
    %c0_i32_0 = arith.constant 0 : i32
    %c0_i32_1 = arith.constant 0 : i32
    return %c0_i32, %c0_i32_0 : i32, i32
  }
  func.func @transform_23(%arg0: i32) -> (i32, i32) {
    %c0_i32 = arith.constant 0 : i32
    %c0_i32_0 = arith.constant 0 : i32
    %c0_i32_1 = arith.constant 0 : i32
    return %c0_i32, %c0_i32_0 : i32, i32
  }
  func.func @transform_24(%arg0: i32) -> (i32, i32) {
    %c0_i32 = arith.constant 0 : i32
    %c0_i32_0 = arith.constant 0 : i32
    %c0_i32_1 = arith.constant 0 : i32
    return %c0_i32, %c0_i32_0 : i32, i32
  }
  func.func @transform_25(%arg0: i32) -> (i32, i32, i32) {
    %c0_i32 = arith.constant 0 : i32
    %c0_i32_0 = arith.constant 0 : i32
    %c0_i32_1 = arith.constant 0 : i32
    return %arg0, %c0_i32, %c0_i32_0 : i32, i32, i32
  }
}

</mosaic_0001>

<bundles_post_ra>
// kernel: tpu_custom_call.1
= control target key start
LH: loop header
LB: loop body
LE: loop exit
PB: predicated region body
PF: predicated region fallthrough
CT: control target
= control target key end

     0   :  { %s9366_s0 = inlined_call_operand.vmem [shape: bf16[4,32,15], index: 0, kind: input, shape index: {}]   ;;  %s9367_s1 = inlined_call_operand.vmem [shape: f32[4,32,10], index: 1, kind: input, shape index: {}]   ;;  %s9368_s2 = inlined_call_operand.vmem [shape: bf16[4,64,8], index: 2, kind: input, shape index: {}]   ;;  %s9369_s3 = inlined_call_operand.vmem [shape: bf16[4,64,32], index: 3, kind: input, shape index: {}]   ;;  %s9370_s4 = inlined_call_operand.vmem [shape: bf16[4,64,32], index: 4, kind: input, shape index: {}]   ;;  %s9371_s5 = inlined_call_operand.vmem [shape: bf16[4,32,64], index: 5, kind: input, shape index: {}]   ;;  %s9372_s6 = inlined_call_operand.vmem [shape: bf16[15,128], index: 6, kind: input, shape index: {}]   ;;  %s9373_s7 = inlined_call_operand.vmem [shape: bf16[8,128], index: 7, kind: input, shape index: {}]   ;;  %s9374_s8 = inlined_call_operand.vmem [shape: bf16[128,512], index: 8, kind: input, shape index: {}]   ;;  %s9375_s9 = inlined_call_operand.vmem [shape: bf16[10,512], index: 9, kind: input, shape index: {}]   ;;  %s9376_s10 = inlined_call_operand.vmem [shape: f32[1,512], index: 10, kind: input, shape index: {}]   ;;  %s9377_s11 = inlined_call_operand.hbm [shape: bf16[512,128], index: 11, kind: input, shape index: {}]   ;;  %s9378_s12 = inlined_call_operand.vmem [shape: f32[1,128], index: 12, kind: input, shape index: {}]   ;;  %s9379_s13 = inlined_call_operand.hbm [shape: bf16[3,128,512], index: 13, kind: input, shape index: {}]   ;;  %s9380_s14 = inlined_call_operand.vmem [shape: f32[3,1,512], index: 14, kind: input, shape index: {}]   ;;  %s9381_s15 = inlined_call_operand.vmem [shape: bf16[3,128,128], index: 15, kind: input, shape index: {}]   ;;  %s9382_s16 = inlined_call_operand.vmem [shape: f32[3,1,128], index: 16, kind: input, shape index: {}]   ;;  %s9383_s17 = inlined_call_operand.vmem [shape: f32[3,1,128], index: 17, kind: input, shape index: {}]   ;;  %s9384_s18 = inlined_call_operand.vmem [shape: f32[3,1,128], index: 18, kind: input, shape index: {}]   ;;  %s9385_s19 = inlined_call_operand.vmem [shape: f32[3,1,128], index: 19, kind: input, shape index: {}]   ;;  %s9386_s20 = inlined_call_operand.vmem [shape: f32[3,1,128], index: 20, kind: input, shape index: {}]   ;;  %s9387_s21 = inlined_call_operand.hbm [shape: bf16[256,512], index: 21, kind: input, shape index: {}]   ;;  %s9388_s22 = inlined_call_operand.vmem [shape: f32[1,512], index: 22, kind: input, shape index: {}]   ;;  %s9389_s23 = inlined_call_operand.hbm [shape: bf16[512,128], index: 23, kind: input, shape index: {}]   ;;  %s9390_s24 = inlined_call_operand.vmem [shape: f32[1,128], index: 24, kind: input, shape index: {}]   ;;  %s9391_s25 = inlined_call_operand.hbm [shape: f32[4,1,128], index: 25, kind: output, shape index: {}]  }
   0x1   :  { %9415 = sst [smem:[#allocation28_spill]] %s9366_s0 }
   0x2   :  { %9416 = sst [smem:[#allocation29_spill]] %s9367_s1 }
   0x3   :  { %9417 = sst [smem:[#allocation30_spill]] %s9368_s2 }
   0x4   :  { %9418 = sst [smem:[#allocation31_spill]] %s9369_s3 }
   0x5   :  { %9419 = sst [smem:[#allocation32_spill]] %s9370_s4 }
   0x6   :  { %9420 = sst [smem:[#allocation33_spill]] %s9371_s5 }
   0x7   :  { %9421 = sst [smem:[#allocation34_spill]] %s9372_s6 }
   0x8   :  { %9422 = sst [smem:[#allocation35_spill]] %s9373_s7 }
   0x9   :  { %9423 = sst [smem:[#allocation36_spill]] %s9374_s8 }
   0xa   :  { %9424 = sst [smem:[#allocation37_spill]] %s9375_s9 }
   0xb   :  { %9425 = sst [smem:[#allocation38_spill]] %s9377_s11 }
   0xc   :  { %9426 = sst [smem:[#allocation39_spill]] %s9379_s13 }
   0xd   :  { %9427 = sst [smem:[#allocation40_spill]] %s9390_s24 }
   0xe   :  { %9428 = sst [smem:[#allocation41_spill]] %s9391_s25 }
   0xf   :  { %30 = vsyncpa [#allocation3], 0 }
  0x10   :  { %31 = vsyncpa [#allocation6], 0 }
  0x11   :  { %32 = vsyncpa [#allocation9], 0 }
  0x12   :  { %33 = vsyncpa [#allocation4], 0 }
  0x13   :  { %35 = vsyncpa [#allocation4 + $0x1], 0  ;;  %s7716_s29 = smov 0   ;;  %s7718_s2 = smov 0  }
  0x14   :  { %s7720_s6 = smov 0   ;;  %s7722_s30 = smov 0  }
  0x15 LB: > { %9429 = sst [smem:[#allocation15_spill]] %s7561_s29  ;;  %s7737_s7 = sadd.s32 4294967295, %s7573_s30   ;;  %s7573_s30 = sphi %s7722_s30, %s9528_s30   ;;  %s7569_s6 = sphi %s7720_s6, %s9531_s6   ;;  %s7565_s2 = sphi %s7718_s2, %s9530_s2   ;;  %s7561_s29 = sphi %s7716_s29, %s9529_s29  }
  0x16   : > { %9430 = sst [smem:[#allocation16_spill]] %s7565_s2  ;;  %s5464_s3 = sadd.s32 4294967294, %s7573_s30  }
  0x17   : > { %9431 = sst [smem:[#allocation17_spill]] %s7569_s6  ;;  %s7741_s26 = sadd.s32 1, %s7573_s30  }
  0x18   : > { %9432 = sst [smem:[#allocation18_spill]] %s7573_s30  ;;  %s603_s1 = sadd.s32 1, %s7569_s6 }
  0x19   : > { %9433 = sst [smem:[#allocation19_spill]] %s7741_s26  ;;  %s600_s8 = ssub.s32 %s7573_s30, %s7741_s26 }
  0x1a   : > { %p613_p0 = scmp.ne.s32.totalorder %s7569_s6, %s7565_s2  ;;  %p601_p1 = scmp.eq.s32.totalorder %s600_s8, 0 }
  0x1b   : > { %p614_p2 = scmp.eq.s32.totalorder %s7737_s7, 3  ;;  %p619_p3 = scmp.ne.s32.totalorder %s7565_s2, %s7561_s29 }
  0x1c   : > { %p620_p4 = scmp.eq.s32.totalorder %s5464_s3, 3  ;;  %p5465_p7 = scmp.ge.s32.totalorder %s7573_s30, 1 }
  0x1d   : > { %s7752_s27 = scalar_select %p601_p1, %s7569_s6, %s603_s1  }
  0x1e   : > { %p7754_p5 = por %p614_p2, %p613_p0  ;;  %p7758_p6 = por %p620_p4, %p619_p3 }
  0x1f   : > { %9434 = sst [smem:[#allocation20_spill]] %s7752_s27  ;;  %p627_p8 = scmp.lt.s32.totalorder %s7573_s30, 5 }
  0x20   : > { %s9435_s4 = scalar_select %p7754_p5, 1, 0 }
  0x21   : > { %s9437_s28 = scalar_select %p7758_p6, 1, 0 }
  0x22   : > { %9436 = sst [smem:[#allocation21_spill]] %s9435_s4  ;;  %p7167_p9 = scmp.eq.s32.totalorder %s7737_s7, 0 }
  0x23   : > { %9438 = sst [smem:[#allocation22_spill]] %s9437_s28  ;;  %p7765_p10 = pnand %p5465_p7, %p627_p8 }
  0x24   : > { %s9440_s13 = sld [smem:[#allocation39_spill]]  ;;  %s7575_s1 = smov [#allocation5]  }
  0x25   : > { %p7150_p11 = pneg %p7765_p10  ;;  %s672_s8 = sshll.u32 %s7575_s1, 4  ;;  %s673_s8 = int_to_ptr.vmem [resolvable:$true] %s672_s8 }
  0x26   : > { %s9442_s11 = sld [smem:[#allocation38_spill]]  ;;  %s7576_s5 = smov 256  }
  0x27   : > { %p7776_p12 = pnand %p7167_p9, %p7150_p11  ;;  %s7577_s0 = smov 16  }
  0x28   : > { %s7579_s29 = smov 64   ;;  %s7580_s30 = smov 4  }
  0x29   : > { %s705_s6 = sshll.u32 %s9387_s21, 4  ;;  %s7581_s26 = smov [#allocation7]   ;;  %s706_s6 = int_to_ptr.hbm [resolvable:$true] %s705_s6 }
  0x2a   : > { %s670_s3 = sshll.u32 %s9440_s13, 4  ;;  %s7578_s13 = smov [#allocation2]   ;;  %s671_s3 = int_to_ptr.hbm [resolvable:$true] %s670_s3 }
  0x2b   : > { %7156 = dma.hbm_to_vmem [thread:$0]  (!%p7776_p12), %s671_s3, 12288, %s673_s8, [#allocation6], %s7576_s5, %s7576_s5, %s7577_s0  }
  0x2c   : > { %s653_s28 = sshll.u32 %s9442_s11, 4  ;;  %s655_s1 = sshll.u32 %s7578_s13, 4  ;;  %s654_s28 = int_to_ptr.hbm [resolvable:$true] %s653_s28  ;;  %s656_s1 = int_to_ptr.vmem [resolvable:$true] %s655_s1 }
  0x2d   : > { %7153 = dma.hbm_to_vmem [thread:$0]  (!%p7776_p12), %s654_s28, 4096, %s656_s1, [#allocation3], %s7579_s29, %s7579_s29, %s7580_s30  }
  0x2e   : > { %s707_s11 = sshll.u32 %s7581_s26, 4  ;;  %s722_s3 = sshll.u32 %s9389_s23, 4  ;;  %s708_s11 = int_to_ptr.vmem [resolvable:$true] %s707_s11  ;;  %s723_s3 = int_to_ptr.hbm [resolvable:$true] %s722_s3 }
  0x2f   : > { %7159 = dma.hbm_to_vmem [thread:$0]  (!%p7776_p12), %s706_s6, 8192, %s708_s11, [#allocation6], %s7576_s5, %s7576_s5, %s7577_s0  }
  0x30   : > { %s7582_s13 = smov [#allocation8]   ;;  %791 = sbr.rel (%p7765_p10) target bundleno = 2549 (0x9f5), region = 120 }
  0x31   : > { %s724_s8 = sshll.u32 %s7582_s13, 4  ;;  %s725_s8 = int_to_ptr.vmem [resolvable:$true] %s724_s8 }
  0x32   : > { %7162 = dma.hbm_to_vmem [thread:$0]  (!%p7776_p12), %s723_s3, 4096, %s725_s8, [#allocation9], %s7579_s29, %s7579_s29, %s7580_s30  }
  0x35   : > { %7544 = dma.done.wait (%p7167_p9), [#allocation3], 4096  }
  0x36   : > { %7546 = vsyncadd (%p7167_p9), [#allocation3], 4294963200 }
  0x37   : > { %7548 = dma.done.wait (%p7167_p9), [#allocation6], 20480  }
  0x38   : > { %7550 = vsyncadd (%p7167_p9), [#allocation6], 4294946816 }
  0x39   : > { %7552 = dma.done.wait (%p7167_p9), [#allocation9], 4096  }
  0x3a   : > { %7554 = vsyncadd (%p7167_p9), [#allocation9], 4294963200  ;;  %vm978_vm0 = vcmask 1046528   ;;  %p899_p13 = scmp.lt.s32.totalorder %s7737_s7, 3  ;;  %vm979_vm1 = vcmask 1047552   ;;  %v7583_v0 = vmov 65535  }
  0x3b   : > { %v980_v1 = vsel %vm978_vm0, 4294967295, %v7583_v0  ;;  %s9443_s30 = sld [smem:[#allocation34_spill]]  ;;  %vm1046_vm2 = vcmask 1043456   ;;  %vm1146_vm3 = vcmask 1044480   ;;  %vm971_vm4 = vcmask 121856  }
  0x3c   : > { %s7813_s11 = scalar_select %p899_p13, %s7737_s7, 3  ;;  %v981_v2 = vsel %vm979_vm1, %v980_v1, 0  ;;  %vm1139_vm5 = vcmask 80896   ;;  %vm1033_vm6 = vcmask 64512   ;;  %vm2262_vm7 = vcmask 261120  }
  0x3d   : > { %s9444_s28 = sld [smem:[#allocation28_spill]] }
  0x3e   : > { %s6824_s24 = sshll.u32 %s7813_s11, 4  ;;  %s7817_s25 = sshll.u32 %s7813_s11, 5 }
  0x3f   : > { %s9445_s1 = sld [smem:[#allocation29_spill]] }
  0x40   : > { %s9446_s13 = sld [smem:[#allocation37_spill]] }
  0x41   : > { %v6842_v3 = vld [vmem:[%s9443_s30] sm:$0xff]  ;;  %s9447_s27 = sld [smem:[#allocation35_spill]] }
  0x42   : > { %v983_v5 = vand.u32 %v6842_v3, %v981_v2  ;;  %s9453_s3 = sld [smem:[#allocation31_spill]] }
  0x43   : > { %s903_s9 = scalar_lea.vmem %s9444_s28, %s6824_s24  ;;  %s9448_s28 = sld [smem:[#allocation30_spill]] }
  0x44   : > { %v6840_v9 = vld [vmem:[%s903_s9] sm:$0xff]  ;;  %v6841_v10 = vld [vmem:[%s903_s9 + $0x8] sm:$0xff]  ;;  %992 = vmatpush.bf16.msra.mxu0 %v983_v5  ;;  %7131 = vmatpush.bf16.msra.mxu1 %v983_v5  ;;  %s9521_s4 = sld [smem:[#allocation16_spill]] }
  0x45   : > { %s7831_s6 = scalar_lea.vmem %s9445_s1, %s7817_s25  ;;  %s9449_s1 = sld [smem:[#allocation36_spill]] }
  0x46   : > { %v5524_v4 = vld [vmem:[%s9446_s13] sm:$0xf]  ;;  %v6881_v6 = vld [vmem:[%s9446_s13 + $0xc] sm:$0x10]  ;;  %v1114_v13 = vld [vmem:[%s7831_s6 + $0x8] sm:$0xff]  ;;  %s9523_s26 = sld [smem:[#allocation41_spill]] }
  0x47   : > { %v1012_v7 = vld [vmem:[%s9447_s27] sm:$0xf]  ;;  %v5525_v11 = vor.u32 %v6881_v6, %v5524_v4  ;;  %5500 = vmatmul.msk.bf16.vlgmr.msra.gmra.mxu0 %vm971_vm4, %v6840_v9  ;;  %5501 = vmatmul.msk.bf16.vlgmr.msra.gmra.mxu1 %vm971_vm4, %v6841_v10  ;;  %v6879_v16 = vld [vmem:[%s9446_s13 + $0x4] sm:$0xf]  ;;  %v5526_v17 = vld [vmem:[%s9446_s13 + $0x10] sm:$0x10] }
  0x48   : > { %v1113_v8 = vld [vmem:[%s7831_s6] sm:$0xff]  ;;  %v1048_v12 = vsel %vm1046_vm2, %v1012_v7, 0  ;;  %v6880_v18 = vld [vmem:[%s9446_s13 + $0xc] sm:$0xf]  ;;  %v5529_v19 = vor.u32 %v6879_v16, %v5526_v17  ;;  %v5534_v20 = vld [vmem:[%s9446_s13 + $0x18] sm:$0x10] }
  0x49   : > { %v1148_v14 = vsel %vm1146_vm3, %v5525_v11, 0  ;;  %1057 = vmatpush.bf16.msrb.mxu1 %v1048_v12  ;;  %v7845_v15 = vpack.c.bf16 %v1114_v13, %v1113_v8  ;;  %v5532_v21 = vld [vmem:[%s9446_s13 + $0x8] sm:$0xf]  ;;  %v6882_v22 = vld [vmem:[%s9446_s13 + $0x14] sm:$0x10]  ;;  %v5537_v23 = vor.u32 %v6880_v18, %v5534_v20  ;;  %s7876_s9 = scalar_lea.vmem %s9448_s28, %s7817_s25  ;;  %v1115_v28 = vld [vmem:[%s7831_s6 + $0x10] sm:$0xff] }
  0x4a   : > { %1166 = vmatpush.bf16.msra.mxu2 %v1148_v14  ;;  %v5533_v24 = vor.u32 %v6882_v22, %v5532_v21  ;;  %v1151_v25 = vsel %vm1146_vm3, %v5529_v19, 0  ;;  %v1116_v29 = vld [vmem:[%s7831_s6 + $0x18] sm:$0xff]  ;;  %v6843_v30 = vld [vmem:[%s7876_s9] sm:$0xff]  ;;  %v6844_v13 = vld [vmem:[%s7876_s9 + $0x8] sm:$0xff]  ;;  %s9454_s6 = sld [smem:[#allocation32_spill]] }
  0x4b   : > { %1185 = vmatpush.bf16.msra.mxu3 %v1151_v25  ;;  %v1157_v26 = vsel %vm1146_vm3, %v5537_v23, 0  ;;  %v7881_v31 = vpack.c.bf16 %v1116_v29, %v1115_v28  ;;  %v5660_v32 = vld [vmem:[%s9449_s1 + $0xe0] sm:$0xf]  ;;  %v6877_v33 = vld [vmem:[%s9449_s1 + $0xec] sm:$0xf0]  ;;  %s9471_s28 = sld [smem:[#allocation33_spill]] }
  0x4c   : > { %v1154_v27 = vsel %vm1146_vm3, %v5533_v24, 0  ;;  %v6875_v34 = vld [vmem:[%s9449_s1 + $0xe4] sm:$0xf]  ;;  %v5661_v35 = vor.u32 %v6877_v33, %v5660_v32  ;;  %v5662_v36 = vld [vmem:[%s9449_s1 + $0xf0] sm:$0xf0] }
  0x4d   : > { %5538 = vmatmul.msk.bf16.vlgmr.msra.gmra.mxu2 %vm1139_vm5, %v7845_v15  ;;  %1204 = vmatpush.bf16.msrb.mxu0 %v1154_v27  ;;  %v5668_v37 = vld [vmem:[%s9449_s1 + $0xe8] sm:$0xf]  ;;  %v6878_v38 = vld [vmem:[%s9449_s1 + $0xf4] sm:$0xf0]  ;;  %v5665_v39 = vor.u32 %v6875_v34, %v5662_v36  ;;  %v6876_v41 = vld [vmem:[%s9449_s1 + $0xec] sm:$0xf] }
  0x4e   : > { %1223 = vmatpush.bf16.msrb.mxu2 %v1157_v26  ;;  %5540 = vmatmul.msk.bf16.vlgmr.msra.gmra.mxu3 %vm1139_vm5, %v7845_v15  ;;  %v5669_v40 = vor.u32 %v6878_v38, %v5668_v37  ;;  %v5670_v42 = vld [vmem:[%s9449_s1 + $0xf8] sm:$0xf0]  ;;  %v5644_v43 = vld [vmem:[%s9449_s1 + $0xc0] sm:$0xf]  ;;  %v6873_v45 = vld [vmem:[%s9449_s1 + $0xcc] sm:$0xf0] }
  0x4f   : > { %1395 = vmatpush.bf16.msrb.mxu3 %v5661_v35  ;;  %v5673_v44 = vor.u32 %v6876_v41, %v5670_v42  ;;  %v6871_v46 = vld [vmem:[%s9449_s1 + $0xc4] sm:$0xf]  ;;  %v5646_v47 = vld [vmem:[%s9449_s1 + $0xd0] sm:$0xf0]  ;;  %v5645_v48 = vor.u32 %v6873_v45, %v5644_v43  ;;  %v5652_v50 = vld [vmem:[%s9449_s1 + $0xc8] sm:$0xf] }
  0x50   : > { %1433 = vmatpush.bf16.msra.mxu1 %v5669_v40  ;;  %v5649_v49 = vor.u32 %v6871_v46, %v5646_v47  ;;  %v6874_v51 = vld [vmem:[%s9449_s1 + $0xd4] sm:$0xf0]  ;;  %v6872_v52 = vld [vmem:[%s9449_s1 + $0xcc] sm:$0xf]  ;;  %v5654_v54 = vld [vmem:[%s9449_s1 + $0xd8] sm:$0xf0]  ;;  %s8208_s2 = scalar_lea.vmem %s9454_s6, %s7817_s25 }
  0x51   : > { %1414 = vmatpush.bf16.msra.mxu0 %v5665_v39  ;;  %v5653_v53 = vor.u32 %v6874_v51, %v5652_v50  ;;  %v5628_v55 = vld [vmem:[%s9449_s1 + $0xa0] sm:$0xf]  ;;  %v6869_v56 = vld [vmem:[%s9449_s1 + $0xac] sm:$0xf0]  ;;  %v5657_v57 = vor.u32 %v6872_v52, %v5654_v54  ;;  %v6867_v58 = vld [vmem:[%s9449_s1 + $0xa4] sm:$0xf]  ;;  %s8450_s5 = scalar_lea.vmem %s9471_s28, %s6824_s24 }
  0x52   : > { %1452 = vmatpush.bf16.msra.mxu2 %v5673_v44  ;;  %v5630_v59 = vld [vmem:[%s9449_s1 + $0xb0] sm:$0xf0]  ;;  %v5636_v60 = vld [vmem:[%s9449_s1 + $0xa8] sm:$0xf]  ;;  %v5629_v61 = vor.u32 %v6869_v56, %v5628_v55  ;;  %v6870_v62 = vld [vmem:[%s9449_s1 + $0xb4] sm:$0xf0] }
  0x53   : > { %1396 = vmatpush.bf16.msrb.mxu3 %v5645_v48  ;;  %v6868_v63 = vld [vmem:[%s9449_s1 + $0xac] sm:$0xf]  ;;  %v5638_v0 = vld [vmem:[%s9449_s1 + $0xb8] sm:$0xf0]  ;;  %v5633_v1 = vor.u32 %v6867_v58, %v5630_v59  ;;  %v5637_v2 = vor.u32 %v6870_v62, %v5636_v60  ;;  %v5612_v3 = vld [vmem:[%s9449_s1 + $0x80] sm:$0xf] }
  0x54   : > { %1434 = vmatpush.bf16.msra.mxu1 %v5653_v53  ;;  %v6865_v4 = vld [vmem:[%s9449_s1 + $0x8c] sm:$0xf0]  ;;  %v5641_v5 = vor.u32 %v6868_v63, %v5638_v0  ;;  %v6863_v6 = vld [vmem:[%s9449_s1 + $0x84] sm:$0xf]  ;;  %v5614_v7 = vld [vmem:[%s9449_s1 + $0x90] sm:$0xf0] }
  0x55   : > { %1415 = vmatpush.bf16.msra.mxu0 %v5649_v49  ;;  %v5620_v8 = vld [vmem:[%s9449_s1 + $0x88] sm:$0xf]  ;;  %v6866_v9 = vld [vmem:[%s9449_s1 + $0x94] sm:$0xf0]  ;;  %v6864_v10 = vld [vmem:[%s9449_s1 + $0x8c] sm:$0xf]  ;;  %v5613_v12 = vor.u32 %v6865_v4, %v5612_v3  ;;  %v5617_v14 = vor.u32 %v6863_v6, %v5614_v7 }
  0x56   : > { %1453 = vmatpush.bf16.msra.mxu2 %v5657_v57  ;;  %v5622_v11 = vld [vmem:[%s9449_s1 + $0x98] sm:$0xf0]  ;;  %v5621_v16 = vor.u32 %v6866_v9, %v5620_v8  ;;  %v5596_v18 = vld [vmem:[%s9449_s1 + $0x60] sm:$0xf]  ;;  %v6861_v19 = vld [vmem:[%s9449_s1 + $0x6c] sm:$0xf0] }
  0x57   : > { %5518 = vmatmul.msk.bf16.vlgmr.msrb.gmra.mxu1 %vm1033_vm6, %v6843_v30  ;;  %5542 = vmatmul.msk.bf16.vlgmr.msrb.gmra.mxu0 %vm1139_vm5, %v7845_v15  ;;  %v5625_v17 = vor.u32 %v6864_v10, %v5622_v11  ;;  %v6859_v20 = vld [vmem:[%s9449_s1 + $0x64] sm:$0xf]  ;;  %v5597_v21 = vor.u32 %v6861_v19, %v5596_v18  ;;  %v5598_v22 = vld [vmem:[%s9449_s1 + $0x70] sm:$0xf0]  ;;  %v5604_v23 = vld [vmem:[%s9449_s1 + $0x68] sm:$0xf] }
  0x58   : > { %1397 = vmatpush.bf16.msrb.mxu3 %v5629_v61  ;;  %1435 = vmatpush.bf16.msra.mxu1 %v5637_v2  ;;  %v6862_v24 = vld [vmem:[%s9449_s1 + $0x74] sm:$0xf0]  ;;  %v5601_v25 = vor.u32 %v6859_v20, %v5598_v22  ;;  %v6860_v27 = vld [vmem:[%s9449_s1 + $0x6c] sm:$0xf]  ;;  %v5606_v28 = vld [vmem:[%s9449_s1 + $0x78] sm:$0xf0] }
  0x59   : > { %1416 = vmatpush.bf16.msra.mxu0 %v5633_v1  ;;  %v5605_v26 = vor.u32 %v6862_v24, %v5604_v23  ;;  %v5609_v29 = vor.u32 %v6860_v27, %v5606_v28  ;;  %v6845_v30 = vld [vmem:[%s7876_s9 + $0x10] sm:$0xff]  ;;  %v5580_v32 = vld [vmem:[%s9449_s1 + $0x40] sm:$0xf]  ;;  %v6855_v34 = vld [vmem:[%s9449_s1 + $0x44] sm:$0xf]  ;;  %s9522_s24 = sld [smem:[#allocation40_spill]] }
  0x5a   : > { %1454 = vmatpush.bf16.msra.mxu2 %v5641_v5  ;;  %v6857_v33 = vld [vmem:[%s9449_s1 + $0x4c] sm:$0xf0]  ;;  %v5588_v36 = vld [vmem:[%s9449_s1 + $0x48] sm:$0xf]  ;;  %v6858_v37 = vld [vmem:[%s9449_s1 + $0x54] sm:$0xf0] }
  0x5b   : > { %v5581_v35 = vor.u32 %v6857_v33, %v5580_v32  ;;  %v5589_v39 = vor.u32 %v6858_v37, %v5588_v36  ;;  %v6856_v40 = vld [vmem:[%s9449_s1 + $0x4c] sm:$0xf]  ;;  %v5590_v41 = vld [vmem:[%s9449_s1 + $0x58] sm:$0xf0]  ;;  %v5564_v43 = vld [vmem:[%s9449_s1 + $0x20] sm:$0xf] }
  0x5c   : > { %1398 = vmatpush.bf16.msrb.mxu3 %v5613_v12  ;;  %1436 = vmatpush.bf16.msra.mxu1 %v5621_v16  ;;  %v5593_v42 = vor.u32 %v6856_v40, %v5590_v41  ;;  %v6853_v44 = vld [vmem:[%s9449_s1 + $0x2c] sm:$0xf0]  ;;  %v6851_v45 = vld [vmem:[%s9449_s1 + $0x24] sm:$0xf]  ;;  %v5566_v47 = vld [vmem:[%s9449_s1 + $0x30] sm:$0xf0] }
  0x5d   : > { %5539 = vmatmul.msk.bf16.gmra.mxu2 %vm1139_vm5, %v7881_v31  ;;  %1417 = vmatpush.bf16.msra.mxu0 %v5617_v14  ;;  %v5565_v46 = vor.u32 %v6853_v44, %v5564_v43  ;;  %v5572_v48 = vld [vmem:[%s9449_s1 + $0x28] sm:$0xf]  ;;  %v6854_v49 = vld [vmem:[%s9449_s1 + $0x34] sm:$0xf0]  ;;  %v5569_v50 = vor.u32 %v6851_v45, %v5566_v47  ;;  %v6852_v52 = vld [vmem:[%s9449_s1 + $0x2c] sm:$0xf] }
  0x5e   : > { %5541 = vmatmul.msk.bf16.gmra.mxu3 %vm1139_vm5, %v7881_v31  ;;  %1455 = vmatpush.bf16.msra.mxu2 %v5625_v17  ;;  %v5573_v51 = vor.u32 %v6854_v49, %v5572_v48  ;;  %v5574_v53 = vld [vmem:[%s9449_s1 + $0x38] sm:$0xf0]  ;;  %v5548_v55 = vld [vmem:[%s9449_s1] sm:$0xf]  ;;  %v6849_v56 = vld [vmem:[%s9449_s1 + $0xc] sm:$0xf0] }
  0x5f   : > { %v5577_v54 = vor.u32 %v6852_v52, %v5574_v53  ;;  %v6847_v57 = vld [vmem:[%s9449_s1 + $0x4] sm:$0xf]  ;;  %v5549_v58 = vor.u32 %v6849_v56, %v5548_v55  ;;  %v5550_v59 = vld [vmem:[%s9449_s1 + $0x10] sm:$0xf0]  ;;  %v5556_v60 = vld [vmem:[%s9449_s1 + $0x8] sm:$0xf] }
  0x60   : > { %1399 = vmatpush.bf16.msrb.mxu3 %v5597_v21  ;;  %1437 = vmatpush.bf16.msra.mxu1 %v5605_v26  ;;  %v6850_v61 = vld [vmem:[%s9449_s1 + $0x14] sm:$0xf0]  ;;  %v5553_v62 = vor.u32 %v6847_v57, %v5550_v59  ;;  %v6848_v0 = vld [vmem:[%s9449_s1 + $0xc] sm:$0xf]  ;;  %v5558_v1 = vld [vmem:[%s9449_s1 + $0x18] sm:$0xf0] }
  0x61   : > { %1418 = vmatpush.bf16.msra.mxu0 %v5601_v25  ;;  %v5557_v63 = vor.u32 %v6850_v61, %v5556_v60  ;;  %v5561_v2 = vor.u32 %v6848_v0, %v5558_v1  ;;  %v6898_v9 = vld [vmem:[#allocation2 + $0x78] sm:$0xff]  ;;  %v6897_v11 = vld [vmem:[#allocation2 + $0x70] sm:$0xff]  ;;  %v6896_v16 = vld [vmem:[#allocation2 + $0x68] sm:$0xff]  ;;  %s7519_s28 = scalar_lea.hbm %s9523_s26, 4 }
  0x62   : > { %1456 = vmatpush.bf16.msra.mxu2 %v5609_v29  ;;  %v6906_v10 = vld [vmem:[#allocation2 + $0xb8] sm:$0xff]  ;;  %v6905_v12 = vld [vmem:[#allocation2 + $0xb0] sm:$0xff]  ;;  %v6904_v17 = vld [vmem:[#allocation2 + $0xa8] sm:$0xff] }
  0x63   : > { %v6914_v14 = vld [vmem:[#allocation2 + $0xf8] sm:$0xff]  ;;  %v6889_v18 = vld [vmem:[#allocation2 + $0x30] sm:$0xff]  ;;  %v6895_v20 = vld [vmem:[#allocation2 + $0x60] sm:$0xff] }
  0x64   : > { %1400 = vmatpush.bf16.msrb.mxu3 %v5581_v35  ;;  %1438 = vmatpush.bf16.msra.mxu1 %v5589_v39  ;;  %v6913_v19 = vld [vmem:[#allocation2 + $0xf0] sm:$0xff]  ;;  %v6903_v21 = vld [vmem:[#allocation2 + $0xa0] sm:$0xff]  ;;  %v6888_v32 = vld [vmem:[#allocation2 + $0x28] sm:$0xff] }
  0x65   : > { %v6912_v33 = vld [vmem:[#allocation2 + $0xe8] sm:$0xff]  ;;  %v6902_v36 = vld [vmem:[#allocation2 + $0x98] sm:$0xff]  ;;  %v6887_v39 = vld [vmem:[#allocation2 + $0x20] sm:$0xff] }
  0x66   : > { %1457 = vmatpush.bf16.msra.mxu2 %v5593_v42  ;;  %v6911_v40 = vld [vmem:[#allocation2 + $0xe0] sm:$0xff]  ;;  %v6893_v41 = vld [vmem:[#allocation2 + $0x50] sm:$0xff]  ;;  %v6886_v43 = vld [vmem:[#allocation2 + $0x18] sm:$0xff] }
  0x67   : > { %5519 = vmatmul.msk.bf16.gmra.mxu1 %vm1033_vm6, %v6844_v13  ;;  %5543 = vmatmul.msk.bf16.gmra.mxu0 %vm1139_vm5, %v7881_v31  ;;  %v6890_v13 = vld [vmem:[#allocation2 + $0x38] sm:$0xff]  ;;  %v6901_v42 = vld [vmem:[#allocation2 + $0x90] sm:$0xff]  ;;  %v6892_v45 = vld [vmem:[#allocation2 + $0x48] sm:$0xff] }
  0x68   : > { %1401 = vmatpush.bf16.msrb.mxu3 %v5565_v46  ;;  %1439 = vmatpush.bf16.msra.mxu1 %v5573_v51  ;;  %v6910_v44 = vld [vmem:[#allocation2 + $0xd8] sm:$0xff]  ;;  %v6900_v46 = vld [vmem:[#allocation2 + $0x88] sm:$0xff]  ;;  %v6885_v49 = vld [vmem:[#allocation2 + $0x10] sm:$0xff] }
  0x69   : > { %v6891_v53 = vld [vmem:[#allocation2 + $0x40] sm:$0xff]  ;;  %v6884_v55 = vld [vmem:[#allocation2 + $0x8] sm:$0xff] }
  0x6a   : > { %1458 = vmatpush.bf16.msra.mxu2 %v5577_v54  ;;  %v6899_v54 = vld [vmem:[#allocation2 + $0x80] sm:$0xff]  ;;  %v6908_v56 = vld [vmem:[#allocation2 + $0xc8] sm:$0xff] }
  0x6b   : > { %v6883_v57 = vld [vmem:[#allocation2] sm:$0xff] }
  0x6c   : > { %1402 = vmatpush.bf16.msrb.mxu3 %v5549_v58  ;;  %1440 = vmatpush.bf16.msra.mxu1 %v5557_v63  ;;  %v6907_v58 = vld [vmem:[#allocation2 + $0xc0] sm:$0xff] }
  0x6d   : > { %5544 = vmatmul.msk.bf16.vlgmr.msrb.gmra.mxu2 %vm1139_vm5, %v7845_v15  ;;  %v6846_v15 = vld [vmem:[%s7876_s9 + $0x18] sm:$0xff]  ;;  %s8201_s9 = scalar_lea.vmem %s9453_s3, %s7817_s25  ;;  %s5304_s3 = scalar_lea.hbm %s9523_s26, %s7737_s7 }
  0x6e   : > { %1459 = vmatpush.bf16.msra.mxu2 %v5561_v2  ;;  %s5308_s6 = sshll.u32 %s5304_s3, 4  ;;  %s5309_s6 = int_to_ptr.hbm [resolvable:$true] %s5308_s6 }
  0x6f   : > { %s7513_s30 = sshra.s32 %s5309_s6, 4  ;;  %s7514_s30 = int_to_ptr.hbm [resolvable:$true] %s7513_s30 }
  0x70   : > { %1819 = vmatpush.bf16.msrb.mxu1 %v6906_v10  ;;  %1781 = vmatpush.bf16.msra.mxu3 %v6890_v13  ;;  %s7515_s27 = scalar_lea.hbm %s7514_s30, 1  ;;  %p7520_p3 = scmp.lt.s32.totalorder %s7514_s30, %s9523_s26 }
  0x71   : > { %p7516_p0 = scmp.ne.s32.totalorder %s7514_s30, %s7515_s27  ;;  %p7521_p4 = scmp.lt.s32.totalorder %s7519_s28, %s7515_s27 }
  0x72   : > { %1838 = vmatpush.bf16.msrb.mxu2 %v6914_v14 }
  0x73   : > { %p7517_p1 = pnand %p7516_p0, %p7754_p5  ;;  %p7522_p7 = por %p7521_p4, %p7520_p3 }
  0x74   : > { %1820 = vmatpush.bf16.msrb.mxu1 %v6905_v12  ;;  %1782 = vmatpush.bf16.msra.mxu3 %v6889_v18 }
  0x75   : > { %p7518_p2 = pneg %p7517_p1 }
  0x76   : > { %1839 = vmatpush.bf16.msrb.mxu2 %v6913_v19 }
  0x77   : > { %5520 = vmatmul.msk.bf16.gmra.mxu1 %vm1033_vm6, %v6845_v30  ;;  %p7523_p8 = pnand %p7522_p7, %p7518_p2 }
  0x78   : > { %1821 = vmatpush.bf16.msrb.mxu1 %v6904_v17  ;;  %1783 = vmatpush.bf16.msra.mxu3 %v6888_v32 }
  0x7a   : > { %1840 = vmatpush.bf16.msrb.mxu2 %v6912_v33 }
  0x7c   : > { %1822 = vmatpush.bf16.msrb.mxu1 %v6903_v21  ;;  %1784 = vmatpush.bf16.msra.mxu3 %v6887_v39 }
  0x7d   : > { %5545 = vmatmul.msk.bf16.gmra.mxu2 %vm1139_vm5, %v7881_v31  ;;  %v5582_v31 = vld [vmem:[%s9449_s1 + $0x50] sm:$0xf0] }
  0x7e   : > { %v5585_v38 = vor.u32 %v6855_v34, %v5582_v31  ;;  %v6894_v31 = vld [vmem:[#allocation2 + $0x58] sm:$0xff]  ;;  %1841 = vmatpush.bf16.msrb.mxu2 %v6911_v40 }
  0x80   : > { %1419 = vmatpush.bf16.msra.mxu0 %v5585_v38  ;;  %1823 = vmatpush.bf16.msrb.mxu1 %v6902_v36 }
  0x81   : > { %1785 = vmatpush.bf16.msra.mxu3 %v6886_v43 }
  0x82   : > { %1842 = vmatpush.bf16.msrb.mxu2 %v6910_v44 }
  0x84   : > { %1420 = vmatpush.bf16.msra.mxu0 %v5569_v50  ;;  %1824 = vmatpush.bf16.msrb.mxu1 %v6901_v42  ;;  %v6909_v50 = vld [vmem:[#allocation2 + $0xd0] sm:$0xff] }
  0x85   : > { %1786 = vmatpush.bf16.msra.mxu3 %v6885_v49 }
  0x86   : > { %1843 = vmatpush.bf16.msrb.mxu2 %v6909_v50 }
  0x87   : > { %5521 = vmatmul.msk.bf16.gmra.mxu1 %vm1033_vm6, %v6846_v15 }
  0x88   : > { %1421 = vmatpush.bf16.msra.mxu0 %v5553_v62  ;;  %1825 = vmatpush.bf16.msrb.mxu1 %v6900_v46 }
  0x89   : > { %1787 = vmatpush.bf16.msra.mxu3 %v6884_v55 }
  0x8a   : > { %1844 = vmatpush.bf16.msrb.mxu2 %v6908_v56 }
  0x8c   : > { %1800 = vmatpush.bf16.msrb.mxu0 %v6898_v9  ;;  %1826 = vmatpush.bf16.msrb.mxu1 %v6899_v54 }
  0x8d   : > { %1788 = vmatpush.bf16.msra.mxu3 %v6883_v57 }
  0x8e   : > { %1845 = vmatpush.bf16.msrb.mxu2 %v6907_v58 }
  0x90   : > { %1801 = vmatpush.bf16.msrb.mxu0 %v6897_v11 }
  0x94   : > { %1802 = vmatpush.bf16.msrb.mxu0 %v6896_v16 }
  0x98   : > { %1803 = vmatpush.bf16.msrb.mxu0 %v6895_v20 }
  0x9c   : > { %1804 = vmatpush.bf16.msrb.mxu0 %v6894_v31 }
  0xa0   : > { %1805 = vmatpush.bf16.msrb.mxu0 %v6893_v41 }
  0xa4   : > { %1806 = vmatpush.bf16.msrb.mxu0 %v6892_v45 }
  0xa8   : > { %1807 = vmatpush.bf16.msrb.mxu0 %v6891_v53 }
  0xc4   : > { %v994_v3 = vpop.f32.mrf.mxu0  ;;  %v999_v6 = vpop.f32.mrf.mxu1 }
  0xcc   : > { %v996_v4 = vpop.f32.mrf.mxu0  ;;  %v1001_v7 = vpop.f32.mrf.mxu1 }
  0xcd   : > { %v1079_v5 = vpack.c.bf16 %v996_v4, %v994_v3  ;;  %v1080_v8 = vpack.c.bf16 %v1001_v7, %v999_v6  ;;  %v1471_v3 = vld [vmem:[%s9376_s10] sm:$0xf] }
  0xce   : > { %v1475_v7 = vperm.slane %v1471_v3, 2  ;;  %v1473_v18 = vperm.slane %v1471_v3, 0  ;;  %v1476_v21 = vperm.slane %v1471_v3, 3 }
  0xcf   : > { %1403 = vmatmul.bf16.vlgmr.msrb.gmra.mxu3 %v1079_v5  ;;  %1422 = vmatmul.bf16.vlgmr.msra.gmra.mxu0 %v1079_v5 }
  0xd0   : > { %1441 = vmatmul.bf16.vlgmr.msra.gmra.mxu1 %v1079_v5  ;;  %1460 = vmatmul.bf16.vlgmr.msra.gmra.mxu2 %v1079_v5  ;;  %v8096_v23 = vpop.f32.mrf.mxu2  ;;  %v1474_v5 = vperm.slane %v1471_v3, 1 }
  0xd1   : > { %v1187_v34 = vpop.f32.mrf.mxu3 }
  0xd4   : > { %v8094_v22 = vpop.f32.mrf.mxu1  ;;  %v1206_v30 = vpop.f32.mrf.mxu0 }
  0xd8   : > { %v8100_v25 = vpop.f32.mrf.mxu2 }
  0xd9   : > { %v1189_v47 = vpop.f32.mrf.mxu3 }
  0xdc   : > { %v8098_v24 = vpop.f32.mrf.mxu1  ;;  %v1208_v37 = vpop.f32.mrf.mxu0 }
  0xdf   : > { %1408 = vmatmul.bf16.gmra.mxu3 %v1080_v8  ;;  %1427 = vmatmul.bf16.gmra.mxu0 %v1080_v8 }
  0xe0   : > { %1446 = vmatmul.bf16.gmra.mxu1 %v1080_v8  ;;  %1465 = vmatmul.bf16.gmra.mxu2 %v1080_v8  ;;  %v8104_v27 = vpop.f32.mrf.mxu2 }
  0xe1   : > { %v1192_v59 = vpop.f32.mrf.mxu3 }
  0xe4   : > { %v8102_v26 = vpop.f32.mrf.mxu1  ;;  %v8116_v51 = vpop.f32.mrf.mxu0 }
  0xe8   : > { %v8108_v29 = vpop.f32.mrf.mxu2 }
  0xe9   : > { %v1194_v63 = vpop.f32.mrf.mxu3 }
  0xec   : > { %v8106_v28 = vpop.f32.mrf.mxu1  ;;  %v1213_v61 = vpop.f32.mrf.mxu0 }
  0xf0   : > { %v8112_v35 = vpop.f32.mrf.mxu2 }
  0xf4   : > { %v8110_v15 = vpop.f32.mrf.mxu1 }
  0xf5   : > { %9450 = vst [vmem:[#allocation23_spill] sm:$0xff] %v8110_v15 }
  0xf8   : > { %v1227_v48 = vpop.f32.mrf.mxu2 }
  0xfc   : > { %v8114_v38 = vpop.f32.mrf.mxu1 }
 0x100   : > { %v8120_v60 = vpop.f32.mrf.mxu2 }
 0x104   : > { %v8118_v52 = vpop.f32.mrf.mxu1 }
 0x105   : > { %9451 = vst [vmem:[#allocation24_spill] sm:$0xff] %v8118_v52 }
 0x108   : > { %v8124_v0 = vpop.f32.mrf.mxu2 }
 0x10c   : > { %v8122_v62 = vpop.f32.mrf.mxu1 }
 0x10d   : > { %9452 = vst [vmem:[#allocation25_spill] sm:$0xff] %v8122_v62 }
 0x14c   : > { %v1423_v1 = vpop.f32.mrf.mxu0 }
 0x14d   : > { %v1442_v2 = vpop.f32.mrf.mxu1  ;;  %v1424_v4 = vadd.f32 %v1423_v1, %v1187_v34 }
 0x14e   : > { %v1443_v6 = vadd.f32 %v1442_v2, %v1206_v30 }
 0x14f   : > { %v1482_v11 = vadd.f32 %v1474_v5, %v1424_v4 }
 0x150   : > { %v1483_v14 = vadd.f32 %v1475_v7, %v1443_v6 }
 0x151   : > { %v1498_v33 = vmax.f32 %v1482_v11, 0.0 }
 0x152   : > { %v1404_v8 = vpop.f32.mrf.mxu3  ;;  %v1499_v30 = vmax.f32 %v1483_v14, 0.0 }
 0x153   : > { %v1461_v9 = vpop.f32.mrf.mxu2  ;;  %v1405_v17 = vadd.f32 %v1404_v8, %v8096_v23 }
 0x154   : > { %v1425_v10 = vpop.f32.mrf.mxu0  ;;  %v1462_v20 = vadd.f32 %v1461_v9, %v8112_v35 }
 0x155   : > { %v1426_v12 = vadd.f32 %v1425_v10, %v1189_v47  ;;  %v1444_v13 = vpop.f32.mrf.mxu1  ;;  %v1481_v39 = vadd.f32 %v1473_v18, %v1405_v17 }
 0x156   : > { %v1445_v16 = vadd.f32 %v1444_v13, %v1208_v37  ;;  %v1484_v43 = vadd.f32 %v1476_v21, %v1462_v20 }
 0x157   : > { %v1486_v19 = vadd.f32 %v1474_v5, %v1426_v12  ;;  %v1497_v47 = vmax.f32 %v1481_v39, 0.0  ;;  %v6943_v39 = vld [vmem:[#allocation5 + $0xe4] sm:$0xf] }
 0x158   : > { %v1487_v32 = vadd.f32 %v1475_v7, %v1445_v16  ;;  %v1500_v50 = vmax.f32 %v1484_v43, 0.0 }
 0x159   : > { %v1502_v34 = vmax.f32 %v1486_v19, 0.0 }
 0x15a   : > { %v1503_v31 = vmax.f32 %v1487_v32, 0.0  ;;  %v1406_v36 = vpop.f32.mrf.mxu3 }
 0x15b   : > { %v1514_v40 = vpack.c.bf16 %v1502_v34, %v1498_v33  ;;  %v1407_v41 = vadd.f32 %v1406_v36, %v8100_v25  ;;  %v1463_v42 = vpop.f32.mrf.mxu2  ;;  %v5916_v36 = vld [vmem:[#allocation5 + $0xe0] sm:$0xf] }
 0x15c   : > { %v1515_v37 = vpack.c.bf16 %v1503_v31, %v1499_v30  ;;  %v1464_v44 = vadd.f32 %v1463_v42, %v1227_v48  ;;  %v1428_v23 = vpop.f32.mrf.mxu0  ;;  %v5924_v42 = vld [vmem:[#allocation5 + $0xe8] sm:$0xf] }
 0x15d   : > { %v1485_v45 = vadd.f32 %v1473_v18, %v1407_v41  ;;  %v1447_v46 = vpop.f32.mrf.mxu1  ;;  %1808 = vmatmul.bf16.vlgmr.msrb.gmra.mxu0 %v1514_v40  ;;  %v1429_v55 = vadd.f32 %v1428_v23, %v1192_v59  ;;  %v5918_v41 = vld [vmem:[#allocation5 + $0xf0] sm:$0xf0]  ;;  %v5900_v23 = vld [vmem:[#allocation5 + $0xc0] sm:$0xf] }
 0x15e   : > { %v1488_v35 = vadd.f32 %v1476_v21, %v1464_v44  ;;  %1827 = vmatmul.bf16.vlgmr.msrb.gmra.mxu1 %v1515_v37  ;;  %v1448_v57 = vadd.f32 %v1447_v46, %v8116_v51  ;;  %v5921_v43 = vor.u32 %v6943_v39, %v5918_v41  ;;  %v6944_v37 = vld [vmem:[#allocation5 + $0xec] sm:$0xf]  ;;  %v6939_v46 = vld [vmem:[#allocation5 + $0xc4] sm:$0xf]  ;;  %v5862_v39 = vld [vmem:[#allocation5 + $0x78] sm:$0xf0] }
 0x15f   : > { %v1501_v49 = vmax.f32 %v1485_v45, 0.0  ;;  %v1490_v1 = vadd.f32 %v1474_v5, %v1429_v55  ;;  %v6941_v45 = vld [vmem:[#allocation5 + $0xcc] sm:$0xf0]  ;;  %v6940_v55 = vld [vmem:[#allocation5 + $0xcc] sm:$0xf] }
 0x160   : > { %v1504_v53 = vmax.f32 %v1488_v35, 0.0  ;;  %v1491_v4 = vadd.f32 %v1475_v7, %v1448_v57  ;;  %2080 = vmatpush.bf16.msra.mxu0 %v5921_v43  ;;  %v5901_v35 = vor.u32 %v6941_v45, %v5900_v23  ;;  %v5836_v41 = vld [vmem:[#allocation5 + $0x40] sm:$0xf]  ;;  %v6924_v45 = vld [vmem:[#allocation5 + $0x4c] sm:$0xf] }
 0x161   : > { %v1513_v54 = vpack.c.bf16 %v1501_v49, %v1497_v47  ;;  %v1506_v59 = vmax.f32 %v1490_v1, 0.0  ;;  %v5902_v47 = vld [vmem:[#allocation5 + $0xd0] sm:$0xf0]  ;;  %v5908_v49 = vld [vmem:[#allocation5 + $0xc8] sm:$0xf] }
 0x162   : > { %v1516_v56 = vpack.c.bf16 %v1504_v53, %v1500_v50  ;;  %v1409_v25 = vpop.f32.mrf.mxu3  ;;  %v1507_v13 = vmax.f32 %v1491_v4, 0.0  ;;  %v6942_v50 = vld [vmem:[#allocation5 + $0xd4] sm:$0xf0]  ;;  %v5905_v53 = vor.u32 %v6939_v46, %v5902_v47  ;;  %v5846_v46 = vld [vmem:[#allocation5 + $0x58] sm:$0xf0] }
 0x163   : > { %v1466_v58 = vpop.f32.mrf.mxu2  ;;  %1789 = vmatmul.bf16.vlgmr.msra.gmra.mxu3 %v1513_v54  ;;  %v1410_v8 = vadd.f32 %v1409_v25, %v8104_v27  ;;  %v5909_v54 = vor.u32 %v6942_v50, %v5908_v49  ;;  %v5884_v25 = vld [vmem:[#allocation5 + $0xa0] sm:$0xf]  ;;  %v6938_v4 = vld [vmem:[#allocation5 + $0xb4] sm:$0xf0]  ;;  %v6921_v49 = vld [vmem:[#allocation5 + $0x2c] sm:$0xf0] }
 0x164   : > { %1846 = vmatmul.bf16.vlgmr.msrb.gmra.mxu2 %v1516_v56  ;;  %v1430_v48 = vpop.f32.mrf.mxu0  ;;  %v1467_v10 = vadd.f32 %v1466_v58, %v8120_v60  ;;  %v5910_v56 = vld [vmem:[#allocation5 + $0xd8] sm:$0xf0]  ;;  %2081 = vmatpush.bf16.msra.mxu0 %v5905_v53  ;;  %v6937_v58 = vld [vmem:[#allocation5 + $0xac] sm:$0xf0]  ;;  %v5820_v47 = vld [vmem:[#allocation5 + $0x20] sm:$0xf] }
 0x165   : > { %v1431_v2 = vadd.f32 %v1430_v48, %v1194_v63  ;;  %v1449_v3 = vpop.f32.mrf.mxu1  ;;  %v1489_v16 = vadd.f32 %v1473_v18, %v1410_v8  ;;  %v5913_v57 = vor.u32 %v6940_v55, %v5910_v56  ;;  %v6935_v48 = vld [vmem:[#allocation5 + $0xa4] sm:$0xf]  ;;  %v5885_v1 = vor.u32 %v6937_v58, %v5884_v25  ;;  %v5828_v55 = vld [vmem:[#allocation5 + $0x28] sm:$0xf]  ;;  %v6922_v56 = vld [vmem:[#allocation5 + $0x34] sm:$0xf0] }
 0x166   : > { %v1450_v6 = vadd.f32 %v1449_v3, %v1213_v61  ;;  %v1492_v63 = vadd.f32 %v1476_v21, %v1467_v10  ;;  %v5892_v3 = vld [vmem:[#allocation5 + $0xa8] sm:$0xf]  ;;  %v5894_v10 = vld [vmem:[#allocation5 + $0xb8] sm:$0xf0]  ;;  %v6919_v50 = vld [vmem:[#allocation5 + $0x24] sm:$0xf]  ;;  %v5821_v53 = vor.u32 %v6921_v49, %v5820_v47  ;;  %v5829_v25 = vor.u32 %v6922_v56, %v5828_v55 }
 0x167   : > { %v1494_v9 = vadd.f32 %v1474_v5, %v1431_v2  ;;  %v1505_v60 = vmax.f32 %v1489_v16, 0.0  ;;  %v5886_v2 = vld [vmem:[#allocation5 + $0xb0] sm:$0xf0]  ;;  %v5893_v8 = vor.u32 %v6938_v4, %v5892_v3  ;;  %v5876_v16 = vld [vmem:[#allocation5 + $0x88] sm:$0xf] }
 0x168   : > { %v1495_v11 = vadd.f32 %v1475_v7, %v1450_v6  ;;  %v1508_v7 = vmax.f32 %v1492_v63, 0.0  ;;  %v5889_v6 = vor.u32 %v6935_v48, %v5886_v2  ;;  %v6932_v63 = vld [vmem:[#allocation5 + $0x8c] sm:$0xf]  ;;  %v5830_v48 = vld [vmem:[#allocation5 + $0x38] sm:$0xf0] }
 0x169   : > { %v1510_v12 = vmax.f32 %v1494_v9, 0.0  ;;  %v6936_v9 = vld [vmem:[#allocation5 + $0xac] sm:$0xf]  ;;  %v5804_v2 = vld [vmem:[#allocation5] sm:$0xf] }
 0x16a   : > { %v1411_v51 = vpop.f32.mrf.mxu3  ;;  %v1511_v14 = vmax.f32 %v1495_v11, 0.0  ;;  %v5897_v11 = vor.u32 %v6936_v9, %v5894_v10  ;;  %2082 = vmatpush.bf16.msra.mxu0 %v5889_v6  ;;  %v6920_v58 = vld [vmem:[#allocation5 + $0x2c] sm:$0xf]  ;;  %v6917_v3 = vld [vmem:[#allocation5 + $0xc] sm:$0xf0] }
 0x16b   : > { %v1412_v17 = vadd.f32 %v1411_v51, %v8108_v29  ;;  %v1468_v19 = vpop.f32.mrf.mxu2  ;;  %v1518_v20 = vpack.c.bf16 %v1510_v12, %v1506_v59  ;;  %v6945_v29 = vld [vmem:[#allocation5 + $0xec] sm:$0xf0]  ;;  %v5868_v59 = vld [vmem:[#allocation5 + $0x80] sm:$0xf]  ;;  %v6915_v4 = vld [vmem:[#allocation5 + $0x4] sm:$0xf]  ;;  %v5805_v6 = vor.u32 %v6917_v3, %v5804_v2  ;;  %v2138_v2 = vpack.c.bf16 %v8106_v28, %v8102_v26 }
 0x16c   : > { %v1469_v32 = vadd.f32 %v1468_v19, %v8124_v0  ;;  %v1519_v61 = vpack.c.bf16 %v1511_v14, %v1507_v13  ;;  %v5917_v40 = vor.u32 %v6945_v29, %v5916_v36  ;;  %v6946_v0 = vld [vmem:[#allocation5 + $0xf4] sm:$0xf0]  ;;  %v6933_v12 = vld [vmem:[#allocation5 + $0x8c] sm:$0xf0]  ;;  %v6931_v13 = vld [vmem:[#allocation5 + $0x84] sm:$0xf]  ;;  %v2139_v3 = vpack.c.bf16 %v8114_v38, %v8110_v15 }
 0x16d   : > { %v1493_v33 = vadd.f32 %v1473_v18, %v1412_v17  ;;  %1813 = vmatmul.bf16.gmra.mxu0 %v1518_v20  ;;  %v5925_v18 = vor.u32 %v6946_v0, %v5924_v42  ;;  %v5869_v51 = vor.u32 %v6933_v12, %v5868_v59  ;;  %v5870_v14 = vld [vmem:[#allocation5 + $0x90] sm:$0xf0]  ;;  %v6934_v17 = vld [vmem:[#allocation5 + $0x94] sm:$0xf0]  ;;  %v6928_v29 = vld [vmem:[#allocation5 + $0x6c] sm:$0xf] }
 0x16e   : > { %v1496_v27 = vadd.f32 %v1476_v21, %v1469_v32  ;;  %1832 = vmatmul.bf16.gmra.mxu1 %v1519_v61  ;;  %v5926_v21 = vld [vmem:[#allocation5 + $0xf8] sm:$0xf0]  ;;  %2061 = vmatpush.bf16.msrb.mxu3 %v5917_v40  ;;  %v5873_v19 = vor.u32 %v6931_v13, %v5870_v14  ;;  %v5877_v20 = vor.u32 %v6934_v17, %v5876_v16  ;;  %v6925_v42 = vld [vmem:[#allocation5 + $0x4c] sm:$0xf0]  ;;  %v6923_v0 = vld [vmem:[#allocation5 + $0x44] sm:$0xf] }
 0x16f   : > { %v1509_v5 = vmax.f32 %v1493_v33, 0.0  ;;  %v5929_v44 = vor.u32 %v6944_v37, %v5926_v21  ;;  %2099 = vmatpush.bf16.msra.mxu1 %v5925_v18  ;;  %v5878_v32 = vld [vmem:[#allocation5 + $0x98] sm:$0xf0]  ;;  %v5852_v33 = vld [vmem:[#allocation5 + $0x60] sm:$0xf]  ;;  %v5865_v40 = vor.u32 %v6928_v29, %v5862_v39  ;;  %v5837_v43 = vor.u32 %v6925_v42, %v5836_v41  ;;  %v6953_v16 = vld [vmem:[%s9381_s15 + $0x30] sm:$0xff] }
 0x170   : > { %v1512_v34 = vmax.f32 %v1496_v27, 0.0  ;;  %v5881_v61 = vor.u32 %v6932_v63, %v5878_v32  ;;  %2083 = vmatpush.bf16.msra.mxu0 %v5873_v19  ;;  %v6929_v27 = vld [vmem:[#allocation5 + $0x6c] sm:$0xf0]  ;;  %v5838_v18 = vld [vmem:[#allocation5 + $0x50] sm:$0xf0]  ;;  %v6954_v14 = vld [vmem:[%s9381_s15 + $0x38] sm:$0xff] }
 0x171   : > { %v1517_v30 = vpack.c.bf16 %v1509_v5, %v1505_v60  ;;  %2118 = vmatpush.bf16.msra.mxu2 %v5929_v44  ;;  %v6927_v60 = vld [vmem:[#allocation5 + $0x64] sm:$0xf]  ;;  %v5853_v5 = vor.u32 %v6929_v27, %v5852_v33  ;;  %v5844_v37 = vld [vmem:[#allocation5 + $0x48] sm:$0xf]  ;;  %v6926_v21 = vld [vmem:[#allocation5 + $0x54] sm:$0xf0]  ;;  %v5841_v44 = vor.u32 %v6923_v0, %v5838_v18 }
 0x172   : > { %v1520_v31 = vpack.c.bf16 %v1512_v34, %v1508_v7  ;;  %2062 = vmatpush.bf16.msrb.mxu3 %v5901_v35  ;;  %v5854_v7 = vld [vmem:[#allocation5 + $0x70] sm:$0xf0]  ;;  %v5860_v34 = vld [vmem:[#allocation5 + $0x68] sm:$0xf]  ;;  %v5845_v23 = vor.u32 %v6926_v21, %v5844_v37  ;;  %v5849_v35 = vor.u32 %v6924_v45, %v5846_v46  ;;  %v6918_v10 = vld [vmem:[#allocation5 + $0x14] sm:$0xf0] }
 0x173   : > { %1794 = vmatmul.bf16.gmra.mxu3 %v1517_v30  ;;  %2100 = vmatpush.bf16.msra.mxu1 %v5909_v54  ;;  %v6930_v30 = vld [vmem:[#allocation5 + $0x74] sm:$0xf0]  ;;  %v5822_v54 = vld [vmem:[#allocation5 + $0x30] sm:$0xf0]  ;;  %v5812_v9 = vld [vmem:[#allocation5 + $0x8] sm:$0xf] }
 0x174   : > { %1851 = vmatmul.bf16.gmra.mxu2 %v1520_v31  ;;  %v5857_v31 = vor.u32 %v6927_v60, %v5854_v7  ;;  %v5861_v36 = vor.u32 %v6930_v30, %v5860_v34  ;;  %v5813_v59 = vor.u32 %v6918_v10, %v5812_v9  ;;  %v6916_v12 = vld [vmem:[#allocation5 + $0xc] sm:$0xf]  ;;  %v5814_v13 = vld [vmem:[#allocation5 + $0x18] sm:$0xf0]  ;;  %v7219_v63 = vld [vmem:[%s9378_s12] ss:$0 sm:$0xff] }
 0x175   : > { %2119 = vmatpush.bf16.msra.mxu2 %v5913_v57  ;;  %v5825_v57 = vor.u32 %v6919_v50, %v5822_v54  ;;  %v6952_v17 = vld [vmem:[%s9381_s15 + $0x28] sm:$0xff]  ;;  %v6951_v32 = vld [vmem:[%s9381_s15 + $0x20] sm:$0xff]  ;;  %v6950_v60 = vld [vmem:[%s9381_s15 + $0x18] sm:$0xff] }
 0x176   : > { %2063 = vmatpush.bf16.msrb.mxu3 %v5885_v1  ;;  %2084 = vmatpush.bf16.msra.mxu0 %v5857_v31  ;;  %v5833_v1 = vor.u32 %v6920_v58, %v5830_v48  ;;  %v6948_v29 = vld [vmem:[%s9381_s15 + $0x8] sm:$0xff]  ;;  %v6947_v0 = vld [vmem:[%s9381_s15] sm:$0xff] }
 0x177   : > { %2101 = vmatpush.bf16.msra.mxu1 %v5893_v8  ;;  %v5806_v8 = vld [vmem:[#allocation5 + $0x10] sm:$0xf0]  ;;  %v1891_v9 = vld [vmem:[%s9380_s14] sm:$0xf] }
 0x178   : > { %v8187_v10 = vperm.slane %v1891_v9, 0 }
 0x179   : > { %2120 = vmatpush.bf16.msra.mxu2 %v5897_v11  ;;  %v5809_v11 = vor.u32 %v6915_v4, %v5806_v8  ;;  %v2140_v4 = vpack.c.bf16 %v8122_v62, %v8118_v52  ;;  %v6149_v62 = vld [vmem:[#allocation5 + $0x1e8] sm:$0xf] }
 0x17a   : > { %2064 = vmatpush.bf16.msrb.mxu3 %v5869_v51  ;;  %2085 = vmatpush.bf16.msra.mxu0 %v5841_v44  ;;  %v5817_v51 = vor.u32 %v6916_v12, %v5814_v13 }
 0x17b   : > { %2102 = vmatpush.bf16.msra.mxu1 %v5877_v20 }
 0x17d   : > { %2121 = vmatpush.bf16.msra.mxu2 %v5881_v61 }
 0x17e   : > { %2065 = vmatpush.bf16.msrb.mxu3 %v5853_v5  ;;  %2086 = vmatpush.bf16.msra.mxu0 %v5825_v57  ;;  %v6949_v5 = vld [vmem:[%s9381_s15 + $0x10] sm:$0xff] }
 0x17f   : > { %2103 = vmatpush.bf16.msra.mxu1 %v5861_v36 }
 0x181   : > { %2122 = vmatpush.bf16.msra.mxu2 %v5865_v40 }
 0x182   : > { %2066 = vmatpush.bf16.msrb.mxu3 %v5837_v43  ;;  %2087 = vmatpush.bf16.msra.mxu0 %v5809_v11 }
 0x183   : > { %2104 = vmatpush.bf16.msra.mxu1 %v5845_v23 }
 0x185   : > { %2123 = vmatpush.bf16.msra.mxu2 %v5849_v35 }
 0x186   : > { %2067 = vmatpush.bf16.msrb.mxu3 %v5821_v53 }
 0x187   : > { %2105 = vmatpush.bf16.msra.mxu1 %v5829_v25 }
 0x189   : > { %2124 = vmatpush.bf16.msra.mxu2 %v5833_v1  ;;  %v2137_v1 = vpack.c.bf16 %v8098_v24, %v8094_v22 }
 0x18a   : > { %2068 = vmatpush.bf16.msrb.mxu3 %v5805_v6 }
 0x18b   : > { %2106 = vmatpush.bf16.msra.mxu1 %v5813_v59 }
 0x18d   : > { %2125 = vmatpush.bf16.msra.mxu2 %v5817_v51 }
 0x18e   : > { %2209 = vmatpush.bf16.msra.mxu3 %v6954_v14 }
 0x192   : > { %2210 = vmatpush.bf16.msra.mxu3 %v6953_v16 }
 0x196   : > { %2211 = vmatpush.bf16.msra.mxu3 %v6952_v17 }
 0x19a   : > { %2212 = vmatpush.bf16.msra.mxu3 %v6951_v32 }
 0x19e   : > { %2213 = vmatpush.bf16.msra.mxu3 %v6950_v60 }
 0x1a2   : > { %2214 = vmatpush.bf16.msra.mxu3 %v6949_v5 }
 0x1a6   : > { %2215 = vmatpush.bf16.msra.mxu3 %v6948_v29 }
 0x1aa   : > { %2216 = vmatpush.bf16.msra.mxu3 %v6947_v0 }
 0x1da   : > { %v1809_v19 = vpop.f32.mrf.mxu0 }
 0x1db   : > { %v1828_v20 = vpop.f32.mrf.mxu1 }
 0x1e2   : > { %v1811_v7 = vpop.f32.mrf.mxu0 }
 0x1e3   : > { %v1830_v30 = vpop.f32.mrf.mxu1 }
 0x1e6   : > { %v1790_v61 = vpop.f32.mrf.mxu3 }
 0x1e7   : > { %v1847_v33 = vpop.f32.mrf.mxu2  ;;  %v1791_v27 = vadd.f32 %v7219_v63, %v1790_v61 }
 0x1e9   : > { %v1810_v34 = vadd.f32 %v1809_v19, %v1791_v27 }
 0x1ea   : > { %v1814_v37 = vpop.f32.mrf.mxu0 }
 0x1eb   : > { %v1829_v40 = vadd.f32 %v1828_v20, %v1810_v34  ;;  %v1833_v23 = vpop.f32.mrf.mxu1 }
 0x1ed   : > { %v8164_v43 = vadd.f32 %v1847_v33, %v1829_v40  ;;  %v1895_v33 = vperm.slane %v1891_v9, 2 }
 0x1ee   : > { %v1792_v31 = vpop.f32.mrf.mxu3 }
 0x1ef   : > { %v1793_v36 = vadd.f32 %v7219_v63, %v1792_v31  ;;  %v1849_v39 = vpop.f32.mrf.mxu2 }
 0x1f1   : > { %v1812_v41 = vadd.f32 %v1811_v7, %v1793_v36 }
 0x1f2   : > { %v1816_v50 = vpop.f32.mrf.mxu0 }
 0x1f3   : > { %v1831_v42 = vadd.f32 %v1830_v30, %v1812_v41  ;;  %v1835_v55 = vpop.f32.mrf.mxu1 }
 0x1f5   : > { %v8166_v18 = vadd.f32 %v1849_v39, %v1831_v42  ;;  %v1896_v42 = vperm.slane %v1891_v9, 3 }
 0x1f6   : > { %v1795_v21 = vpop.f32.mrf.mxu3 }
 0x1f7   : > { %v1857_v44 = vpack.c.bf16 %v8166_v18, %v8164_v43  ;;  %v1796_v45 = vadd.f32 %v7219_v63, %v1795_v21  ;;  %v1852_v46 = vpop.f32.mrf.mxu2 }
 0x1f9   : > { %2069 = vmatmul.bf16.vlgmr.msrb.gmra.mxu3 %v1857_v44  ;;  %2088 = vmatmul.bf16.vlgmr.msra.gmra.mxu0 %v1857_v44  ;;  %v1815_v35 = vadd.f32 %v1814_v37, %v1796_v45  ;;  %v6830_v45 = vld [vmem:[%s8201_s9] sm:$0xff] }
 0x1fa   : > { %2107 = vmatmul.bf16.vlgmr.msra.gmra.mxu1 %v1857_v44  ;;  %2126 = vmatmul.bf16.vlgmr.msra.gmra.mxu2 %v1857_v44 }
 0x1fb   : > { %v1834_v53 = vadd.f32 %v1833_v23, %v1815_v35 }
 0x1fd   : > { %v8170_v25 = vadd.f32 %v1852_v46, %v1834_v53  ;;  %v6831_v53 = vld [vmem:[%s8201_s9 + $0x8] sm:$0xff] }
 0x1fe   : > { %v1797_v47 = vpop.f32.mrf.mxu3 }
 0x1ff   : > { %v1798_v49 = vadd.f32 %v7219_v63, %v1797_v47  ;;  %v1854_v57 = vpop.f32.mrf.mxu2  ;;  %v1894_v63 = vperm.slane %v1891_v9, 1 }
 0x201   : > { %v1817_v54 = vadd.f32 %v1816_v50, %v1798_v49  ;;  %v6834_v50 = vld [vmem:[%s8208_s2] sm:$0xff] }
 0x203   : > { %v1836_v56 = vadd.f32 %v1835_v55, %v1817_v54  ;;  %v6835_v54 = vld [vmem:[%s8208_s2 + $0x8] sm:$0xff]  ;;  %v6832_v55 = vld [vmem:[%s8201_s9 + $0x10] sm:$0xff] }
 0x205   : > { %v8172_v58 = vadd.f32 %v1854_v57, %v1836_v56  ;;  %v6836_v56 = vld [vmem:[%s8208_s2 + $0x10] sm:$0xff]  ;;  %v6833_v57 = vld [vmem:[%s8201_s9 + $0x18] sm:$0xff] }
 0x207   : > { %v1858_v48 = vpack.c.bf16 %v8172_v58, %v8170_v25 }
 0x209   : > { %2074 = vmatmul.bf16.gmra.mxu3 %v1858_v48  ;;  %2093 = vmatmul.bf16.gmra.mxu0 %v1858_v48 }
 0x20a   : > { %2112 = vmatmul.bf16.gmra.mxu1 %v1858_v48  ;;  %2131 = vmatmul.bf16.gmra.mxu2 %v1858_v48  ;;  %v6837_v48 = vld [vmem:[%s8208_s2 + $0x18] sm:$0xff] }
 0x219   : > { %2217 = vmatmul.bf16.vlgmr.msra.gmra.mxu3 %v2137_v1 }
 0x229   : > { %2222 = vmatmul.bf16.gmra.mxu3 %v2138_v2 }
 0x239   : > { %2227 = vmatmul.bf16.gmra.mxu3 %v2139_v3 }
 0x249   : > { %2232 = vmatmul.bf16.gmra.mxu3 %v2140_v4 }
 0x276   : > { %v2089_v6 = vpop.f32.mrf.mxu0 }
 0x277   : > { %v2108_v8 = vpop.f32.mrf.mxu1  ;;  %v2090_v40 = vadd.f32 %v2089_v6, %v1894_v63 }
 0x278   : > { %v2109_v41 = vadd.f32 %v2108_v8, %v1895_v33  ;;  %v8234_v8 = vld [vmem:[%s9382_s16] ss:$0 sm:$0xff] }
 0x27c   : > { %v2070_v11 = vpop.f32.mrf.mxu3 }
 0x27d   : > { %v8190_v59 = vadd.f32 %v2070_v11, %v8187_v10  ;;  %v2127_v12 = vpop.f32.mrf.mxu2 }
 0x27e   : > { %v2091_v13 = vpop.f32.mrf.mxu0  ;;  %v2128_v47 = vadd.f32 %v2127_v12, %v1896_v42 }
 0x27f   : > { %v2110_v51 = vpop.f32.mrf.mxu1  ;;  %v2092_v31 = vadd.f32 %v2091_v13, %v1894_v63 }
 0x280   : > { %v2111_v29 = vadd.f32 %v2110_v51, %v1895_v33 }
 0x281   : > { %v2238_v0 = vpack.c.bf16 %v2092_v31, %v2090_v40 }
 0x282   : > { %v2239_v21 = vpack.c.bf16 %v2111_v29, %v2109_v41 }
 0x284   : > { %v8192_v14 = vpop.f32.mrf.mxu3 }
 0x285   : > { %v2129_v16 = vpop.f32.mrf.mxu2 }
 0x286   : > { %v2094_v17 = vpop.f32.mrf.mxu0  ;;  %v2130_v46 = vadd.f32 %v2129_v16, %v1896_v42 }
 0x287   : > { %v2113_v19 = vpop.f32.mrf.mxu1  ;;  %v2095_v60 = vadd.f32 %v2094_v17, %v1894_v63 }
 0x288   : > { %v2114_v34 = vadd.f32 %v2113_v19, %v1895_v33  ;;  %v2333_v49 = vpack.c.bf16 %v2130_v46, %v2128_v47 }
 0x28c   : > { %v2075_v20 = vpop.f32.mrf.mxu3 }
 0x28d   : > { %v8195_v32 = vadd.f32 %v2075_v20, %v8187_v10  ;;  %v2132_v61 = vpop.f32.mrf.mxu2 }
 0x28e   : > { %v2096_v27 = vpop.f32.mrf.mxu0  ;;  %v2133_v44 = vadd.f32 %v2132_v61, %v1896_v42 }
 0x28f   : > { %v2097_v5 = vadd.f32 %v2096_v27, %v1894_v63  ;;  %v2115_v7 = vpop.f32.mrf.mxu1 }
 0x290   : > { %v2116_v30 = vadd.f32 %v2115_v7, %v1895_v33 }
 0x291   : > { %v2240_v36 = vpack.c.bf16 %v2097_v5, %v2095_v60 }
 0x292   : > { %v2241_v39 = vpack.c.bf16 %v2116_v30, %v2114_v34 }
 0x293   : > { %2281 = vmatpush.bf16.msrb.mxu0 %v2240_v36 }
 0x294   : > { %2310 = vmatpush.bf16.msrb.mxu1 %v2241_v39  ;;  %v8229_v1 = vpop.f32.mrf.mxu3 }
 0x295   : > { %v2134_v37 = vpop.f32.mrf.mxu2 }
 0x296   : > { %v2135_v23 = vadd.f32 %v2134_v37, %v1896_v42 }
 0x297   : > { %2282 = vmatpush.bf16.msrb.mxu0 %v2238_v0 }
 0x298   : > { %v2334_v35 = vpack.c.bf16 %v2135_v23, %v2133_v44  ;;  %2311 = vmatpush.bf16.msrb.mxu1 %v2239_v21 }
 0x29a   : > { %2373 = vmatpush.bf16.msrb.mxu2 %v2334_v35  ;;  %5978 = vmatmul.msk.bf16.vlgmr.msrb.gmra.mxu0 %vm2262_vm7, %v6830_v45 }
 0x29b   : > { %5982 = vmatmul.msk.bf16.vlgmr.msrb.gmra.mxu1 %vm2262_vm7, %v6830_v45 }
 0x29c   : > { %v2218_v2 = vpop.f32.mrf.mxu3 }
 0x29d   : > { %v2219_v11 = vadd.f32 %v8234_v8, %v2218_v2 }
 0x29e   : > { %2374 = vmatpush.bf16.msrb.mxu2 %v2333_v49 }
 0x2a1   : > { %6002 = vmatmul.msk.bf16.vlgmr.msrb.gmra.mxu2 %vm2262_vm7, %v6834_v50 }
 0x2a4   : > { %v2220_v4 = vpop.f32.mrf.mxu3 }
 0x2a5   : > { %v2221_v45 = vadd.f32 %v8234_v8, %v2220_v4 }
 0x2aa   : > { %5979 = vmatmul.msk.bf16.gmra.mxu0 %vm2262_vm7, %v6831_v53 }
 0x2ab   : > { %5983 = vmatmul.msk.bf16.gmra.mxu1 %vm2262_vm7, %v6831_v53 }
 0x2ac   : > { %v2223_v51 = vpop.f32.mrf.mxu3 }
 0x2ad   : > { %v2224_v53 = vadd.f32 %v8234_v8, %v2223_v51 }
 0x2b1   : > { %6003 = vmatmul.msk.bf16.gmra.mxu2 %vm2262_vm7, %v6835_v54 }
 0x2b4   : > { %v2225_v63 = vpop.f32.mrf.mxu3 }
 0x2b5   : > { %v2226_v2 = vadd.f32 %v8234_v8, %v2225_v63 }
 0x2ba   : > { %5980 = vmatmul.msk.bf16.gmra.mxu0 %vm2262_vm7, %v6832_v55 }
 0x2bb   : > { %5984 = vmatmul.msk.bf16.gmra.mxu1 %vm2262_vm7, %v6832_v55 }
 0x2bc   : > { %v2228_v34 = vpop.f32.mrf.mxu3 }
 0x2c1   : > { %6004 = vmatmul.msk.bf16.gmra.mxu2 %vm2262_vm7, %v6836_v56 }
 0x2c4   : > { %v2230_v35 = vpop.f32.mrf.mxu3 }
 0x2ca   : > { %5981 = vmatmul.msk.bf16.gmra.mxu0 %vm2262_vm7, %v6833_v57 }
 0x2cb   : > { %5985 = vmatmul.msk.bf16.gmra.mxu1 %vm2262_vm7, %v6833_v57  ;;  %v2229_v57 = vadd.f32 %v8234_v8, %v2228_v34 }
 0x2d1   : > { %6005 = vmatmul.msk.bf16.gmra.mxu2 %vm2262_vm7, %v6837_v48 }
 0x317   : > { %v2284_v33 = vpop.f32.mrf.mxu0 }
 0x318   : > { %v2313_v3 = vpop.f32.mrf.mxu1 }
 0x31f   : > { %v8240_v36 = vpop.f32.mrf.mxu0 }
 0x320   : > { %v2315_v6 = vpop.f32.mrf.mxu1 }
 0x324   : > { %v2376_v9 = vpop.f32.mrf.mxu2 }
 0x325   : > { %v2396_v12 = vadd.f32 %v2376_v9, %v2313_v3  ;;  %v2231_v9 = vadd.f32 %v8234_v8, %v2230_v35 }
 0x327   : > { %v8237_v13 = vadd.f32 %v2396_v12, %v2219_v11  ;;  %v8250_v50 = vpop.f32.mrf.mxu0 }
 0x328   : > { %v2318_v17 = vpop.f32.mrf.mxu1 }
 0x329   : > { %v6006_v16 = vmul.f32 -1.442695, %v8237_v13 }
 0x32b   : > { %7235 = vpow2.f32 %v6006_v16 }
 0x32c   : > { %v2378_v19 = vpop.f32.mrf.mxu2 }
 0x32d   : > { %v2397_v37 = vadd.f32 %v2378_v19, %v2315_v6 }
 0x32f   : > { %v8248_v49 = vadd.f32 %v2397_v37, %v2221_v45 }
 0x330   : > { %v2320_v27 = vpop.f32.mrf.mxu1 }
 0x331   : > { %v7236_v20 = vpop.eup %7235  ;;  %v6007_v3 = vmul.f32 -1.442695, %v8248_v49 }
 0x332   : > { %v2436_v61 = vadd.f32 1.0, %v7236_v20 }
 0x334   : > { %7237 = vrcp.f32 %v2436_v61  ;;  %v2381_v60 = vpop.f32.mrf.mxu2  ;;  %v2455_v39 = vand.u32 2147483648, %v2436_v61  ;;  %v2453_v41 = vand.u32 2147483647, %v2436_v61  ;;  %vm2449_vm9 = vweird.f32 %v2436_v61 }
 0x335   : > { %v2398_v47 = vadd.f32 %v2381_v60, %v2318_v17  ;;  %7239 = vpow2.f32 %v6007_v3  ;;  %v2233_v17 = vpop.f32.mrf.mxu3 }
 0x336   : > { %v2456_v0 = vor.u32 1.1754944e-38, %v2455_v39  ;;  %vm2454_vm11 = vcmp.eq.f32.partialorder %v2453_v41, 8.507059e+37 }
 0x337   : > { %v8254_v48 = vadd.f32 %v2398_v47, %v2224_v53 }
 0x338   : > { %v2323_v29 = vpop.f32.mrf.mxu1 }
 0x339   : > { %v6008_v51 = vmul.f32 -1.442695, %v8254_v48 }
 0x33a   : > { %v7238_v5 = vpop.eup %7237 }
 0x33b   : > { %v2445_v7 = vmul.f32 %v7238_v5, %v2436_v61  ;;  %vm2450_vm8 = vweird.f32 %v7238_v5  ;;  %v8269_v61 = vpop.f32.mrf.mxu0  ;;  %7241 = vpow2.f32 %v6008_v51  ;;  %v7240_v60 = vpop.eup %7239 }
 0x33c   : > { %v2383_v30 = vpop.f32.mrf.mxu2  ;;  %vm2451_vm10 = vmor %vm2449_vm9, %vm2450_vm8 }
 0x33d   : > { %v2446_v31 = vsub.f32 1.0, %v2445_v7  ;;  %v2399_v56 = vadd.f32 %v2383_v30, %v2320_v27  ;;  %v2235_v41 = vpop.f32.mrf.mxu3 }
 0x33e   : > { %v2236_v35 = vadd.f32 %v8234_v8, %v2235_v41 }
 0x33f   : > { %v2447_v40 = vmul.f32 %v7238_v5, %v2446_v31  ;;  %v8261_v11 = vadd.f32 %v2399_v56, %v2226_v2  ;;  %v8274_v31 = vadd.f32 1.0, %v7240_v60 }
 0x340   : > { %v2325_v54 = vpop.f32.mrf.mxu1 }
 0x341   : > { %v2448_v42 = vadd.f32 %v7238_v5, %v2447_v40  ;;  %v6009_v20 = vmul.f32 -1.442695, %v8261_v11  ;;  %v7242_v30 = vpop.eup %7241  ;;  %vm2464_vm9 = vweird.f32 %v8274_v31 }
 0x343   : > { %v2452_v21 = vsel %vm2451_vm10, %v7238_v5, %v2448_v42  ;;  %v2234_v5 = vadd.f32 %v8234_v8, %v2233_v17  ;;  %v8279_v37 = vpop.f32.mrf.mxu0 }
 0x344   : > { %v8242_v44 = vsel %vm2454_vm11, %v2456_v0, %v2452_v21  ;;  %v2386_v23 = vpop.f32.mrf.mxu2  ;;  %v8277_v0 = vadd.f32 1.0, %v7242_v30 }
 0x345   : > { %v8246_v46 = vmul.f32 %v8242_v44, %v2284_v33  ;;  %v2400_v55 = vadd.f32 %v2386_v23, %v2323_v29 }
 0x346   : > { %vm2479_vm5 = vweird.f32 %v8277_v0 }
 0x347   : > { %v8258_v4 = vadd.f32 %v2400_v55, %v2229_v57 }
 0x348   : > { %v2328_v33 = vpop.f32.mrf.mxu1 }
 0x349   : > { %v6010_v19 = vmul.f32 -1.442695, %v8258_v4 }
 0x34c   : > { %v2388_v6 = vpop.f32.mrf.mxu2 }
 0x34d   : > { %v2401_v12 = vadd.f32 %v2388_v6, %v2325_v54 }
 0x34f   : > { %v8264_v16 = vadd.f32 %v2401_v12, %v2231_v9  ;;  %v8307_v12 = vpop.f32.mrf.mxu0 }
 0x350   : > { %v2330_v23 = vpop.f32.mrf.mxu1 }
 0x351   : > { %v6011_v63 = vmul.f32 -1.442695, %v8264_v16 }
 0x353   : > { %7243 = vpow2.f32 %v6011_v63 }
 0x354   : > { %7245 = vpow2.f32 %v6010_v19  ;;  %v2391_v27 = vpop.f32.mrf.mxu2 }
 0x355   : > { %7247 = vpow2.f32 %v6009_v20  ;;  %v2402_v7 = vadd.f32 %v2391_v27, %v2328_v33 }
 0x357   : > { %v8272_v34 = vadd.f32 %v2402_v7, %v2234_v5 }
 0x359   : > { %9455 = vst [vmem:[#allocation26_spill] sm:$0xff] %v8272_v34  ;;  %v7244_v29 = vpop.eup %7243  ;;  %v6012_v39 = vmul.f32 -1.442695, %v8272_v34 }
 0x35a   : > { %v7246_v40 = vpop.eup %7245  ;;  %v8282_v21 = vadd.f32 1.0, %v7244_v29 }
 0x35b   : > { %v7248_v42 = vpop.eup %7247  ;;  %7249 = vpow2.f32 %v6012_v39  ;;  %v8285_v47 = vadd.f32 1.0, %v7246_v40 }
 0x35c   : > { %7251 = vrcp.f32 %v8274_v31  ;;  %v2393_v45 = vpop.f32.mrf.mxu2  ;;  %v8287_v54 = vadd.f32 1.0, %v7248_v42  ;;  %vm2524_vm2 = vweird.f32 %v8282_v21 }
 0x35d   : > { %v2403_v53 = vadd.f32 %v2393_v45, %v2330_v23  ;;  %7253 = vrcp.f32 %v8277_v0  ;;  %vm2509_vm13 = vweird.f32 %v8285_v47  ;;  %v2515_v52 = vand.u32 2147483648, %v8285_v47 }
 0x35e   : > { %7255 = vrcp.f32 %v8282_v21  ;;  %vm2494_vm15 = vweird.f32 %v8287_v54 }
 0x35f   : > { %v8290_v55 = vadd.f32 %v2403_v53, %v2236_v35  ;;  %7257 = vrcp.f32 %v8285_v47  ;;  %v2530_v35 = vand.u32 2147483648, %v8282_v21 }
 0x360   : > { %7259 = vrcp.f32 %v8287_v54 }
 0x361   : > { %9456 = vst [vmem:[#allocation27_spill] sm:$0xff] %v8290_v55  ;;  %v7250_v56 = vpop.eup %7249  ;;  %v6013_v57 = vmul.f32 -1.442695, %v8290_v55 }
 0x362   : > { %v8295_v2 = vpop.eup %7251  ;;  %v8298_v8 = vadd.f32 1.0, %v7250_v56  ;;  %v8332_v56 = vpop.f32.mrf.mxu0 }
 0x363   : > { %7261 = vpow2.f32 %v6013_v57  ;;  %v8301_v3 = vpop.eup %7253  ;;  %v2460_v6 = vmul.f32 %v8295_v2, %v8274_v31  ;;  %vm2465_vm4 = vweird.f32 %v8295_v2 }
 0x364   : > { %7263 = vrcp.f32 %v8298_v8  ;;  %v8305_v9 = vpop.eup %7255  ;;  %v2475_v27 = vmul.f32 %v8301_v3, %v8277_v0  ;;  %vm2480_vm14 = vweird.f32 %v8301_v3  ;;  %vm2539_vm6 = vweird.f32 %v8298_v8 }
 0x365   : > { %v8309_v51 = vpop.eup %7257  ;;  %v2461_v20 = vsub.f32 1.0, %v2460_v6  ;;  %v2520_v63 = vmul.f32 %v8305_v9, %v8282_v21  ;;  %vm2525_vm3 = vweird.f32 %v8305_v9 }
 0x366   : > { %v8311_v17 = vpop.eup %7259  ;;  %v2505_v5 = vmul.f32 %v8309_v51, %v8285_v47  ;;  %v2476_v41 = vsub.f32 1.0, %v2475_v27  ;;  %vm2510_vm1 = vweird.f32 %v8309_v51  ;;  %vm8381_vm11 = vmor %vm2524_vm2, %vm2525_vm3 }
 0x367   : > { %v2490_v7 = vmul.f32 %v8311_v17, %v8287_v54  ;;  %v2462_v29 = vmul.f32 %v8295_v2, %v2461_v20  ;;  %v2521_v39 = vsub.f32 1.0, %v2520_v63  ;;  %vm2495_vm12 = vweird.f32 %v8311_v17 }
 0x368   : > { %v2506_v42 = vsub.f32 1.0, %v2505_v5  ;;  %v2477_v27 = vmul.f32 %v8301_v3, %v2476_v41  ;;  %v2543_v41 = vand.u32 2147483647, %v8298_v8 }
 0x369   : > { %v7262_v19 = vpop.eup %7261  ;;  %v2491_v23 = vsub.f32 1.0, %v2490_v7  ;;  %v8335_v57 = vadd.f32 %v8295_v2, %v2462_v29  ;;  %v2522_v20 = vmul.f32 %v8305_v9, %v2521_v39  ;;  %v2545_v39 = vand.u32 2147483648, %v8298_v8 }
 0x36a   : > { %v8315_v33 = vpop.eup %7263  ;;  %v8319_v60 = vadd.f32 1.0, %v7262_v19  ;;  %v2507_v5 = vmul.f32 %v8309_v51, %v2506_v42  ;;  %v2513_v19 = vand.u32 2147483647, %v8285_v47  ;;  %v2301_v47 = vpop.f32.mrf.mxu0 }
 0x36b   : > { %v2535_v30 = vmul.f32 %v8315_v33, %v8298_v8  ;;  %v2492_v7 = vmul.f32 %v8311_v17, %v2491_v23  ;;  %vm2540_vm0 = vweird.f32 %v8315_v33  ;;  %v2546_v53 = vor.u32 1.1754944e-38, %v2545_v39 }
 0x36c   : > { %7265 = vrcp.f32 %v8319_v60  ;;  %v2508_v23 = vadd.f32 %v8309_v51, %v2507_v5  ;;  %vm8364_vm8 = vmor %vm2539_vm6, %vm2540_vm0  ;;  %v2560_v6 = vand.u32 2147483648, %v8319_v60  ;;  %v2558_v5 = vand.u32 2147483647, %v8319_v60 }
 0x36d   : > { %v2536_v40 = vsub.f32 1.0, %v2535_v30  ;;  %vm8389_vm0 = vmor %vm2509_vm13, %vm2510_vm1  ;;  %vm2544_vm6 = vcmp.eq.f32.partialorder %v2543_v41, 8.507059e+37  ;;  %vm2554_vm2 = vweird.f32 %v8319_v60  ;;  %v2470_v41 = vand.u32 2147483648, %v8274_v31 }
 0x36e   : > { %v2561_v34 = vor.u32 1.1754944e-38, %v2560_v6  ;;  %v2512_v55 = vsel %vm8389_vm0, %v8309_v51, %v2508_v23  ;;  %vm2559_vm1 = vcmp.eq.f32.partialorder %v2558_v5, 8.507059e+37 }
 0x36f   : > { %v2537_v45 = vmul.f32 %v8315_v33, %v2536_v40  ;;  %v2523_v40 = vadd.f32 %v8305_v9, %v2522_v20 }
 0x371   : > { %v2538_v30 = vadd.f32 %v8315_v33, %v2537_v45  ;;  %v2528_v45 = vand.u32 2147483647, %v8282_v21  ;;  %v2478_v21 = vadd.f32 %v8301_v3, %v2477_v27 }
 0x372   : > { %v7266_v63 = vpop.eup %7265 }
 0x373   : > { %v2550_v29 = vmul.f32 %v7266_v63, %v8319_v60  ;;  %v2542_v8 = vsel %vm8364_vm8, %v8315_v33, %v2538_v30  ;;  %vm2555_vm10 = vweird.f32 %v7266_v63  ;;  %vm2529_vm13 = vcmp.eq.f32.partialorder %v2528_v45, 8.507059e+37  ;;  %vm8406_vm8 = vmor %vm2494_vm15, %vm2495_vm12 }
 0x374   : > { %v2547_v39 = vsel %vm2544_vm6, %v2546_v53, %v2542_v8  ;;  %vm2556_vm3 = vmor %vm2554_vm2, %vm2555_vm10  ;;  %v9469_v8 = vand.u32 2147483648, %v8277_v0 }
 0x375   : > { %v2551_v42 = vsub.f32 1.0, %v2550_v29  ;;  %v2493_v29 = vadd.f32 %v8311_v17, %v2492_v7  ;;  %v2527_v7 = vsel %vm8381_vm11, %v8305_v9, %v2523_v40  ;;  %vm2514_vm11 = vcmp.eq.f32.partialorder %v2513_v19, 8.507059e+37  ;;  %vm8420_vm12 = vmor %vm2479_vm5, %vm2480_vm14 }
 0x376   : > { %v2516_v9 = vor.u32 1.1754944e-38, %v2515_v52  ;;  %v2570_v51 = vmul.f32 %v2547_v39, %v8332_v56  ;;  %v2468_v40 = vand.u32 2147483647, %v8274_v31  ;;  %v2482_v56 = vsel %vm8420_vm12, %v8301_v3, %v2478_v21  ;;  %vm2466_vm14 = vmor %vm2464_vm9, %vm2465_vm4  ;;  %v6127_v52 = vld [vmem:[#allocation5 + $0x1d0] sm:$0xf0] }
 0x377   : > { %v2552_v20 = vmul.f32 %v7266_v63, %v2551_v42  ;;  %v2531_v42 = vor.u32 1.1754944e-38, %v2530_v35  ;;  %v2497_v6 = vsel %vm8406_vm8, %v8311_v17, %v2493_v29  ;;  %v9468_v19 = vand.u32 2147483647, %v8287_v54 }
 0x378   : > { %v2517_v17 = vsel %vm2514_vm11, %v2516_v9, %v2512_v55  ;;  %v2467_v3 = vsel %vm2466_vm14, %v8295_v2, %v8335_v57  ;;  %v2471_v29 = vor.u32 1.1754944e-38, %v2470_v41  ;;  %vm2469_vm10 = vcmp.eq.f32.partialorder %v2468_v40, 8.507059e+37  ;;  %v6838_v2 = vld [vmem:[%s8450_s5] sm:$0xff]  ;;  %v6839_v57 = vld [vmem:[%s8450_s5 + $0x8] sm:$0xff]  ;;  %v6986_v9 = vld [vmem:[#allocation5 + $0x1f4] sm:$0xf0] }
 0x379   : > { %v2553_v30 = vadd.f32 %v7266_v63, %v2552_v20  ;;  %v2532_v60 = vsel %vm2529_vm13, %v2531_v42, %v2527_v7  ;;  %vm2499_vm15 = vcmp.eq.f32.partialorder %v9468_v19, 8.507059e+37  ;;  %v2486_v20 = vor.u32 1.1754944e-38, %v9469_v8  ;;  %v6985_v42 = vld [vmem:[#allocation5 + $0x1ec] sm:$0xf0]  ;;  %v6979_v40 = vld [vmem:[#allocation5 + $0x1c4] sm:$0xf] }
 0x37a   : > { %v2569_v23 = vmul.f32 %v2532_v60, %v8307_v12  ;;  %v2568_v12 = vmul.f32 %v2517_v17, %v8279_v37  ;;  %v2577_v5 = vpack.c.bf16 %v2532_v60, %v2517_v17  ;;  %v2472_v7 = vsel %vm2469_vm10, %v2471_v29, %v2467_v3  ;;  %v6980_v19 = vld [vmem:[#allocation5 + $0x1cc] sm:$0xf]  ;;  %v6109_v8 = vld [vmem:[#allocation5 + $0x1a0] sm:$0xf] }
 0x37b   : > { %v2557_v15 = vsel %vm2556_vm3, %v7266_v63, %v2553_v30  ;;  %vm9414_vm4 = vcmask 523264   ;;  %v6150_v60 = vor.u32 %v6986_v9, %v6149_v62  ;;  %v6130_v17 = vor.u32 %v6979_v40, %v6127_v52  ;;  %v6969_v62 = vld [vmem:[#allocation5 + $0x16c] sm:$0xf0]  ;;  %v6967_v9 = vld [vmem:[#allocation5 + $0x164] sm:$0xf] }
 0x37c   : > { %v2562_v35 = vsel %vm2559_vm1, %v2561_v34, %v2557_v15  ;;  %v9467_v15 = vand.u32 2147483648, %v8287_v54  ;;  %v9470_v54 = vand.u32 2147483647, %v8277_v0  ;;  %v2576_v33 = vpack.c.bf16 %v2569_v23, %v2568_v12  ;;  %v6135_v23 = vld [vmem:[#allocation5 + $0x1d8] sm:$0xf0] }
 0x37d   : > { %v2579_v63 = vpack.c.bf16 %v2562_v35, %v2547_v39  ;;  %v2571_v27 = vmul.f32 %v2562_v35, %v2301_v47  ;;  %v2565_v0 = vmul.f32 %v2472_v7, %v8240_v36  ;;  %v6141_v36 = vld [vmem:[#allocation5 + $0x1e0] sm:$0xf]  ;;  %v6983_v39 = vld [vmem:[#allocation5 + $0x1e4] sm:$0xf]  ;;  %v6143_v47 = vld [vmem:[#allocation5 + $0x1f0] sm:$0xf0] }
 0x37e   : > { %v2501_v34 = vor.u32 1.1754944e-38, %v9467_v15  ;;  %vm2484_vm5 = vcmp.eq.f32.partialorder %v9470_v54, 8.507059e+37  ;;  %v6984_v35 = vld [vmem:[#allocation5 + $0x1ec] sm:$0xf]  ;;  %v6133_v15 = vld [vmem:[#allocation5 + $0x1c8] sm:$0xf] }
 0x37f   : > { %v2578_v45 = vpack.c.bf16 %v2571_v27, %v2570_v51  ;;  %2620 = vmatpush.bf16.msra.mxu0 %v2579_v63  ;;  %v2487_v53 = vsel %vm2484_vm5, %v2486_v20, %v2482_v56  ;;  %v6125_v63 = vld [vmem:[#allocation5 + $0x1c0] sm:$0xf]  ;;  %v6981_v27 = vld [vmem:[#allocation5 + $0x1cc] sm:$0xf0]  ;;  %v6111_v54 = vld [vmem:[#allocation5 + $0x1b0] sm:$0xf0] }
 0x380   : > { %v2502_v55 = vsel %vm2499_vm15, %v2501_v34, %v2497_v6  ;;  %v2566_v30 = vmul.f32 %v2487_v53, %v8250_v50  ;;  %v2572_v50 = vpack.c.bf16 %v2565_v0, %v8246_v46  ;;  %v6146_v46 = vor.u32 %v6983_v39, %v6143_v47  ;;  %v6151_v6 = vld [vmem:[#allocation5 + $0x1f8] sm:$0xf0]  ;;  %v6982_v34 = vld [vmem:[#allocation5 + $0x1d4] sm:$0xf0]  ;;  %v6977_v20 = vld [vmem:[#allocation5 + $0x1ac] sm:$0xf0] }
 0x381   : > { %2601 = vmatpush.bf16.msrb.mxu3 %v2578_v45  ;;  %v2567_v31 = vmul.f32 %v2502_v55, %v8269_v61  ;;  %v2575_v21 = vpack.c.bf16 %v2502_v55, %v2487_v53  ;;  %v2573_v61 = vpack.c.bf16 %v2472_v7, %v8242_v44  ;;  %v6142_v44 = vor.u32 %v6985_v42, %v6141_v36  ;;  %v6975_v55 = vld [vmem:[#allocation5 + $0x1a4] sm:$0xf]  ;;  %v6117_v12 = vld [vmem:[#allocation5 + $0x1a8] sm:$0xf]  ;;  %v6972_v36 = vld [vmem:[#allocation5 + $0x18c] sm:$0xf] }
 0x382   : > { %v6154_v51 = vor.u32 %v6984_v35, %v6151_v6  ;;  %2992 = vmatpush.bf16.msra.mxu2 %v6146_v46  ;;  %v6126_v41 = vor.u32 %v6981_v27, %v6125_v63  ;;  %v6134_v56 = vor.u32 %v6982_v34, %v6133_v15  ;;  %v6138_v45 = vor.u32 %v6980_v19, %v6135_v23  ;;  %v6103_v39 = vld [vmem:[#allocation5 + $0x198] sm:$0xf0]  ;;  %v6077_v47 = vld [vmem:[#allocation5 + $0x160] sm:$0xf]  ;;  %v6085_v35 = vld [vmem:[#allocation5 + $0x168] sm:$0xf] }
 0x383   : > { %2621 = vmatpush.bf16.msra.mxu0 %v2577_v5  ;;  %v2574_v37 = vpack.c.bf16 %v2567_v31, %v2566_v30  ;;  %2973 = vmatpush.bf16.msra.mxu1 %v6142_v44  ;;  %v6110_v3 = vor.u32 %v6977_v20, %v6109_v8  ;;  %v6978_v5 = vld [vmem:[#allocation5 + $0x1b4] sm:$0xf0]  ;;  %v6114_v29 = vor.u32 %v6975_v55, %v6111_v54  ;;  %v6976_v31 = vld [vmem:[#allocation5 + $0x1ac] sm:$0xf]  ;;  %v6093_v30 = vld [vmem:[#allocation5 + $0x180] sm:$0xf] }
 0x384   : > { %v6118_v53 = vor.u32 %v6978_v5, %v6117_v12  ;;  %v6106_v44 = vor.u32 %v6972_v36, %v6103_v39  ;;  %v6078_v46 = vor.u32 %v6969_v62, %v6077_v47  ;;  %v6970_v6 = vld [vmem:[#allocation5 + $0x174] sm:$0xf0]  ;;  %v6968_v27 = vld [vmem:[#allocation5 + $0x16c] sm:$0xf]  ;;  %v6087_v40 = vld [vmem:[#allocation5 + $0x178] sm:$0xf0] }
 0x385   : > { %2602 = vmatpush.bf16.msrb.mxu3 %v2576_v33  ;;  %v6119_v33 = vld [vmem:[#allocation5 + $0x1b8] sm:$0xf0]  ;;  %v6086_v63 = vor.u32 %v6970_v6, %v6085_v35  ;;  %v6061_v52 = vld [vmem:[#allocation5 + $0x140] sm:$0xf]  ;;  %v6965_v15 = vld [vmem:[#allocation5 + $0x14c] sm:$0xf0] }
 0x386   : > { %2993 = vmatpush.bf16.msra.mxu2 %v6130_v17  ;;  %v6122_v7 = vor.u32 %v6976_v31, %v6119_v33  ;;  %v6963_v34 = vld [vmem:[#allocation5 + $0x144] sm:$0xf]  ;;  %v6062_v17 = vor.u32 %v6965_v15, %v6061_v52  ;;  %v6069_v19 = vld [vmem:[#allocation5 + $0x148] sm:$0xf]  ;;  %v6966_v23 = vld [vmem:[#allocation5 + $0x154] sm:$0xf0] }
 0x387   : > { %2622 = vmatpush.bf16.msra.mxu0 %v2575_v21  ;;  %2974 = vmatpush.bf16.msra.mxu1 %v6126_v41  ;;  %v6973_v21 = vld [vmem:[#allocation5 + $0x18c] sm:$0xf0]  ;;  %v6090_v41 = vor.u32 %v6968_v27, %v6087_v40  ;;  %v6070_v20 = vor.u32 %v6966_v23, %v6069_v19  ;;  %v6964_v55 = vld [vmem:[#allocation5 + $0x14c] sm:$0xf]  ;;  %v6045_v5 = vld [vmem:[#allocation5 + $0x120] sm:$0xf] }
 0x388   : > { %v6094_v0 = vor.u32 %v6973_v21, %v6093_v30  ;;  %v6047_v31 = vld [vmem:[#allocation5 + $0x130] sm:$0xf0]  ;;  %v6053_v30 = vld [vmem:[#allocation5 + $0x128] sm:$0xf]  ;;  %v6962_v21 = vld [vmem:[#allocation5 + $0x134] sm:$0xf0] }
 0x389   : > { %2603 = vmatpush.bf16.msrb.mxu3 %v2574_v37  ;;  %v6971_v37 = vld [vmem:[#allocation5 + $0x184] sm:$0xf]  ;;  %v6031_v39 = vld [vmem:[#allocation5 + $0x110] sm:$0xf0]  ;;  %v6958_v47 = vld [vmem:[#allocation5 + $0x114] sm:$0xf0] }
 0x38a   : > { %2994 = vmatpush.bf16.msra.mxu2 %v6114_v29  ;;  %v6961_v29 = vld [vmem:[#allocation5 + $0x12c] sm:$0xf0]  ;;  %v6955_v36 = vld [vmem:[#allocation5 + $0x104] sm:$0xf]  ;;  %v6039_v35 = vld [vmem:[#allocation5 + $0x118] sm:$0xf0] }
 0x38b   : > { %2623 = vmatpush.bf16.msra.mxu0 %v2573_v61  ;;  %2975 = vmatpush.bf16.msra.mxu1 %v6110_v3  ;;  %v6095_v61 = vld [vmem:[#allocation5 + $0x190] sm:$0xf0]  ;;  %v6071_v3 = vld [vmem:[#allocation5 + $0x158] sm:$0xf0]  ;;  %v6046_v33 = vor.u32 %v6961_v29, %v6045_v5  ;;  %v6992_v5 = vld [vmem:[%s9381_s15 + $0x68] sm:$0xff] }
 0x38c   : > { %v6074_v12 = vor.u32 %v6964_v55, %v6071_v3  ;;  %v6994_v40 = vld [vmem:[%s9381_s15 + $0x78] sm:$0xff] }
 0x38d   : > { %2604 = vmatpush.bf16.msrb.mxu3 %v2572_v50  ;;  %v6098_v50 = vor.u32 %v6971_v37, %v6095_v61  ;;  %v6054_v37 = vor.u32 %v6962_v21, %v6053_v30  ;;  %v6055_v61 = vld [vmem:[#allocation5 + $0x138] sm:$0xf0] }
 0x38e   : > { %6024 = vmatmul.msk.bf16.vlgmr.msra.gmra.mxu0 %vm9414_vm4, %v6838_v2 }
 0x38f   : > { %3030 = vmatpush.bf16.msrb.mxu0 %v6154_v51  ;;  %2976 = vmatpush.bf16.msra.mxu1 %v6094_v0  ;;  %v6960_v0 = vld [vmem:[#allocation5 + $0x12c] sm:$0xf] }
 0x390   : > { %6022 = vmatmul.msk.bf16.vlgmr.msrb.gmra.mxu3 %vm9414_vm4, %v6838_v2  ;;  %v6101_v2 = vld [vmem:[#allocation5 + $0x188] sm:$0xf]  ;;  %2995 = vmatpush.bf16.msra.mxu2 %v6098_v50  ;;  %v6029_v50 = vld [vmem:[#allocation5 + $0x100] sm:$0xf] }
 0x391   : > { %3011 = vmatpush.bf16.msra.mxu3 %v6150_v60  ;;  %v6079_v60 = vld [vmem:[#allocation5 + $0x170] sm:$0xf0] }
 0x392   : > { %v6082_v51 = vor.u32 %v6967_v9, %v6079_v60  ;;  %v6034_v9 = vor.u32 %v6955_v36, %v6031_v39  ;;  %v6956_v60 = vld [vmem:[#allocation5 + $0x10c] sm:$0xf] }
 0x393   : > { %3031 = vmatpush.bf16.msrb.mxu0 %v6138_v45  ;;  %2977 = vmatpush.bf16.msra.mxu1 %v6078_v46 }
 0x394   : > { %2996 = vmatpush.bf16.msra.mxu2 %v6082_v51 }
 0x395   : > { %3012 = vmatpush.bf16.msra.mxu3 %v6134_v56  ;;  %v6063_v56 = vld [vmem:[#allocation5 + $0x150] sm:$0xf0] }
 0x396   : > { %v6066_v8 = vor.u32 %v6963_v34, %v6063_v56  ;;  %v6993_v56 = vld [vmem:[%s9381_s15 + $0x70] sm:$0xff] }
 0x397   : > { %3032 = vmatpush.bf16.msrb.mxu0 %v6122_v7  ;;  %2978 = vmatpush.bf16.msra.mxu1 %v6062_v17 }
 0x398   : > { %2997 = vmatpush.bf16.msra.mxu2 %v6066_v8 }
 0x399   : > { %3013 = vmatpush.bf16.msra.mxu3 %v6118_v53  ;;  %v6959_v53 = vld [vmem:[#allocation5 + $0x124] sm:$0xf] }
 0x39a   : > { %v6050_v7 = vor.u32 %v6959_v53, %v6047_v31 }
 0x39b   : > { %3033 = vmatpush.bf16.msrb.mxu0 %v6106_v44  ;;  %2979 = vmatpush.bf16.msra.mxu1 %v6046_v33  ;;  %v6037_v44 = vld [vmem:[#allocation5 + $0x108] sm:$0xf]  ;;  %v6991_v33 = vld [vmem:[%s9381_s15 + $0x60] sm:$0xff] }
 0x39c   : > { %2998 = vmatpush.bf16.msra.mxu2 %v6050_v7  ;;  %v6038_v46 = vor.u32 %v6958_v47, %v6037_v44  ;;  %v6990_v47 = vld [vmem:[%s9381_s15 + $0x58] sm:$0xff] }
 0x39e   : > { %6025 = vmatmul.msk.bf16.gmra.mxu0 %vm9414_vm4, %v6839_v57 }
 0x39f   : > { %3034 = vmatpush.bf16.msrb.mxu0 %v6090_v41 }
 0x3a0   : > { %6023 = vmatmul.msk.bf16.gmra.mxu3 %vm9414_vm4, %v6839_v57  ;;  %v6974_v57 = vld [vmem:[#allocation5 + $0x194] sm:$0xf0]  ;;  %2999 = vmatpush.bf16.msra.mxu2 %v6034_v9 }
 0x3a1   : > { %v6102_v42 = vor.u32 %v6974_v57, %v6101_v2  ;;  %v6058_v2 = vor.u32 %v6960_v0, %v6055_v61  ;;  %v6957_v57 = vld [vmem:[#allocation5 + $0x10c] sm:$0xf0] }
 0x3a3   : > { %3014 = vmatpush.bf16.msra.mxu3 %v6102_v42  ;;  %3035 = vmatpush.bf16.msrb.mxu0 %v6074_v12  ;;  %v6030_v42 = vor.u32 %v6957_v57, %v6029_v50  ;;  %v8490_v57 = vld [vmem:[%s9384_s18] ss:$0 sm:$0xff] }
 0x3a5   : > { %2980 = vmatpush.bf16.msra.mxu1 %v6030_v42 }
 0x3a7   : > { %3015 = vmatpush.bf16.msra.mxu3 %v6086_v63  ;;  %3036 = vmatpush.bf16.msrb.mxu0 %v6058_v2  ;;  %v6042_v63 = vor.u32 %v6956_v60, %v6039_v35 }
 0x3a9   : > { %3123 = vmatpush.bf16.msrb.mxu1 %v6994_v40 }
 0x3ab   : > { %3016 = vmatpush.bf16.msra.mxu3 %v6070_v20  ;;  %3037 = vmatpush.bf16.msrb.mxu0 %v6042_v63 }
 0x3ad   : > { %3124 = vmatpush.bf16.msrb.mxu1 %v6993_v56 }
 0x3af   : > { %3017 = vmatpush.bf16.msra.mxu3 %v6054_v37 }
 0x3b1   : > { %3125 = vmatpush.bf16.msrb.mxu1 %v6992_v5 }
 0x3b3   : > { %3018 = vmatpush.bf16.msra.mxu3 %v6038_v46 }
 0x3b5   : > { %3126 = vmatpush.bf16.msrb.mxu1 %v6991_v33 }
 0x3b9   : > { %3127 = vmatpush.bf16.msrb.mxu1 %v6990_v47 }
 0x40b   : > { %v2625_v45 = vpop.f32.mrf.mxu0 }
 0x40c   : > { %v8461_v54 = vadd.f32 1e-06, %v2625_v45 }
 0x40e   : > { %7267 = vrcp.f32 %v8461_v54  ;;  %v2650_v15 = vand.u32 2147483648, %v8461_v54  ;;  %v2648_v17 = vand.u32 2147483647, %v8461_v54  ;;  %vm2644_vm0 = vweird.f32 %v8461_v54 }
 0x410   : > { %v2651_v8 = vor.u32 1.1754944e-38, %v2650_v15  ;;  %vm2649_vm2 = vcmp.eq.f32.partialorder %v2648_v17, 8.507059e+37  ;;  %v6988_v17 = vld [vmem:[%s9381_s15 + $0x48] sm:$0xff] }
 0x413   : > { %v2627_v62 = vpop.f32.mrf.mxu0  ;;  %v2606_v52 = vpop.f32.mrf.mxu3 }
 0x414   : > { %v7268_v6 = vpop.eup %7267  ;;  %v2636_v51 = vadd.f32 1e-06, %v2627_v62  ;;  %v2073_v62 = vadd.f32 %v8192_v14, %v8187_v10 }
 0x415   : > { %v2640_v27 = vmul.f32 %v7268_v6, %v8461_v54  ;;  %vm2645_vm9 = vweird.f32 %v7268_v6  ;;  %v8480_v54 = vld [vmem:[%s9383_s17] ss:$0 sm:$0xff] }
 0x416   : > { %7269 = vrcp.f32 %v2636_v51  ;;  %vm2646_vm6 = vmor %vm2644_vm0, %vm2645_vm9  ;;  %v2665_v31 = vand.u32 2147483648, %v2636_v51  ;;  %v2663_v21 = vand.u32 2147483647, %v2636_v51  ;;  %vm2659_vm13 = vweird.f32 %v2636_v51 }
 0x417   : > { %v2641_v41 = vsub.f32 1.0, %v2640_v27 }
 0x418   : > { %v2666_v36 = vor.u32 1.1754944e-38, %v2665_v31  ;;  %vm2664_vm8 = vcmp.eq.f32.partialorder %v2663_v21, 8.507059e+37 }
 0x419   : > { %v2642_v34 = vmul.f32 %v7268_v6, %v2641_v41 }
 0x41b   : > { %v2643_v19 = vadd.f32 %v7268_v6, %v2642_v34  ;;  %v2630_v23 = vpop.f32.mrf.mxu0  ;;  %v2608_v0 = vpop.f32.mrf.mxu3 }
 0x41c   : > { %v7270_v45 = vpop.eup %7269  ;;  %v2637_v20 = vadd.f32 1e-06, %v2630_v23 }
 0x41d   : > { %v2647_v55 = vsel %vm2646_vm6, %v7268_v6, %v2643_v19  ;;  %v2655_v3 = vmul.f32 %v7270_v45, %v2636_v51  ;;  %vm2660_vm3 = vweird.f32 %v7270_v45  ;;  %v6989_v6 = vld [vmem:[%s9381_s15 + $0x50] sm:$0xff] }
 0x41e   : > { %v2652_v12 = vsel %vm2649_vm2, %v2651_v8, %v2647_v55  ;;  %7271 = vrcp.f32 %v2637_v20  ;;  %vm2661_vm1 = vmor %vm2659_vm13, %vm2660_vm3  ;;  %v2680_v35 = vand.u32 2147483648, %v2637_v20  ;;  %v2678_v27 = vand.u32 2147483647, %v2637_v20  ;;  %3128 = vmatpush.bf16.msrb.mxu1 %v6989_v6 }
 0x41f   : > { %v2653_v29 = vmul.f32 %v2652_v12, %v2606_v52  ;;  %v2656_v53 = vsub.f32 1.0, %v2655_v3  ;;  %vm2674_vm12 = vweird.f32 %v2637_v20 }
 0x420   : > { %v2681_v34 = vor.u32 1.1754944e-38, %v2680_v35  ;;  %vm2679_vm14 = vcmp.eq.f32.partialorder %v2678_v27, 8.507059e+37 }
 0x421   : > { %v2699_v7 = vadd.f32 %v2653_v29, %v8190_v59  ;;  %v2657_v30 = vmul.f32 %v7270_v45, %v2656_v53  ;;  %v6987_v29 = vld [vmem:[%s9381_s15 + $0x40] sm:$0xff] }
 0x422   : > { %3129 = vmatpush.bf16.msrb.mxu1 %v6988_v17 }
 0x423   : > { %v2658_v37 = vadd.f32 %v7270_v45, %v2657_v30  ;;  %v2632_v61 = vpop.f32.mrf.mxu0  ;;  %v2707_v50 = vmul.f32 %v8480_v54, %v2699_v7  ;;  %v2611_v15 = vpop.f32.mrf.mxu3 }
 0x424   : > { %v7272_v2 = vpop.eup %7271  ;;  %v2638_v42 = vadd.f32 1e-06, %v2632_v61 }
 0x425   : > { %v2662_v59 = vsel %vm2661_vm1, %v7270_v45, %v2658_v37  ;;  %v2670_v39 = vmul.f32 %v7272_v2, %v2637_v20  ;;  %v2715_v60 = vadd.f32 %v8490_v57, %v2707_v50  ;;  %vm2675_vm11 = vweird.f32 %v7272_v2 }
 0x426   : > { %v2667_v44 = vsel %vm2664_vm8, %v2666_v36, %v2662_v59  ;;  %7273 = vrcp.f32 %v2638_v42  ;;  %vm2676_vm15 = vmor %vm2674_vm12, %vm2675_vm11  ;;  %v2693_v12 = vand.u32 2147483647, %v2638_v42  ;;  %v2695_v5 = vand.u32 2147483648, %v2638_v42  ;;  %3130 = vmatpush.bf16.msrb.mxu1 %v6987_v29 }
 0x427   : > { %v2668_v9 = vmul.f32 %v2667_v44, %v2608_v0  ;;  %v2671_v46 = vsub.f32 1.0, %v2670_v39  ;;  %v2719_v14 = vmax.f32 %v2715_v60, 0.0  ;;  %vm2689_vm10 = vweird.f32 %v2638_v42  ;;  %v7221_v44 = vld [vmem:[%s9385_s19] ss:$0 sm:$0xff] }
 0x428   : > { %v2696_v30 = vor.u32 1.1754944e-38, %v2695_v5  ;;  %vm2694_vm0 = vcmp.eq.f32.partialorder %v2693_v12, 8.507059e+37  ;;  %v2729_v6 = vmul.f32 %v7221_v44, %v8254_v48  ;;  %v9476_v12 = vld [vmem:[#allocation25_spill] sm:$0xff] }
 0x429   : > { %v2700_v51 = vadd.f32 %v2668_v9, %v2073_v62  ;;  %v2672_v63 = vmul.f32 %v7272_v2, %v2671_v46  ;;  %v8507_v20 = vadd.f32 %v2719_v14, %v8164_v43 }
 0x42b   : > { %v2708_v40 = vmul.f32 %v8480_v54, %v2700_v51  ;;  %v2673_v41 = vadd.f32 %v7272_v2, %v2672_v63 }
 0x42c   : > { %v7274_v52 = vpop.eup %7273 }
 0x42d   : > { %v2716_v56 = vadd.f32 %v8490_v57, %v2708_v40  ;;  %v2677_v19 = vsel %vm2676_vm15, %v7272_v2, %v2673_v41  ;;  %v2685_v23 = vmul.f32 %v7274_v52, %v2638_v42  ;;  %vm2690_vm5 = vweird.f32 %v7274_v52 }
 0x42e   : > { %v2682_v45 = vsel %vm2679_vm14, %v2681_v34, %v2677_v19  ;;  %vm2691_vm9 = vmor %vm2689_vm10, %vm2690_vm5 }
 0x42f   : > { %v2720_v8 = vmax.f32 %v2716_v56, 0.0  ;;  %v2683_v55 = vmul.f32 %v2682_v45, %v2611_v15  ;;  %v2686_v3 = vsub.f32 1.0, %v2685_v23  ;;  %v9475_v23 = vld [vmem:[#allocation26_spill] sm:$0xff] }
 0x430   : > { %v2733_v45 = vmul.f32 %v7221_v44, %v9475_v23  ;;  %v7362_v23 = vld [vmem:[%s8201_s9 + $0x8] sm:$0xff] }
 0x431   : > { %v8513_v53 = vadd.f32 %v2720_v8, %v8166_v18  ;;  %v2701_v31 = vadd.f32 %v2683_v55, %v8195_v32  ;;  %v2687_v33 = vmul.f32 %v7274_v52, %v2686_v3  ;;  %v2613_v18 = vpop.f32.mrf.mxu3  ;;  %v2078_v32 = vadd.f32 %v8229_v1, %v8187_v10 }
 0x432   : > { %v2728_v10 = vmul.f32 %v7221_v44, %v8248_v49 }
 0x433   : > { %v2688_v7 = vadd.f32 %v7274_v52, %v2687_v33  ;;  %v2767_v43 = vpack.c.bf16 %v8513_v53, %v8507_v20  ;;  %v2709_v21 = vmul.f32 %v8480_v54, %v2701_v31  ;;  %v6026_v33 = vld [vmem:[%s9380_s14 + $0x4] sm:$0xf] }
 0x435   : > { %v2692_v0 = vsel %vm2691_vm9, %v7274_v52, %v2688_v7  ;;  %2981 = vmatmul.bf16.vlgmr.msra.gmra.mxu1 %v2767_v43  ;;  %3000 = vmatmul.bf16.vlgmr.msra.gmra.mxu2 %v2767_v43  ;;  %v2717_v2 = vadd.f32 %v8490_v57, %v2709_v21  ;;  %v2731_v52 = vmul.f32 %v7221_v44, %v8258_v4  ;;  %v8581_v7 = vperm.slane %v6026_v33, 0 }
 0x436   : > { %v2697_v37 = vsel %vm2694_vm0, %v2696_v30, %v2692_v0  ;;  %3019 = vmatmul.bf16.vlgmr.msra.gmra.mxu3 %v2767_v43  ;;  %3038 = vmatmul.bf16.vlgmr.msrb.gmra.mxu0 %v2767_v43 }
 0x437   : > { %v2698_v61 = vmul.f32 %v2697_v37, %v2613_v18  ;;  %v2721_v42 = vmax.f32 %v2717_v2, 0.0 }
 0x439   : > { %v2702_v50 = vadd.f32 %v2698_v61, %v2078_v32  ;;  %v8528_v47 = vadd.f32 %v2721_v42, %v8170_v25 }
 0x43b   : > { %v2710_v36 = vmul.f32 %v8480_v54, %v2702_v50  ;;  %v2727_v54 = vmul.f32 %v7221_v44, %v8237_v13  ;;  %v2730_v13 = vmul.f32 %v7221_v44, %v8261_v11 }
 0x43d   : > { %v2718_v59 = vadd.f32 %v8490_v57, %v2710_v36  ;;  %v7222_v57 = vld [vmem:[%s9386_s20] ss:$0 sm:$0xff] }
 0x43e   : > { %v2740_v25 = vadd.f32 %v7222_v57, %v2728_v10  ;;  %v2739_v9 = vadd.f32 %v7222_v57, %v2727_v54  ;;  %v2742_v51 = vadd.f32 %v7222_v57, %v2730_v13  ;;  %v2741_v63 = vadd.f32 %v7222_v57, %v2729_v6 }
 0x43f   : > { %v2722_v39 = vmax.f32 %v2718_v59, 0.0  ;;  %v2743_v14 = vadd.f32 %v7222_v57, %v2731_v52  ;;  %v2745_v8 = vadd.f32 %v7222_v57, %v2733_v45  ;;  %v7363_v45 = vld [vmem:[%s8208_s2 + $0x10] sm:$0xff] }
 0x440   : > { %v2748_v46 = vmax.f32 %v2740_v25, 0.0  ;;  %v2750_v27 = vmax.f32 %v2742_v51, 0.0  ;;  %v2749_v40 = vmax.f32 %v2741_v63, 0.0 }
 0x441   : > { %v8531_v62 = vadd.f32 %v2722_v39, %v8172_v58  ;;  %v2747_v58 = vmax.f32 %v2739_v9, 0.0  ;;  %v2751_v34 = vmax.f32 %v2743_v14, 0.0  ;;  %v2753_v3 = vmax.f32 %v2745_v8, 0.0  ;;  %v7365_v8 = vld [vmem:[%s8208_s2 + $0x18] sm:$0xff] }
 0x442   : > { %v8541_v60 = vadd.f32 %v2748_v46, %v8098_v24  ;;  %v8551_v41 = vadd.f32 %v2750_v27, %v8106_v28  ;;  %v8554_v24 = vadd.f32 %v2749_v40, %v8102_v26  ;;  %v9472_v28 = vld [vmem:[#allocation23_spill] sm:$0xff]  ;;  %v2806_v9 = vperm.slane %v6026_v33, 1 }
 0x443   : > { %v2768_v1 = vpack.c.bf16 %v8531_v62, %v8528_v47  ;;  %v8544_v49 = vadd.f32 %v2747_v58, %v8094_v22  ;;  %v2732_v22 = vmul.f32 %v7221_v44, %v8264_v16  ;;  %v8564_v56 = vadd.f32 %v2751_v34, %v9472_v28  ;;  %v9474_v26 = vld [vmem:[#allocation27_spill] sm:$0xff] }
 0x444   : > { %v3050_v11 = vpack.c.bf16 %v8551_v41, %v8554_v24  ;;  %v2734_v19 = vmul.f32 %v7221_v44, %v9474_v26  ;;  %v2808_v44 = vperm.slane %v6026_v33, 3  ;;  %v2807_v58 = vperm.slane %v6026_v33, 2  ;;  %v7359_v28 = vld [vmem:[%s8208_s2] sm:$0xff] }
 0x445   : > { %2986 = vmatmul.bf16.gmra.mxu1 %v2768_v1  ;;  %3005 = vmatmul.bf16.gmra.mxu2 %v2768_v1  ;;  %v3049_v35 = vpack.c.bf16 %v8541_v60, %v8544_v49  ;;  %v2744_v48 = vadd.f32 %v7222_v57, %v2732_v22  ;;  %9473 = vst [vmem:[#allocation23_spill] sm:$0xff] %v8564_v56 }
 0x446   : > { %3024 = vmatmul.bf16.gmra.mxu3 %v2768_v1  ;;  %3043 = vmatmul.bf16.gmra.mxu0 %v2768_v1  ;;  %v2746_v4 = vadd.f32 %v7222_v57, %v2734_v19  ;;  %v7360_v19 = vld [vmem:[%s8201_s9] sm:$0xff] }
 0x447   : > { %v2752_v15 = vmax.f32 %v2744_v48, 0.0 }
 0x448   : > { %v2754_v55 = vmax.f32 %v2746_v4, 0.0  ;;  %v7364_v4 = vld [vmem:[%s8201_s9 + $0x10] sm:$0xff] }
 0x449   : > { %v8561_v17 = vadd.f32 %v2752_v15, %v8114_v38  ;;  %v9478_v38 = vld [vmem:[#allocation24_spill] sm:$0xff] }
 0x44a   : > { %v8571_v5 = vadd.f32 %v2754_v55, %v9476_v12  ;;  %v8574_v29 = vadd.f32 %v2753_v3, %v9478_v38  ;;  %v7366_v55 = vld [vmem:[%s8201_s9 + $0x18] sm:$0xff] }
 0x44b   : > { %v3051_v16 = vpack.c.bf16 %v8561_v17, %v8564_v56 }
 0x44c   : > { %9477 = vst [vmem:[#allocation27_spill] sm:$0xff] %v8571_v5  ;;  %v3052_v31 = vpack.c.bf16 %v8571_v5, %v8574_v29  ;;  %v6355_v5 = vld [vmem:[#allocation5 + $0x2e8] sm:$0xf] }
 0x44d   : > { %9479 = vst [vmem:[#allocation26_spill] sm:$0xff] %v8574_v29 }
 0x455   : > { %3131 = vmatmul.bf16.vlgmr.msrb.gmra.mxu1 %v3049_v35 }
 0x465   : > { %3136 = vmatmul.bf16.gmra.mxu1 %v3050_v11 }
 0x475   : > { %3141 = vmatmul.bf16.gmra.mxu1 %v3051_v16  ;;  %v7361_v16 = vld [vmem:[%s8208_s2 + $0x8] sm:$0xff] }
 0x485   : > { %3146 = vmatmul.bf16.gmra.mxu1 %v3052_v31 }
 0x4b2   : > { %v2982_v43 = vpop.f32.mrf.mxu1 }
 0x4b3   : > { %v8584_v30 = vadd.f32 %v2982_v43, %v8581_v7  ;;  %v3039_v21 = vpop.f32.mrf.mxu0  ;;  %v8616_v43 = vld [vmem:[%s9382_s16 + $0x1] ss:$0 sm:$0xff] }
 0x4b4   : > { %v3040_v46 = vadd.f32 %v3039_v21, %v2808_v44 }
 0x4b8   : > { %v3001_v0 = vpop.f32.mrf.mxu2 }
 0x4b9   : > { %v3020_v18 = vpop.f32.mrf.mxu3  ;;  %v3002_v14 = vadd.f32 %v3001_v0, %v2806_v9 }
 0x4ba   : > { %v8586_v37 = vpop.f32.mrf.mxu1  ;;  %v3021_v15 = vadd.f32 %v3020_v18, %v2807_v58 }
 0x4bb   : > { %v3041_v32 = vpop.f32.mrf.mxu0 }
 0x4bc   : > { %v3042_v57 = vadd.f32 %v3041_v32, %v2808_v44 }
 0x4be   : > { %v3214_v63 = vpack.c.bf16 %v3042_v57, %v3040_v46 }
 0x4c0   : > { %v3003_v61 = vpop.f32.mrf.mxu2 }
 0x4c1   : > { %v3022_v2 = vpop.f32.mrf.mxu3  ;;  %v3004_v22 = vadd.f32 %v3003_v61, %v2806_v9 }
 0x4c2   : > { %v2987_v50 = vpop.f32.mrf.mxu1  ;;  %v3023_v52 = vadd.f32 %v3022_v2, %v2807_v58 }
 0x4c3   : > { %v8589_v36 = vadd.f32 %v2987_v50, %v8581_v7  ;;  %v3044_v42 = vpop.f32.mrf.mxu0  ;;  %v3152_v34 = vpack.c.bf16 %v3004_v22, %v3002_v14 }
 0x4c4   : > { %v3045_v1 = vadd.f32 %v3044_v42, %v2808_v44  ;;  %v3153_v26 = vpack.c.bf16 %v3023_v52, %v3021_v15 }
 0x4c8   : > { %v3006_v59 = vpop.f32.mrf.mxu2 }
 0x4c9   : > { %v3025_v39 = vpop.f32.mrf.mxu3  ;;  %v3007_v35 = vadd.f32 %v3006_v59, %v2806_v9 }
 0x4ca   : > { %v3026_v27 = vadd.f32 %v3025_v39, %v2807_v58  ;;  %v8611_v3 = vpop.f32.mrf.mxu1 }
 0x4cb   : > { %v3046_v10 = vpop.f32.mrf.mxu0 }
 0x4cc   : > { %v3047_v54 = vadd.f32 %v3046_v10, %v2808_v44 }
 0x4ce   : > { %v3215_v25 = vpack.c.bf16 %v3047_v54, %v3045_v1 }
 0x4d0   : > { %3222 = vmatpush.bf16.msra.mxu0 %v3215_v25  ;;  %v3008_v13 = vpop.f32.mrf.mxu2 }
 0x4d1   : > { %v3009_v6 = vadd.f32 %v3008_v13, %v2806_v9  ;;  %v3027_v51 = vpop.f32.mrf.mxu3 }
 0x4d2   : > { %v3028_v40 = vadd.f32 %v3027_v51, %v2807_v58  ;;  %v3132_v12 = vpop.f32.mrf.mxu1 }
 0x4d3   : > { %v3154_v11 = vpack.c.bf16 %v3009_v6, %v3007_v35  ;;  %v3133_v0 = vadd.f32 %v8616_v43, %v3132_v12 }
 0x4d4   : > { %v3155_v48 = vpack.c.bf16 %v3028_v40, %v3026_v27  ;;  %3223 = vmatpush.bf16.msra.mxu0 %v3214_v63 }
 0x4d5   : > { %3162 = vmatpush.bf16.msrb.mxu2 %v3154_v11 }
 0x4d6   : > { %3191 = vmatpush.bf16.msrb.mxu3 %v3155_v48 }
 0x4d7   : > { %6212 = vmatmul.msk.bf16.vlgmr.msra.gmra.mxu0 %vm2262_vm7, %v7359_v28 }
 0x4d9   : > { %3163 = vmatpush.bf16.msrb.mxu2 %v3152_v34 }
 0x4da   : > { %3192 = vmatpush.bf16.msrb.mxu3 %v3153_v26  ;;  %v3134_v31 = vpop.f32.mrf.mxu1 }
 0x4db   : > { %v3135_v14 = vadd.f32 %v8616_v43, %v3134_v31 }
 0x4dc   : > { %6204 = vmatmul.msk.bf16.vlgmr.msrb.gmra.mxu2 %vm2262_vm7, %v7360_v19 }
 0x4dd   : > { %6208 = vmatmul.msk.bf16.vlgmr.msrb.gmra.mxu3 %vm2262_vm7, %v7360_v19 }
 0x4e2   : > { %v3137_v61 = vpop.f32.mrf.mxu1 }
 0x4e7   : > { %6213 = vmatmul.msk.bf16.gmra.mxu0 %vm2262_vm7, %v7361_v16  ;;  %v3138_v16 = vadd.f32 %v8616_v43, %v3137_v61 }
 0x4ea   : > { %v3139_v39 = vpop.f32.mrf.mxu1 }
 0x4eb   : > { %v3140_v12 = vadd.f32 %v8616_v43, %v3139_v39 }
 0x4ec   : > { %6205 = vmatmul.msk.bf16.gmra.mxu2 %vm2262_vm7, %v7362_v23 }
 0x4ed   : > { %6209 = vmatmul.msk.bf16.gmra.mxu3 %vm2262_vm7, %v7362_v23 }
 0x4f2   : > { %v3142_v9 = vpop.f32.mrf.mxu1 }
 0x4f7   : > { %6214 = vmatmul.msk.bf16.gmra.mxu0 %vm2262_vm7, %v7363_v45 }
 0x4fa   : > { %v3144_v34 = vpop.f32.mrf.mxu1 }
 0x4fc   : > { %6206 = vmatmul.msk.bf16.gmra.mxu2 %vm2262_vm7, %v7364_v4 }
 0x4fd   : > { %6210 = vmatmul.msk.bf16.gmra.mxu3 %vm2262_vm7, %v7364_v4 }
 0x507   : > { %6215 = vmatmul.msk.bf16.gmra.mxu0 %vm2262_vm7, %v7365_v8  ;;  %v3143_v8 = vadd.f32 %v8616_v43, %v3142_v9 }
 0x50c   : > { %6207 = vmatmul.msk.bf16.gmra.mxu2 %vm2262_vm7, %v7366_v55 }
 0x50d   : > { %6211 = vmatmul.msk.bf16.gmra.mxu3 %vm2262_vm7, %v7366_v55 }
 0x554   : > { %v3225_v38 = vpop.f32.mrf.mxu0 }
 0x55c   : > { %v3227_v33 = vpop.f32.mrf.mxu0 }
 0x55f   : > { %v3165_v10 = vpop.f32.mrf.mxu2 }
 0x560   : > { %v3194_v21 = vpop.f32.mrf.mxu3 }
 0x561   : > { %v3245_v18 = vadd.f32 %v3225_v38, %v3194_v21  ;;  %v3145_v21 = vadd.f32 %v8616_v43, %v3144_v34 }
 0x563   : > { %v8619_v32 = vadd.f32 %v3245_v18, %v3133_v0 }
 0x564   : > { %v3230_v50 = vpop.f32.mrf.mxu0 }
 0x565   : > { %v6216_v2 = vmul.f32 -1.442695, %v8619_v32 }
 0x567   : > { %7275 = vpow2.f32 %v6216_v2  ;;  %v8622_v13 = vpop.f32.mrf.mxu2 }
 0x568   : > { %v3196_v42 = vpop.f32.mrf.mxu3 }
 0x569   : > { %v3246_v22 = vadd.f32 %v3227_v33, %v3196_v42 }
 0x56b   : > { %v8630_v26 = vadd.f32 %v3246_v22, %v3135_v14 }
 0x56c   : > { %v3232_v54 = vpop.f32.mrf.mxu0 }
 0x56d   : > { %v7276_v59 = vpop.eup %7275  ;;  %v6217_v38 = vmul.f32 -1.442695, %v8630_v26 }
 0x56e   : > { %v3285_v44 = vadd.f32 1.0, %v7276_v59 }
 0x56f   : > { %v8632_v19 = vpop.f32.mrf.mxu2 }
 0x570   : > { %7277 = vrcp.f32 %v3285_v44  ;;  %v3199_v1 = vpop.f32.mrf.mxu3  ;;  %v3304_v6 = vand.u32 2147483648, %v3285_v44  ;;  %v3302_v63 = vand.u32 2147483647, %v3285_v44  ;;  %vm3298_vm2 = vweird.f32 %v3285_v44 }
 0x571   : > { %v3247_v28 = vadd.f32 %v3230_v50, %v3199_v1  ;;  %7279 = vpow2.f32 %v6217_v38  ;;  %v3147_v50 = vpop.f32.mrf.mxu1 }
 0x572   : > { %v3305_v40 = vor.u32 1.1754944e-38, %v3304_v6  ;;  %vm3303_vm13 = vcmp.eq.f32.partialorder %v3302_v63, 8.507059e+37 }
 0x573   : > { %v8636_v55 = vadd.f32 %v3247_v28, %v3138_v16 }
 0x574   : > { %v3235_v35 = vpop.f32.mrf.mxu0 }
 0x575   : > { %v6218_v61 = vmul.f32 -1.442695, %v8636_v55 }
 0x576   : > { %v7278_v57 = vpop.eup %7277 }
 0x577   : > { %v3294_v25 = vmul.f32 %v7278_v57, %v3285_v44  ;;  %vm3299_vm6 = vweird.f32 %v7278_v57  ;;  %v8651_v44 = vpop.f32.mrf.mxu2  ;;  %7281 = vpow2.f32 %v6218_v61 }
 0x578   : > { %v3201_v46 = vpop.f32.mrf.mxu3  ;;  %vm3300_vm3 = vmor %vm3298_vm2, %vm3299_vm6 }
 0x579   : > { %v3295_v58 = vsub.f32 1.0, %v3294_v25  ;;  %v3248_v4 = vadd.f32 %v3232_v54, %v3201_v46  ;;  %v7280_v54 = vpop.eup %7279  ;;  %v3149_v63 = vpop.f32.mrf.mxu1 }
 0x57a   : > { %v3150_v34 = vadd.f32 %v8616_v43, %v3149_v63 }
 0x57b   : > { %v3296_v51 = vmul.f32 %v7278_v57, %v3295_v58  ;;  %v8643_v0 = vadd.f32 %v3248_v4, %v3140_v12  ;;  %v8656_v58 = vadd.f32 1.0, %v7280_v54 }
 0x57c   : > { %v3237_v45 = vpop.f32.mrf.mxu0 }
 0x57d   : > { %v3297_v27 = vadd.f32 %v7278_v57, %v3296_v51  ;;  %v6219_v59 = vmul.f32 -1.442695, %v8643_v0  ;;  %v7282_v46 = vpop.eup %7281 }
 0x57f   : > { %v3301_v11 = vsel %vm3300_vm3, %v7278_v57, %v3297_v27  ;;  %v3148_v57 = vadd.f32 %v8616_v43, %v3147_v50  ;;  %v8661_v22 = vpop.f32.mrf.mxu2  ;;  %vm3313_vm3 = vweird.f32 %v8656_v58 }
 0x580   : > { %v8624_v52 = vsel %vm3303_vm13, %v3305_v40, %v3301_v11  ;;  %v3204_v48 = vpop.f32.mrf.mxu3  ;;  %v8659_v40 = vadd.f32 1.0, %v7282_v46 }
 0x581   : > { %v8628_v15 = vmul.f32 %v8624_v52, %v3165_v10  ;;  %v3249_v23 = vadd.f32 %v3235_v35, %v3204_v48 }
 0x582   : > { %vm3328_vm0 = vweird.f32 %v8659_v40 }
 0x583   : > { %v8640_v31 = vadd.f32 %v3249_v23, %v3143_v8 }
 0x584   : > { %v3240_v10 = vpop.f32.mrf.mxu0 }
 0x585   : > { %v6220_v42 = vmul.f32 -1.442695, %v8640_v31 }
 0x588   : > { %v3206_v33 = vpop.f32.mrf.mxu3 }
 0x589   : > { %v3250_v18 = vadd.f32 %v3237_v45, %v3206_v33 }
 0x58b   : > { %v8646_v2 = vadd.f32 %v3250_v18, %v3145_v21  ;;  %v8689_v18 = vpop.f32.mrf.mxu2 }
 0x58c   : > { %v3242_v48 = vpop.f32.mrf.mxu0 }
 0x58d   : > { %v6221_v39 = vmul.f32 -1.442695, %v8646_v2 }
 0x58f   : > { %7283 = vpow2.f32 %v6221_v39 }
 0x590   : > { %7285 = vpow2.f32 %v6220_v42  ;;  %v3209_v1 = vpop.f32.mrf.mxu3 }
 0x591   : > { %7287 = vpow2.f32 %v6219_v59  ;;  %v3251_v25 = vadd.f32 %v3240_v10, %v3209_v1 }
 0x593   : > { %v8654_v9 = vadd.f32 %v3251_v25, %v3148_v57 }
 0x595   : > { %9480 = vst [vmem:[#allocation25_spill] sm:$0xff] %v8654_v9  ;;  %v7284_v35 = vpop.eup %7283  ;;  %v6222_v6 = vmul.f32 -1.442695, %v8654_v9 }
 0x596   : > { %v7286_v51 = vpop.eup %7285  ;;  %v8664_v11 = vadd.f32 1.0, %v7284_v35 }
 0x597   : > { %v7288_v27 = vpop.eup %7287  ;;  %7289 = vpow2.f32 %v6222_v6  ;;  %v8667_v28 = vadd.f32 1.0, %v7286_v51 }
 0x598   : > { %7291 = vrcp.f32 %v8656_v58  ;;  %v3211_v14 = vpop.f32.mrf.mxu3  ;;  %v8669_v23 = vadd.f32 1.0, %v7288_v27  ;;  %vm3373_vm5 = vweird.f32 %v8664_v11 }
 0x599   : > { %v3252_v16 = vadd.f32 %v3242_v48, %v3211_v14  ;;  %7293 = vrcp.f32 %v8659_v40  ;;  %vm3358_vm8 = vweird.f32 %v8667_v28  ;;  %v3364_v29 = vand.u32 2147483648, %v8667_v28 }
 0x59a   : > { %7295 = vrcp.f32 %v8664_v11  ;;  %vm3343_vm12 = vweird.f32 %v8669_v23 }
 0x59b   : > { %v8672_v45 = vadd.f32 %v3252_v16, %v3150_v34  ;;  %7297 = vrcp.f32 %v8667_v28  ;;  %v3379_v34 = vand.u32 2147483648, %v8664_v11 }
 0x59c   : > { %7299 = vrcp.f32 %v8669_v23 }
 0x59d   : > { %9481 = vst [vmem:[#allocation24_spill] sm:$0xff] %v8672_v45  ;;  %v7290_v4 = vpop.eup %7289  ;;  %v6223_v8 = vmul.f32 -1.442695, %v8672_v45 }
 0x59e   : > { %v8677_v12 = vpop.eup %7291  ;;  %v8680_v43 = vadd.f32 1.0, %v7290_v4  ;;  %v8714_v4 = vpop.f32.mrf.mxu2 }
 0x59f   : > { %7301 = vpow2.f32 %v6223_v8  ;;  %v8683_v38 = vpop.eup %7293  ;;  %v3309_v33 = vmul.f32 %v8677_v12, %v8656_v58  ;;  %vm3314_vm9 = vweird.f32 %v8677_v12 }
 0x5a0   : > { %7303 = vrcp.f32 %v8680_v43  ;;  %v8687_v21 = vpop.eup %7295  ;;  %v3324_v1 = vmul.f32 %v8683_v38, %v8659_v40  ;;  %vm3329_vm11 = vweird.f32 %v8683_v38  ;;  %vm3388_vm6 = vweird.f32 %v8680_v43 }
 0x5a1   : > { %v8691_v61 = vpop.eup %7297  ;;  %v3310_v59 = vsub.f32 1.0, %v3309_v33  ;;  %v3369_v39 = vmul.f32 %v8687_v21, %v8664_v11  ;;  %vm3374_vm10 = vweird.f32 %v8687_v21 }
 0x5a2   : > { %v8693_v50 = vpop.eup %7299  ;;  %v3354_v57 = vmul.f32 %v8691_v61, %v8667_v28  ;;  %v3325_v63 = vsub.f32 1.0, %v3324_v1  ;;  %vm3359_vm14 = vweird.f32 %v8691_v61 }
 0x5a3   : > { %v3339_v25 = vmul.f32 %v8693_v50, %v8669_v23  ;;  %v3311_v35 = vmul.f32 %v8677_v12, %v3310_v59  ;;  %v3370_v6 = vsub.f32 1.0, %v3369_v39  ;;  %vm3344_vm1 = vweird.f32 %v8693_v50 }
 0x5a4   : > { %v3355_v27 = vsub.f32 1.0, %v3354_v57  ;;  %v3326_v1 = vmul.f32 %v8683_v38, %v3325_v63  ;;  %v3392_v63 = vand.u32 2147483647, %v8680_v43 }
 0x5a5   : > { %v7302_v42 = vpop.eup %7301  ;;  %v3340_v48 = vsub.f32 1.0, %v3339_v25  ;;  %v8717_v8 = vadd.f32 %v8677_v12, %v3311_v35  ;;  %v3371_v59 = vmul.f32 %v8687_v21, %v3370_v6  ;;  %v3394_v6 = vand.u32 2147483648, %v8680_v43 }
 0x5a6   : > { %v8697_v10 = vpop.eup %7303  ;;  %v8701_v54 = vadd.f32 1.0, %v7302_v42  ;;  %v3356_v57 = vmul.f32 %v8691_v61, %v3355_v27  ;;  %v3362_v42 = vand.u32 2147483647, %v8667_v28  ;;  %v3182_v9 = vpop.f32.mrf.mxu2 }
 0x5a7   : > { %v3384_v46 = vmul.f32 %v8697_v10, %v8680_v43  ;;  %v3341_v25 = vmul.f32 %v8693_v50, %v3340_v48  ;;  %vm3389_vm15 = vweird.f32 %v8697_v10  ;;  %v3395_v16 = vor.u32 1.1754944e-38, %v3394_v6 }
 0x5a8   : > { %7305 = vrcp.f32 %v8701_v54  ;;  %v3357_v48 = vadd.f32 %v8691_v61, %v3356_v57  ;;  %vm8746_vm2 = vmor %vm3388_vm6, %vm3389_vm15  ;;  %v3409_v33 = vand.u32 2147483648, %v8701_v54  ;;  %v3407_v57 = vand.u32 2147483647, %v8701_v54 }
 0x5a9   : > { %v3385_v51 = vsub.f32 1.0, %v3384_v46  ;;  %vm8763_vm15 = vmor %vm3373_vm5, %vm3374_vm10  ;;  %vm3403_vm5 = vweird.f32 %v8701_v54 }
 0x5aa   : > { %vm8771_vm6 = vmor %vm3358_vm8, %vm3359_vm14  ;;  %v3410_v28 = vor.u32 1.1754944e-38, %v3409_v33  ;;  %vm3408_vm14 = vcmp.eq.f32.partialorder %v3407_v57, 8.507059e+37 }
 0x5ab   : > { %v3386_v14 = vmul.f32 %v8697_v10, %v3385_v51  ;;  %v3372_v51 = vadd.f32 %v8687_v21, %v3371_v59  ;;  %v3361_v45 = vsel %vm8771_vm6, %v8691_v61, %v3357_v48 }
 0x5ad   : > { %v3387_v46 = vadd.f32 %v8697_v10, %v3386_v14  ;;  %v3377_v14 = vand.u32 2147483647, %v8664_v11  ;;  %v3327_v11 = vadd.f32 %v8683_v38, %v3326_v1 }
 0x5ae   : > { %v7306_v39 = vpop.eup %7305 }
 0x5af   : > { %v3399_v35 = vmul.f32 %v7306_v39, %v8701_v54  ;;  %v3391_v43 = vsel %vm8746_vm2, %v8697_v10, %v3387_v46  ;;  %vm3404_vm13 = vweird.f32 %v7306_v39  ;;  %vm3393_vm2 = vcmp.eq.f32.partialorder %v3392_v63, 8.507059e+37 }
 0x5b0   : > { %v3396_v6 = vsel %vm3393_vm2, %v3395_v16, %v3391_v43  ;;  %vm3405_vm10 = vmor %vm3403_vm5, %vm3404_vm13  ;;  %vm3378_vm8 = vcmp.eq.f32.partialorder %v3377_v14, 8.507059e+37  ;;  %vm3363_vm2 = vcmp.eq.f32.partialorder %v3362_v42, 8.507059e+37  ;;  %v3319_v63 = vand.u32 2147483648, %v8656_v58 }
 0x5b1   : > { %v3400_v27 = vsub.f32 1.0, %v3399_v35  ;;  %v3342_v35 = vadd.f32 %v8693_v50, %v3341_v25  ;;  %v3376_v25 = vsel %vm8763_vm15, %v8687_v21, %v3372_v51  ;;  %vm8788_vm15 = vmor %vm3343_vm12, %vm3344_vm1  ;;  %v3365_v21 = vor.u32 1.1754944e-38, %v3364_v29  ;;  %v6333_v29 = vld [vmem:[#allocation5 + $0x2d0] sm:$0xf0] }
 0x5b2   : > { %v3419_v61 = vmul.f32 %v3396_v6, %v8714_v4  ;;  %v3317_v51 = vand.u32 2147483647, %v8656_v58  ;;  %vm8802_vm1 = vmor %vm3328_vm0, %vm3329_vm11  ;;  %v9493_v4 = vand.u32 2147483647, %v8669_v23  ;;  %v9494_v43 = vand.u32 2147483648, %v8659_v40 }
 0x5b3   : > { %v3401_v59 = vmul.f32 %v7306_v39, %v3400_v27  ;;  %v3380_v27 = vor.u32 1.1754944e-38, %v3379_v34  ;;  %v3346_v33 = vsel %vm8788_vm15, %v8693_v50, %v3342_v35  ;;  %v3366_v50 = vsel %vm3363_vm2, %v3365_v21, %v3361_v45  ;;  %vm3315_vm11 = vmor %vm3313_vm3, %vm3314_vm9  ;;  %v7026_v21 = vld [vmem:[#allocation5 + $0x2f4] sm:$0xf0] }
 0x5b4   : > { %vm3348_vm12 = vcmp.eq.f32.partialorder %v9493_v4, 8.507059e+37  ;;  %v3316_v57 = vsel %vm3315_vm11, %v8677_v12, %v8717_v8  ;;  %v3320_v35 = vor.u32 1.1754944e-38, %v3319_v63  ;;  %vm3318_vm13 = vcmp.eq.f32.partialorder %v3317_v51, 8.507059e+37  ;;  %v7019_v51 = vld [vmem:[#allocation5 + $0x2c4] sm:$0xf] }
 0x5b5   : > { %v3402_v46 = vadd.f32 %v7306_v39, %v3401_v59  ;;  %v3381_v54 = vsel %vm3378_vm8, %v3380_v27, %v3376_v25  ;;  %v3335_v59 = vor.u32 1.1754944e-38, %v9494_v43  ;;  %v7368_v27 = vld [vmem:[%s8450_s5 + $0x8] sm:$0xff]  ;;  %v6315_v43 = vld [vmem:[#allocation5 + $0x2a0] sm:$0xf] }
 0x5b6   : > { %v3418_v48 = vmul.f32 %v3381_v54, %v8689_v18  ;;  %v3426_v18 = vpack.c.bf16 %v3381_v54, %v3366_v50  ;;  %v3321_v25 = vsel %vm3318_vm13, %v3320_v35, %v3316_v57  ;;  %v6356_v54 = vor.u32 %v7026_v21, %v6355_v5  ;;  %v7020_v4 = vld [vmem:[#allocation5 + $0x2cc] sm:$0xf]  ;;  %v7009_v5 = vld [vmem:[#allocation5 + $0x26c] sm:$0xf0]  ;;  %v7007_v21 = vld [vmem:[#allocation5 + $0x264] sm:$0xf] }
 0x5b7   : > { %v3406_v56 = vsel %vm3405_vm10, %v7306_v39, %v3402_v46 }
 0x5b8   : > { %v3411_v34 = vsel %vm3408_vm14, %v3410_v28, %v3406_v56  ;;  %v9492_v56 = vand.u32 2147483648, %v8669_v23  ;;  %v3417_v23 = vmul.f32 %v3366_v50, %v8661_v22  ;;  %v3422_v22 = vpack.c.bf16 %v3321_v25, %v8624_v52  ;;  %v6349_v52 = vld [vmem:[#allocation5 + $0x2f0] sm:$0xf0] }
 0x5b9   : > { %v3420_v39 = vmul.f32 %v3411_v34, %v3182_v9  ;;  %v3428_v1 = vpack.c.bf16 %v3411_v34, %v3396_v6  ;;  %v3331_v9 = vsel %vm8802_vm1, %v8683_v38, %v3327_v11  ;;  %v9495_v38 = vand.u32 2147483647, %v8659_v40  ;;  %v7023_v6 = vld [vmem:[#allocation5 + $0x2e4] sm:$0xf]  ;;  %v7024_v34 = vld [vmem:[#allocation5 + $0x2ec] sm:$0xf] }
 0x5ba   : > { %v3350_v42 = vor.u32 1.1754944e-38, %v9492_v56  ;;  %v3425_v10 = vpack.c.bf16 %v3418_v48, %v3417_v23  ;;  %v3414_v40 = vmul.f32 %v3321_v25, %v8622_v13  ;;  %v6347_v13 = vld [vmem:[#allocation5 + $0x2e0] sm:$0xf]  ;;  %v6339_v56 = vld [vmem:[#allocation5 + $0x2c8] sm:$0xf]  ;;  %v6336_v50 = vor.u32 %v7019_v51, %v6333_v29 }
 0x5bb   : > { %v3427_v14 = vpack.c.bf16 %v3420_v39, %v3419_v61  ;;  %3452 = vmatpush.bf16.msra.mxu2 %v3428_v1  ;;  %vm3333_vm0 = vcmp.eq.f32.partialorder %v9495_v38, 8.507059e+37  ;;  %v6331_v39 = vld [vmem:[#allocation5 + $0x2c0] sm:$0xf]  ;;  %v7021_v1 = vld [vmem:[#allocation5 + $0x2cc] sm:$0xf0] }
 0x5bc   : > { %v3351_v45 = vsel %vm3348_vm12, %v3350_v42, %v3346_v33  ;;  %v3336_v16 = vsel %vm3333_vm0, %v3335_v59, %v3331_v9  ;;  %v3421_v11 = vpack.c.bf16 %v3414_v40, %v8628_v15  ;;  %v6352_v15 = vor.u32 %v7023_v6, %v6349_v52  ;;  %v6357_v33 = vld [vmem:[#allocation5 + $0x2f8] sm:$0xf0]  ;;  %v7022_v42 = vld [vmem:[#allocation5 + $0x2d4] sm:$0xf0]  ;;  %v7017_v59 = vld [vmem:[#allocation5 + $0x2ac] sm:$0xf0] }
 0x5bd   : > { %3433 = vmatpush.bf16.msra.mxu1 %v3427_v14  ;;  %v3416_v58 = vmul.f32 %v3351_v45, %v8651_v44  ;;  %v3415_v46 = vmul.f32 %v3336_v16, %v8632_v19  ;;  %v3424_v12 = vpack.c.bf16 %v3351_v45, %v3336_v16  ;;  %v7367_v44 = vld [vmem:[%s8450_s5] sm:$0xff]  ;;  %v7025_v19 = vld [vmem:[#allocation5 + $0x2ec] sm:$0xf0]  ;;  %v6360_v61 = vor.u32 %v7024_v34, %v6357_v33  ;;  %v6341_v48 = vld [vmem:[#allocation5 + $0x2d8] sm:$0xf0] }
 0x5be   : > { %v6348_v28 = vor.u32 %v7025_v19, %v6347_v13  ;;  %3828 = vmatpush.bf16.msrb.mxu0 %v6352_v15  ;;  %v6332_v63 = vor.u32 %v7021_v1, %v6331_v39  ;;  %v6340_v9 = vor.u32 %v7022_v42, %v6339_v56  ;;  %v6344_v14 = vor.u32 %v7020_v4, %v6341_v48  ;;  %v7015_v45 = vld [vmem:[#allocation5 + $0x2a4] sm:$0xf]  ;;  %v6317_v38 = vld [vmem:[#allocation5 + $0x2b0] sm:$0xf0]  ;;  %v6323_v23 = vld [vmem:[#allocation5 + $0x2a8] sm:$0xf] }
 0x5bf   : > { %3453 = vmatpush.bf16.msra.mxu2 %v3426_v18  ;;  %v3423_v8 = vpack.c.bf16 %v3416_v58, %v3415_v46  ;;  %v6316_v57 = vor.u32 %v7017_v59, %v6315_v43  ;;  %v7018_v18 = vld [vmem:[#allocation5 + $0x2b4] sm:$0xf0]  ;;  %v6320_v35 = vor.u32 %v7015_v45, %v6317_v38  ;;  %v7016_v58 = vld [vmem:[#allocation5 + $0x2ac] sm:$0xf]  ;;  %v6299_v46 = vld [vmem:[#allocation5 + $0x280] sm:$0xf] }
 0x5c0   : > { %3809 = vmatpush.bf16.msra.mxu3 %v6348_v28  ;;  %v6324_v16 = vor.u32 %v7018_v18, %v6323_v23  ;;  %v7012_v13 = vld [vmem:[#allocation5 + $0x28c] sm:$0xf]  ;;  %v6309_v6 = vld [vmem:[#allocation5 + $0x298] sm:$0xf0]  ;;  %v6283_v52 = vld [vmem:[#allocation5 + $0x260] sm:$0xf] }
 0x5c1   : > { %3434 = vmatpush.bf16.msra.mxu1 %v3425_v10  ;;  %v6325_v10 = vld [vmem:[#allocation5 + $0x2b8] sm:$0xf0]  ;;  %v6312_v28 = vor.u32 %v7012_v13, %v6309_v6  ;;  %v6284_v15 = vor.u32 %v7009_v5, %v6283_v52  ;;  %v6291_v34 = vld [vmem:[#allocation5 + $0x268] sm:$0xf]  ;;  %v7010_v33 = vld [vmem:[#allocation5 + $0x274] sm:$0xf0] }
 0x5c2   : > { %3829 = vmatpush.bf16.msrb.mxu0 %v6336_v50  ;;  %v6328_v25 = vor.u32 %v7016_v58, %v6325_v10  ;;  %v6292_v39 = vor.u32 %v7010_v33, %v6291_v34  ;;  %v7008_v1 = vld [vmem:[#allocation5 + $0x26c] sm:$0xf]  ;;  %v6293_v51 = vld [vmem:[#allocation5 + $0x278] sm:$0xf0]  ;;  %v6267_v29 = vld [vmem:[#allocation5 + $0x240] sm:$0xf] }
 0x5c3   : > { %3454 = vmatpush.bf16.msra.mxu2 %v3424_v12  ;;  %v7013_v12 = vld [vmem:[#allocation5 + $0x28c] sm:$0xf0]  ;;  %v7003_v42 = vld [vmem:[#allocation5 + $0x244] sm:$0xf]  ;;  %v6275_v4 = vld [vmem:[#allocation5 + $0x248] sm:$0xf] }
 0x5c4   : > { %3810 = vmatpush.bf16.msra.mxu3 %v6332_v63  ;;  %v6300_v40 = vor.u32 %v7013_v12, %v6299_v46  ;;  %v6296_v63 = vor.u32 %v7008_v1, %v6293_v51  ;;  %v7005_v56 = vld [vmem:[#allocation5 + $0x24c] sm:$0xf0]  ;;  %v7006_v48 = vld [vmem:[#allocation5 + $0x254] sm:$0xf0]  ;;  %v7004_v45 = vld [vmem:[#allocation5 + $0x24c] sm:$0xf] }
 0x5c5   : > { %3435 = vmatpush.bf16.msra.mxu1 %v3423_v8  ;;  %v7011_v8 = vld [vmem:[#allocation5 + $0x284] sm:$0xf]  ;;  %v6268_v50 = vor.u32 %v7005_v56, %v6267_v29  ;;  %v6276_v59 = vor.u32 %v7006_v48, %v6275_v4  ;;  %v6251_v18 = vld [vmem:[#allocation5 + $0x220] sm:$0xf]  ;;  %v6253_v58 = vld [vmem:[#allocation5 + $0x230] sm:$0xf0] }
 0x5c6   : > { %3830 = vmatpush.bf16.msrb.mxu0 %v6320_v35  ;;  %v7001_v35 = vld [vmem:[#allocation5 + $0x22c] sm:$0xf0]  ;;  %v6259_v46 = vld [vmem:[#allocation5 + $0x228] sm:$0xf]  ;;  %v7002_v12 = vld [vmem:[#allocation5 + $0x234] sm:$0xf0] }
 0x5c7   : > { %3455 = vmatpush.bf16.msra.mxu2 %v3422_v22  ;;  %v6301_v22 = vld [vmem:[#allocation5 + $0x290] sm:$0xf0]  ;;  %v6252_v10 = vor.u32 %v7001_v35, %v6251_v18  ;;  %v6995_v13 = vld [vmem:[#allocation5 + $0x204] sm:$0xf]  ;;  %v6998_v52 = vld [vmem:[#allocation5 + $0x214] sm:$0xf0] }
 0x5c8   : > { %3811 = vmatpush.bf16.msra.mxu3 %v6316_v57  ;;  %v6277_v57 = vld [vmem:[#allocation5 + $0x258] sm:$0xf0]  ;;  %v6237_v6 = vld [vmem:[#allocation5 + $0x210] sm:$0xf0]  ;;  %v7032_v18 = vld [vmem:[%s9381_s15 + $0xa8] sm:$0xff] }
 0x5c9   : > { %3436 = vmatpush.bf16.msra.mxu1 %v3421_v11  ;;  %v6307_v11 = vld [vmem:[#allocation5 + $0x288] sm:$0xf]  ;;  %v6280_v23 = vor.u32 %v7004_v45, %v6277_v57  ;;  %v6245_v34 = vld [vmem:[#allocation5 + $0x218] sm:$0xf0] }
 0x5ca   : > { %6226 = vmatmul.msk.bf16.vlgmr.msra.gmra.mxu2 %vm9414_vm4, %v7367_v44  ;;  %v7034_v51 = vld [vmem:[%s9381_s15 + $0xb8] sm:$0xff] }
 0x5cb   : > { %3866 = vmatpush.bf16.msrb.mxu2 %v6360_v61 }
 0x5cc   : > { %6224 = vmatmul.msk.bf16.vlgmr.msra.gmra.mxu1 %vm9414_vm4, %v7367_v44  ;;  %v6304_v44 = vor.u32 %v7011_v8, %v6301_v22  ;;  %3812 = vmatpush.bf16.msra.mxu3 %v6300_v40  ;;  %v7000_v40 = vld [vmem:[#allocation5 + $0x22c] sm:$0xf]  ;;  %v6260_v8 = vor.u32 %v7002_v12, %v6259_v46  ;;  %v6261_v22 = vld [vmem:[#allocation5 + $0x238] sm:$0xf0]  ;;  %v7031_v12 = vld [vmem:[%s9381_s15 + $0xa0] sm:$0xff] }
 0x5cd   : > { %3847 = vmatpush.bf16.msrb.mxu1 %v6356_v54  ;;  %v6285_v54 = vld [vmem:[#allocation5 + $0x270] sm:$0xf0] }
 0x5ce   : > { %3831 = vmatpush.bf16.msrb.mxu0 %v6304_v44  ;;  %v6288_v61 = vor.u32 %v7007_v21, %v6285_v54  ;;  %v6235_v44 = vld [vmem:[#allocation5 + $0x200] sm:$0xf]  ;;  %v6240_v21 = vor.u32 %v6995_v13, %v6237_v6  ;;  %v6996_v54 = vld [vmem:[#allocation5 + $0x20c] sm:$0xf] }
 0x5cf   : > { %3867 = vmatpush.bf16.msrb.mxu2 %v6344_v14 }
 0x5d0   : > { %3813 = vmatpush.bf16.msra.mxu3 %v6284_v15 }
 0x5d1   : > { %3848 = vmatpush.bf16.msrb.mxu1 %v6340_v9  ;;  %v6269_v9 = vld [vmem:[#allocation5 + $0x250] sm:$0xf0] }
 0x5d2   : > { %3832 = vmatpush.bf16.msrb.mxu0 %v6288_v61  ;;  %v6272_v43 = vor.u32 %v7003_v42, %v6269_v9  ;;  %v7033_v9 = vld [vmem:[%s9381_s15 + $0xb0] sm:$0xff] }
 0x5d3   : > { %3868 = vmatpush.bf16.msrb.mxu2 %v6328_v25 }
 0x5d4   : > { %3814 = vmatpush.bf16.msra.mxu3 %v6268_v50 }
 0x5d5   : > { %3849 = vmatpush.bf16.msrb.mxu1 %v6324_v16  ;;  %v6999_v16 = vld [vmem:[#allocation5 + $0x224] sm:$0xf] }
 0x5d6   : > { %3833 = vmatpush.bf16.msrb.mxu0 %v6272_v43  ;;  %v6256_v25 = vor.u32 %v6999_v16, %v6253_v58 }
 0x5d7   : > { %3869 = vmatpush.bf16.msrb.mxu2 %v6312_v28  ;;  %v6243_v28 = vld [vmem:[#allocation5 + $0x208] sm:$0xf] }
 0x5d8   : > { %3815 = vmatpush.bf16.msra.mxu3 %v6252_v10  ;;  %v6244_v15 = vor.u32 %v6998_v52, %v6243_v28  ;;  %v7030_v52 = vld [vmem:[%s9381_s15 + $0x98] sm:$0xff] }
 0x5da   : > { %6227 = vmatmul.msk.bf16.gmra.mxu2 %vm9414_vm4, %v7368_v27  ;;  %3834 = vmatpush.bf16.msrb.mxu0 %v6256_v25 }
 0x5db   : > { %3870 = vmatpush.bf16.msrb.mxu2 %v6296_v63 }
 0x5dc   : > { %6225 = vmatmul.msk.bf16.gmra.mxu1 %vm9414_vm4, %v7368_v27  ;;  %v7014_v27 = vld [vmem:[#allocation5 + $0x294] sm:$0xf0] }
 0x5dd   : > { %v6308_v19 = vor.u32 %v7014_v27, %v6307_v11  ;;  %v6264_v11 = vor.u32 %v7000_v40, %v6261_v22  ;;  %v6997_v27 = vld [vmem:[#allocation5 + $0x20c] sm:$0xf0] }
 0x5de   : > { %3835 = vmatpush.bf16.msrb.mxu0 %v6240_v21 }
 0x5df   : > { %3850 = vmatpush.bf16.msrb.mxu1 %v6308_v19  ;;  %3871 = vmatpush.bf16.msrb.mxu2 %v6280_v23  ;;  %v6236_v19 = vor.u32 %v6997_v27, %v6235_v44  ;;  %v8865_v27 = vld [vmem:[%s9384_s18 + $0x1] ss:$0 sm:$0xff] }
 0x5e1   : > { %3816 = vmatpush.bf16.msra.mxu3 %v6236_v19 }
 0x5e3   : > { %3851 = vmatpush.bf16.msrb.mxu1 %v6292_v39  ;;  %3872 = vmatpush.bf16.msrb.mxu2 %v6264_v11  ;;  %v6248_v39 = vor.u32 %v6996_v54, %v6245_v34 }
 0x5e5   : > { %3959 = vmatpush.bf16.msrb.mxu3 %v7034_v51 }
 0x5e7   : > { %3852 = vmatpush.bf16.msrb.mxu1 %v6276_v59  ;;  %3873 = vmatpush.bf16.msrb.mxu2 %v6248_v39 }
 0x5e9   : > { %3960 = vmatpush.bf16.msrb.mxu3 %v7033_v9 }
 0x5eb   : > { %3853 = vmatpush.bf16.msrb.mxu1 %v6260_v8 }
 0x5ed   : > { %3961 = vmatpush.bf16.msrb.mxu3 %v7032_v18 }
 0x5ef   : > { %3854 = vmatpush.bf16.msrb.mxu1 %v6244_v15 }
 0x5f1   : > { %3962 = vmatpush.bf16.msrb.mxu3 %v7031_v12 }
 0x5f5   : > { %3963 = vmatpush.bf16.msrb.mxu3 %v7030_v52 }
 0x649   : > { %v3438_v29 = vpop.f32.mrf.mxu1 }
 0x64d   : > { %v3457_v14 = vpop.f32.mrf.mxu2 }
 0x64e   : > { %v8836_v38 = vadd.f32 1e-06, %v3457_v14 }
 0x650   : > { %7307 = vrcp.f32 %v8836_v38  ;;  %v3482_v56 = vand.u32 2147483648, %v8836_v38  ;;  %v3480_v50 = vand.u32 2147483647, %v8836_v38  ;;  %vm3476_vm3 = vweird.f32 %v8836_v38 }
 0x651   : > { %v3440_v40 = vpop.f32.mrf.mxu1 }
 0x652   : > { %v3483_v43 = vor.u32 1.1754944e-38, %v3482_v56  ;;  %vm3481_vm5 = vcmp.eq.f32.partialorder %v3480_v50, 8.507059e+37  ;;  %v7028_v50 = vld [vmem:[%s9381_s15 + $0x88] sm:$0xff] }
 0x655   : > { %v3459_v5 = vpop.f32.mrf.mxu2 }
 0x656   : > { %v7308_v33 = vpop.eup %7307  ;;  %v3468_v61 = vadd.f32 1e-06, %v3459_v5  ;;  %v2985_v5 = vadd.f32 %v8586_v37, %v8581_v7 }
 0x657   : > { %v3472_v1 = vmul.f32 %v7308_v33, %v8836_v38  ;;  %vm3477_vm9 = vweird.f32 %v7308_v33  ;;  %v8855_v38 = vld [vmem:[%s9383_s17 + $0x1] ss:$0 sm:$0xff] }
 0x658   : > { %7309 = vrcp.f32 %v3468_v61  ;;  %vm3478_vm6 = vmor %vm3476_vm3, %vm3477_vm9  ;;  %v3497_v58 = vand.u32 2147483648, %v3468_v61  ;;  %v3495_v46 = vand.u32 2147483647, %v3468_v61  ;;  %vm3491_vm8 = vweird.f32 %v3468_v61 }
 0x659   : > { %v3473_v63 = vsub.f32 1.0, %v3472_v1  ;;  %v3443_v56 = vpop.f32.mrf.mxu1 }
 0x65a   : > { %vm3496_vm15 = vcmp.eq.f32.partialorder %v3495_v46, 8.507059e+37 }
 0x65b   : > { %v3474_v42 = vmul.f32 %v7308_v33, %v3473_v63 }
 0x65d   : > { %v3475_v4 = vadd.f32 %v7308_v33, %v3474_v42  ;;  %v3462_v48 = vpop.f32.mrf.mxu2 }
 0x65e   : > { %v7310_v14 = vpop.eup %7309  ;;  %v3469_v59 = vadd.f32 1e-06, %v3462_v48 }
 0x65f   : > { %v3479_v45 = vsel %vm3478_vm6, %v7308_v33, %v3475_v4  ;;  %v3487_v57 = vmul.f32 %v7310_v14, %v3468_v61  ;;  %vm3492_vm10 = vweird.f32 %v7310_v14  ;;  %v7029_v33 = vld [vmem:[%s9381_s15 + $0x90] sm:$0xff] }
 0x660   : > { %v3484_v23 = vsel %vm3481_vm5, %v3483_v43, %v3479_v45  ;;  %7311 = vrcp.f32 %v3469_v59  ;;  %vm3493_vm14 = vmor %vm3491_vm8, %vm3492_vm10  ;;  %v3512_v34 = vand.u32 2147483648, %v3469_v59  ;;  %v3510_v1 = vand.u32 2147483647, %v3469_v59  ;;  %3964 = vmatpush.bf16.msrb.mxu3 %v7029_v33 }
 0x661   : > { %v3485_v35 = vmul.f32 %v3484_v23, %v3438_v29  ;;  %v3488_v16 = vsub.f32 1.0, %v3487_v57  ;;  %vm3506_vm1 = vweird.f32 %v3469_v59 }
 0x662   : > { %v3513_v42 = vor.u32 1.1754944e-38, %v3512_v34  ;;  %vm3511_vm11 = vcmp.eq.f32.partialorder %v3510_v1, 8.507059e+37 }
 0x663   : > { %v3531_v10 = vadd.f32 %v3485_v35, %v8584_v30  ;;  %v3489_v25 = vmul.f32 %v7310_v14, %v3488_v16  ;;  %v3498_v30 = vor.u32 1.1754944e-38, %v3497_v58  ;;  %v7027_v35 = vld [vmem:[%s9381_s15 + $0x80] sm:$0xff] }
 0x664   : > { %3965 = vmatpush.bf16.msrb.mxu3 %v7028_v50 }
 0x665   : > { %v3490_v8 = vadd.f32 %v7310_v14, %v3489_v25  ;;  %v3464_v22 = vpop.f32.mrf.mxu2  ;;  %v3540_v44 = vmul.f32 %v8855_v38, %v3531_v10 }
 0x666   : > { %v7312_v11 = vpop.eup %7311  ;;  %v3470_v13 = vadd.f32 1e-06, %v3464_v22 }
 0x667   : > { %v3494_v19 = vsel %vm3493_vm14, %v7310_v14, %v3490_v8  ;;  %v3502_v6 = vmul.f32 %v7312_v11, %v3469_v59  ;;  %v3549_v54 = vadd.f32 %v8865_v27, %v3540_v44  ;;  %vm3507_vm2 = vweird.f32 %v7312_v11 }
 0x668   : > { %v3499_v28 = vsel %vm3496_vm15, %v3498_v30, %v3494_v19  ;;  %7313 = vrcp.f32 %v3470_v13  ;;  %vm3508_vm12 = vmor %vm3506_vm1, %vm3507_vm2  ;;  %v3525_v23 = vand.u32 2147483647, %v3470_v13  ;;  %v3527_v18 = vand.u32 2147483648, %v3470_v13  ;;  %3966 = vmatpush.bf16.msrb.mxu3 %v7027_v35 }
 0x669   : > { %v3500_v21 = vmul.f32 %v3499_v28, %v3440_v40  ;;  %v3503_v15 = vsub.f32 1.0, %v3502_v6  ;;  %v3553_v37 = vmax.f32 %v3549_v54, 0.0  ;;  %vm3521_vm13 = vweird.f32 %v3470_v13  ;;  %v7226_v28 = vld [vmem:[%s9385_s19 + $0x1] ss:$0 sm:$0xff] }
 0x66a   : > { %vm3526_vm3 = vcmp.eq.f32.partialorder %v3525_v23, 8.507059e+37  ;;  %v3564_v33 = vmul.f32 %v7226_v28, %v8636_v55  ;;  %v9499_v23 = vld [vmem:[#allocation27_spill] sm:$0xff] }
 0x66b   : > { %v3532_v61 = vadd.f32 %v3500_v21, %v2985_v5  ;;  %v3504_v39 = vmul.f32 %v7312_v11, %v3503_v15  ;;  %v8882_v59 = vadd.f32 %v3553_v37, %v8507_v20  ;;  %v3528_v20 = vor.u32 1.1754944e-38, %v3527_v18 }
 0x66d   : > { %v3541_v51 = vmul.f32 %v8855_v38, %v3532_v61  ;;  %v3505_v63 = vadd.f32 %v7312_v11, %v3504_v39 }
 0x66e   : > { %v7314_v29 = vpop.eup %7313 }
 0x66f   : > { %v3550_v9 = vadd.f32 %v8865_v27, %v3541_v51  ;;  %v3509_v4 = vsel %vm3508_vm12, %v7312_v11, %v3505_v63  ;;  %v3517_v48 = vmul.f32 %v7314_v29, %v3470_v13  ;;  %vm3522_vm0 = vweird.f32 %v7314_v29 }
 0x670   : > { %v3514_v14 = vsel %vm3511_vm11, %v3513_v42, %v3509_v4  ;;  %vm3523_vm9 = vmor %vm3521_vm13, %vm3522_vm0 }
 0x671   : > { %v3554_v43 = vmax.f32 %v3550_v9, 0.0  ;;  %v3515_v45 = vmul.f32 %v3514_v14, %v3443_v56  ;;  %v3518_v57 = vsub.f32 1.0, %v3517_v48  ;;  %v9498_v48 = vld [vmem:[#allocation25_spill] sm:$0xff] }
 0x672   : > { %v3568_v14 = vmul.f32 %v7226_v28, %v9498_v48 }
 0x673   : > { %v8888_v16 = vadd.f32 %v3554_v43, %v8513_v53  ;;  %v3533_v58 = vadd.f32 %v3515_v45, %v8589_v36  ;;  %v3519_v10 = vmul.f32 %v7314_v29, %v3518_v57  ;;  %v3445_v53 = vpop.f32.mrf.mxu1  ;;  %v2990_v36 = vadd.f32 %v8611_v3, %v8581_v7 }
 0x674   : > { %v3563_v7 = vmul.f32 %v7226_v28, %v8630_v26 }
 0x675   : > { %v3603_v25 = vpack.c.bf16 %v8888_v16, %v8882_v59  ;;  %v3520_v46 = vadd.f32 %v7314_v29, %v3519_v10  ;;  %v3542_v12 = vmul.f32 %v8855_v38, %v3533_v58 }
 0x677   : > { %v3524_v40 = vsel %vm3523_vm9, %v7314_v29, %v3520_v46  ;;  %3817 = vmatmul.bf16.vlgmr.msra.gmra.mxu3 %v3603_v25  ;;  %3836 = vmatmul.bf16.vlgmr.msrb.gmra.mxu0 %v3603_v25  ;;  %v3551_v11 = vadd.f32 %v8865_v27, %v3542_v12  ;;  %v3566_v29 = vmul.f32 %v7226_v28, %v8640_v31  ;;  %v6232_v46 = vld [vmem:[%s9380_s14 + $0x8] sm:$0xf] }
 0x678   : > { %v3529_v8 = vsel %vm3526_vm3, %v3528_v20, %v3524_v40  ;;  %3855 = vmatmul.bf16.vlgmr.msrb.gmra.mxu1 %v3603_v25  ;;  %3874 = vmatmul.bf16.vlgmr.msrb.gmra.mxu2 %v3603_v25  ;;  %v3641_v20 = vperm.slane %v6232_v46, 0 }
 0x679   : > { %v3530_v22 = vmul.f32 %v3529_v8, %v3445_v53  ;;  %v3555_v13 = vmax.f32 %v3551_v11, 0.0 }
 0x67b   : > { %v3534_v44 = vadd.f32 %v3530_v22, %v2990_v36  ;;  %v8903_v52 = vadd.f32 %v3555_v13, %v8528_v47 }
 0x67d   : > { %v3543_v30 = vmul.f32 %v8855_v38, %v3534_v44  ;;  %v3562_v38 = vmul.f32 %v7226_v28, %v8619_v32  ;;  %v3565_v32 = vmul.f32 %v7226_v28, %v8643_v0 }
 0x67f   : > { %v3552_v19 = vadd.f32 %v8865_v27, %v3543_v30  ;;  %v7227_v27 = vld [vmem:[%s9386_s20 + $0x1] ss:$0 sm:$0xff] }
 0x680   : > { %v3576_v47 = vadd.f32 %v7227_v27, %v3563_v7  ;;  %v3575_v21 = vadd.f32 %v7227_v27, %v3562_v38  ;;  %v3578_v61 = vadd.f32 %v7227_v27, %v3565_v32  ;;  %v3577_v39 = vadd.f32 %v7227_v27, %v3564_v33 }
 0x681   : > { %v3556_v6 = vmax.f32 %v3552_v19, 0.0  ;;  %v3579_v37 = vadd.f32 %v7227_v27, %v3566_v29  ;;  %v3581_v43 = vadd.f32 %v7227_v27, %v3568_v14  ;;  %v7370_v14 = vld [vmem:[%s8208_s2] sm:$0xff] }
 0x682   : > { %v3584_v15 = vmax.f32 %v3576_v47, 0.0  ;;  %v3586_v1 = vmax.f32 %v3578_v61, 0.0  ;;  %v3585_v51 = vmax.f32 %v3577_v39, 0.0 }
 0x683   : > { %v8906_v5 = vadd.f32 %v3556_v6, %v8531_v62  ;;  %v3583_v62 = vmax.f32 %v3575_v21, 0.0  ;;  %v3587_v42 = vmax.f32 %v3579_v37, 0.0  ;;  %v3589_v57 = vmax.f32 %v3581_v43, 0.0  ;;  %v7372_v43 = vld [vmem:[%s8208_s2 + $0x8] sm:$0xff] }
 0x684   : > { %v8916_v54 = vadd.f32 %v3584_v15, %v8541_v60  ;;  %v8926_v63 = vadd.f32 %v3586_v1, %v8551_v41  ;;  %v8929_v60 = vadd.f32 %v3585_v51, %v8554_v24  ;;  %v9496_v41 = vld [vmem:[#allocation23_spill] sm:$0xff]  ;;  %v9497_v24 = vld [vmem:[#allocation24_spill] sm:$0xff]  ;;  %v3642_v6 = vperm.slane %v6232_v46, 1 }
 0x685   : > { %v3604_v3 = vpack.c.bf16 %v8906_v5, %v8903_v52  ;;  %v8919_v26 = vadd.f32 %v3583_v62, %v8544_v49  ;;  %v3567_v49 = vmul.f32 %v7226_v28, %v8646_v2  ;;  %v8939_v9 = vadd.f32 %v3587_v42, %v9496_v41 }
 0x686   : > { %v3886_v0 = vpack.c.bf16 %v8926_v63, %v8929_v60  ;;  %v3569_v4 = vmul.f32 %v7226_v28, %v9497_v24  ;;  %v3644_v51 = vperm.slane %v6232_v46, 3 }
 0x687   : > { %3822 = vmatmul.bf16.gmra.mxu3 %v3604_v3  ;;  %3841 = vmatmul.bf16.gmra.mxu0 %v3604_v3  ;;  %v3885_v34 = vpack.c.bf16 %v8916_v54, %v8919_v26  ;;  %v3580_v55 = vadd.f32 %v7227_v27, %v3567_v49 }
 0x688   : > { %3860 = vmatmul.bf16.gmra.mxu1 %v3604_v3  ;;  %3879 = vmatmul.bf16.gmra.mxu2 %v3604_v3  ;;  %v3582_v31 = vadd.f32 %v7227_v27, %v3569_v4  ;;  %v3643_v3 = vperm.slane %v6232_v46, 2 }
 0x689   : > { %v3588_v56 = vmax.f32 %v3580_v55, 0.0 }
 0x68a   : > { %v3590_v45 = vmax.f32 %v3582_v31, 0.0  ;;  %v7371_v31 = vld [vmem:[%s8201_s9 + $0x8] sm:$0xff] }
 0x68b   : > { %v8936_v50 = vadd.f32 %v3588_v56, %v8561_v17  ;;  %v9500_v17 = vld [vmem:[#allocation26_spill] sm:$0xff] }
 0x68c   : > { %v8946_v18 = vadd.f32 %v3590_v45, %v9499_v23  ;;  %v8949_v35 = vadd.f32 %v3589_v57, %v9500_v17  ;;  %v7373_v45 = vld [vmem:[%s8201_s9 + $0x10] sm:$0xff]  ;;  %v7375_v23 = vld [vmem:[%s8201_s9 + $0x18] sm:$0xff] }
 0x68d   : > { %v3887_v2 = vpack.c.bf16 %v8936_v50, %v8939_v9  ;;  %v7374_v57 = vld [vmem:[%s8208_s2 + $0x10] sm:$0xff]  ;;  %v7376_v17 = vld [vmem:[%s8208_s2 + $0x18] sm:$0xff] }
 0x68e   : > { %v3888_v58 = vpack.c.bf16 %v8946_v18, %v8949_v35 }
 0x697   : > { %3967 = vmatmul.bf16.vlgmr.msrb.gmra.mxu3 %v3885_v34 }
 0x6a7   : > { %3972 = vmatmul.bf16.gmra.mxu3 %v3886_v0 }
 0x6b7   : > { %3977 = vmatmul.bf16.gmra.mxu3 %v3887_v2  ;;  %v7369_v2 = vld [vmem:[%s8201_s9] sm:$0xff]  ;;  %s897_s9 = sand.u32 1, %s9521_s4  }
 0x6b8   : > { %s5296_s25 = scalar_lea.sflag [#allocation4], %s897_s9 }
 0x6c7   : > { %3982 = vmatmul.bf16.gmra.mxu3 %v3888_v58 }
 0x6f4   : > { %v3837_v10 = vpop.f32.mrf.mxu0 }
 0x6f5   : > { %v3856_v25 = vpop.f32.mrf.mxu1  ;;  %v3838_v39 = vadd.f32 %v3837_v10, %v3642_v6 }
 0x6f6   : > { %v3857_v1 = vadd.f32 %v3856_v25, %v3643_v3 }
 0x6fa   : > { %v3818_v12 = vpop.f32.mrf.mxu3 }
 0x6fb   : > { %v8956_v40 = vadd.f32 %v3818_v12, %v3641_v20  ;;  %v3875_v53 = vpop.f32.mrf.mxu2 }
 0x6fc   : > { %v3839_v8 = vpop.f32.mrf.mxu0  ;;  %v3876_v4 = vadd.f32 %v3875_v53, %v3644_v51 }
 0x6fd   : > { %v3858_v36 = vpop.f32.mrf.mxu1  ;;  %v3840_v32 = vadd.f32 %v3839_v8, %v3642_v6 }
 0x6fe   : > { %v3859_v33 = vadd.f32 %v3858_v36, %v3643_v3  ;;  %v6680_v36 = vld [vmem:[#allocation7 + $0x1e0] sm:$0xf] }
 0x6ff   : > { %v3988_v0 = vpack.c.bf16 %v3840_v32, %v3838_v39  ;;  %v8989_v32 = vld [vmem:[%s9382_s16 + $0x2] ss:$0 sm:$0xff] }
 0x700   : > { %v3989_v37 = vpack.c.bf16 %v3859_v33, %v3857_v1 }
 0x702   : > { %v3820_v22 = vpop.f32.mrf.mxu3 }
 0x703   : > { %v8958_v11 = vadd.f32 %v3820_v22, %v3641_v20  ;;  %v3877_v44 = vpop.f32.mrf.mxu2  ;;  %v7097_v22 = vld [vmem:[#allocation7 + $0x1ec] sm:$0xf0] }
 0x704   : > { %v3842_v30 = vpop.f32.mrf.mxu0  ;;  %v3878_v41 = vadd.f32 %v3877_v44, %v3644_v51  ;;  %v6681_v44 = vor.u32 %v7097_v22, %v6680_v36 }
 0x705   : > { %v3861_v13 = vpop.f32.mrf.mxu1  ;;  %v3843_v27 = vadd.f32 %v3842_v30, %v3642_v6  ;;  %v6664_v30 = vld [vmem:[#allocation7 + $0x1c0] sm:$0xf] }
 0x706   : > { %v3862_v15 = vadd.f32 %v3861_v13, %v3643_v3  ;;  %v4050_v48 = vpack.c.bf16 %v3878_v41, %v3876_v4  ;;  %v7093_v13 = vld [vmem:[#allocation7 + $0x1cc] sm:$0xf0] }
 0x70a   : > { %v3823_v19 = vpop.f32.mrf.mxu3 }
 0x70b   : > { %v8960_v28 = vadd.f32 %v3823_v19, %v3641_v20  ;;  %v3880_v7 = vpop.f32.mrf.mxu2 }
 0x70c   : > { %v3844_v38 = vpop.f32.mrf.mxu0  ;;  %v3881_v56 = vadd.f32 %v3880_v7, %v3644_v51 }
 0x70d   : > { %v3845_v47 = vadd.f32 %v3844_v38, %v3642_v6  ;;  %v3863_v21 = vpop.f32.mrf.mxu1  ;;  %v6665_v6 = vor.u32 %v7093_v13, %v6664_v30  ;;  %v9008_v30 = vld [vmem:[%s9386_s20 + $0x2] ss:$0 sm:$0xff] }
 0x70e   : > { %v3864_v62 = vadd.f32 %v3863_v21, %v3643_v3 }
 0x70f   : > { %v3990_v34 = vpack.c.bf16 %v3845_v47, %v3843_v27  ;;  %v6648_v27 = vld [vmem:[#allocation7 + $0x1a0] sm:$0xf]  ;;  %v7089_v47 = vld [vmem:[#allocation7 + $0x1ac] sm:$0xf0] }
 0x710   : > { %v3991_v61 = vpack.c.bf16 %v3864_v62, %v3862_v15  ;;  %v6649_v21 = vor.u32 %v7089_v47, %v6648_v27  ;;  %v6632_v15 = vld [vmem:[#allocation7 + $0x180] sm:$0xf]  ;;  %v7085_v62 = vld [vmem:[#allocation7 + $0x18c] sm:$0xf0] }
 0x711   : > { %3998 = vmatpush.bf16.msra.mxu0 %v3990_v34  ;;  %v6633_v39 = vor.u32 %v7085_v62, %v6632_v15  ;;  %v7098_v15 = vld [vmem:[#allocation7 + $0x1f4] sm:$0xf0] }
 0x712   : > { %4027 = vmatpush.bf16.msra.mxu1 %v3991_v61  ;;  %v3825_v49 = vpop.f32.mrf.mxu3 }
 0x713   : > { %v8962_v29 = vadd.f32 %v3825_v49, %v3641_v20  ;;  %v3882_v55 = vpop.f32.mrf.mxu2  ;;  %v6616_v49 = vld [vmem:[#allocation7 + $0x160] sm:$0xf] }
 0x714   : > { %v3883_v42 = vadd.f32 %v3882_v55, %v3644_v51 }
 0x715   : > { %3999 = vmatpush.bf16.msra.mxu0 %v3988_v0  ;;  %v7081_v0 = vld [vmem:[#allocation7 + $0x16c] sm:$0xf0] }
 0x716   : > { %v4051_v24 = vpack.c.bf16 %v3883_v42, %v3881_v56  ;;  %4028 = vmatpush.bf16.msra.mxu1 %v3989_v37  ;;  %v6617_v37 = vor.u32 %v7081_v0, %v6616_v49 }
 0x718   : > { %4058 = vmatpush.bf16.msra.mxu2 %v4051_v24  ;;  %6410 = vmatmul.msk.bf16.vlgmr.msra.gmra.mxu0 %vm2262_vm7, %v7369_v2 }
 0x719   : > { %6414 = vmatmul.msk.bf16.vlgmr.msra.gmra.mxu1 %vm2262_vm7, %v7369_v2  ;;  %v6600_v2 = vld [vmem:[#allocation7 + $0x140] sm:$0xf] }
 0x71a   : > { %v3968_v58 = vpop.f32.mrf.mxu3 }
 0x71b   : > { %v3969_v56 = vadd.f32 %v8989_v32, %v3968_v58  ;;  %v9000_v58 = vld [vmem:[%s9385_s19 + $0x2] ss:$0 sm:$0xff] }
 0x71c   : > { %4059 = vmatpush.bf16.msra.mxu2 %v4050_v48  ;;  %v7077_v48 = vld [vmem:[#allocation7 + $0x14c] sm:$0xf0] }
 0x71f   : > { %6418 = vmatmul.msk.bf16.vlgmr.msra.gmra.mxu2 %vm2262_vm7, %v7370_v14 }
 0x720   : > { %4886 = vmatpush.bf16.msrb.mxu2 %v6681_v44 }
 0x722   : > { %v3970_v25 = vpop.f32.mrf.mxu3 }
 0x723   : > { %v3971_v42 = vadd.f32 %v8989_v32, %v3970_v25 }
 0x724   : > { %4887 = vmatpush.bf16.msrb.mxu2 %v6665_v6 }
 0x728   : > { %6411 = vmatmul.msk.bf16.gmra.mxu0 %vm2262_vm7, %v7371_v31  ;;  %4888 = vmatpush.bf16.msrb.mxu2 %v6649_v21  ;;  %v6688_v21 = vld [vmem:[#allocation7 + $0x1e8] sm:$0xf] }
 0x729   : > { %6415 = vmatmul.msk.bf16.gmra.mxu1 %vm2262_vm7, %v7371_v31 }
 0x72a   : > { %v3973_v12 = vpop.f32.mrf.mxu3 }
 0x72b   : > { %v3974_v31 = vadd.f32 %v8989_v32, %v3973_v12 }
 0x72c   : > { %4889 = vmatpush.bf16.msrb.mxu2 %v6633_v39 }
 0x72f   : > { %6419 = vmatmul.msk.bf16.gmra.mxu2 %vm2262_vm7, %v7372_v43 }
 0x730   : > { %4890 = vmatpush.bf16.msrb.mxu2 %v6617_v37  ;;  %v6672_v37 = vld [vmem:[#allocation7 + $0x1c8] sm:$0xf] }
 0x732   : > { %v3975_v19 = vpop.f32.mrf.mxu3 }
 0x738   : > { %6412 = vmatmul.msk.bf16.gmra.mxu0 %vm2262_vm7, %v7373_v45 }
 0x739   : > { %6416 = vmatmul.msk.bf16.gmra.mxu1 %vm2262_vm7, %v7373_v45 }
 0x73a   : > { %v3978_v34 = vpop.f32.mrf.mxu3 }
 0x73b   : > { %v3979_v12 = vadd.f32 %v8989_v32, %v3978_v34 }
 0x73f   : > { %6420 = vmatmul.msk.bf16.gmra.mxu2 %vm2262_vm7, %v7374_v57 }
 0x742   : > { %v3980_v45 = vpop.f32.mrf.mxu3 }
 0x743   : > { %v3981_v62 = vadd.f32 %v8989_v32, %v3980_v45 }
 0x748   : > { %6413 = vmatmul.msk.bf16.gmra.mxu0 %vm2262_vm7, %v7375_v23 }
 0x749   : > { %6417 = vmatmul.msk.bf16.gmra.mxu1 %vm2262_vm7, %v7375_v23 }
 0x74f   : > { %6421 = vmatmul.msk.bf16.gmra.mxu2 %vm2262_vm7, %v7376_v17  ;;  %v6601_v17 = vor.u32 %v7077_v48, %v6600_v2 }
 0x751   : > { %4891 = vmatpush.bf16.msrb.mxu2 %v6601_v17 }
 0x795   : > { %v8984_v7 = vpop.f32.mrf.mxu0 }
 0x796   : > { %v4030_v10 = vpop.f32.mrf.mxu1 }
 0x79d   : > { %v8991_v61 = vpop.f32.mrf.mxu0 }
 0x79e   : > { %v4032_v46 = vpop.f32.mrf.mxu1 }
 0x7a2   : > { %v4061_v20 = vpop.f32.mrf.mxu2 }
 0x7a3   : > { %v4081_v1 = vadd.f32 %v4061_v20, %v4030_v10  ;;  %v6584_v10 = vld [vmem:[#allocation7 + $0x120] sm:$0xf] }
 0x7a5   : > { %v4089_v41 = vadd.f32 %v4081_v1, %v3969_v56  ;;  %v7094_v56 = vld [vmem:[#allocation7 + $0x1d4] sm:$0xf0] }
 0x7a6   : > { %v4035_v53 = vpop.f32.mrf.mxu1 }
 0x7a7   : > { %v6422_v57 = vmul.f32 -1.442695, %v4089_v41 }
 0x7a9   : > { %7315 = vpow2.f32 %v6422_v57 }
 0x7aa   : > { %v4063_v8 = vpop.f32.mrf.mxu2 }
 0x7ab   : > { %v4082_v55 = vadd.f32 %v4063_v8, %v4032_v46  ;;  %v3976_v46 = vadd.f32 %v8989_v32, %v3975_v19  ;;  %v7073_v8 = vld [vmem:[#allocation7 + $0x12c] sm:$0xf0]  ;;  %v4398_v19 = vmul.f32 %v9000_v58, %v4089_v41  ;;  %v3983_v41 = vpop.f32.mrf.mxu3 }
 0x7ac   : > { %v6585_v22 = vor.u32 %v7073_v8, %v6584_v10  ;;  %v6656_v10 = vld [vmem:[#allocation7 + $0x1a8] sm:$0xf] }
 0x7ad   : > { %v4090_v24 = vadd.f32 %v4082_v55, %v3971_v42  ;;  %v4411_v49 = vadd.f32 %v9008_v30, %v4398_v19  ;;  %v6689_v55 = vor.u32 %v7098_v15, %v6688_v21 }
 0x7ae   : > { %v4037_v3 = vpop.f32.mrf.mxu1  ;;  %4892 = vmatpush.bf16.msrb.mxu2 %v6585_v22  ;;  %v3984_v22 = vadd.f32 %v8989_v32, %v3983_v41  ;;  %v7584_v41 = vmov 64.0  }
 0x7af   : > { %v6423_v25 = vmul.f32 -1.442695, %v4090_v24  ;;  %v4399_v27 = vmul.f32 %v9000_v58, %v4090_v24  ;;  %v7316_v42 = vpop.eup %7315  ;;  %v4419_v17 = vmax.f32 %v4411_v49, 0.0 }
 0x7b1   : > { %7317 = vpow2.f32 %v6423_v25  ;;  %v4412_v24 = vadd.f32 %v9008_v30, %v4399_v27  ;;  %v7086_v27 = vld [vmem:[#allocation7 + $0x194] sm:$0xf0]  ;;  %v4431_v21 = vadd.f32 %v4419_v17, %v8919_v26 }
 0x7b2   : > { %v4066_v38 = vpop.f32.mrf.mxu2 }
 0x7b3   : > { %v4083_v4 = vadd.f32 %v4066_v38, %v4035_v53  ;;  %v9002_v53 = vpop.f32.mrf.mxu0  ;;  %v7069_v38 = vld [vmem:[#allocation7 + $0x10c] sm:$0xf0] }
 0x7b5   : > { %v4091_v20 = vadd.f32 %v4083_v4, %v3974_v31  ;;  %v6673_v31 = vor.u32 %v7094_v56, %v6672_v37  ;;  %v3985_v37 = vpop.f32.mrf.mxu3 }
 0x7b6   : > { %v4040_v51 = vpop.f32.mrf.mxu1 }
 0x7b7   : > { %v6424_v6 = vmul.f32 -1.442695, %v4091_v20  ;;  %v4400_v39 = vmul.f32 %v9000_v58, %v4091_v20  ;;  %v7318_v2 = vpop.eup %7317  ;;  %v4420_v20 = vmax.f32 %v4412_v24, 0.0 }
 0x7b8   : > { %v9023_v25 = vadd.f32 1.0, %v7318_v2 }
 0x7b9   : > { %7319 = vpow2.f32 %v6424_v6 }
 0x7ba   : > { %v4068_v33 = vpop.f32.mrf.mxu2  ;;  %vm4149_vm3 = vweird.f32 %v9023_v25 }
 0x7bb   : > { %v4084_v43 = vadd.f32 %v4068_v33, %v4037_v3  ;;  %v6568_v3 = vld [vmem:[#allocation7 + $0x100] sm:$0xf] }
 0x7bd   : > { %v4092_v44 = vadd.f32 %v4084_v43, %v3976_v46  ;;  %v4413_v43 = vadd.f32 %v9008_v30, %v4400_v39  ;;  %v7090_v46 = vld [vmem:[#allocation7 + $0x1b4] sm:$0xf0] }
 0x7be   : > { %v4042_v36 = vpop.f32.mrf.mxu1 }
 0x7bf   : > { %v6425_v34 = vmul.f32 -1.442695, %v4092_v44  ;;  %v4401_v4 = vmul.f32 %v9000_v58, %v4092_v44 }
 0x7c1   : > { %7321 = vpow2.f32 %v6425_v34  ;;  %v4414_v8 = vadd.f32 %v9008_v30, %v4401_v4  ;;  %v4432_v34 = vadd.f32 %v4420_v20, %v8916_v54 }
 0x7c2   : > { %v4071_v14 = vpop.f32.mrf.mxu2 }
 0x7c3   : > { %v4085_v23 = vadd.f32 %v4071_v14, %v4040_v51  ;;  %v6569_v51 = vor.u32 %v7069_v38, %v6568_v3  ;;  %v9017_v14 = vpop.f32.mrf.mxu0  ;;  %v6657_v3 = vor.u32 %v7090_v46, %v6656_v10  ;;  %v6640_v38 = vld [vmem:[#allocation7 + $0x188] sm:$0xf]  ;;  %v4422_v39 = vmax.f32 %v4414_v8, 0.0 }
 0x7c4   : > { %v4456_v2 = vadd.f32 %v4432_v34, %v4431_v21  ;;  %v3986_v10 = vadd.f32 %v8989_v32, %v3985_v37 }
 0x7c5   : > { %v4093_v13 = vadd.f32 %v4085_v23, %v3979_v12  ;;  %4893 = vmatpush.bf16.msrb.mxu2 %v6569_v51  ;;  %v9021_v23 = vadd.f32 1.0, %v7316_v42 }
 0x7c6   : > { %v4045_v57 = vpop.f32.mrf.mxu1 }
 0x7c7   : > { %v6426_v1 = vmul.f32 -1.442695, %v4093_v13  ;;  %v4402_v45 = vmul.f32 %v9000_v58, %v4093_v13  ;;  %v4421_v13 = vmax.f32 %v4413_v43, 0.0  ;;  %vm4134_vm4 = vweird.f32 %v9021_v23 }
 0x7c9   : > { %4938 = vmatpush.bf16.msra.mxu2 %v6689_v55  ;;  %7323 = vpow2.f32 %v6426_v1  ;;  %v4415_v6 = vadd.f32 %v9008_v30, %v4402_v45  ;;  %v6641_v55 = vor.u32 %v7086_v27, %v6640_v38  ;;  %v4433_v26 = vadd.f32 %v4421_v13, %v8929_v60  ;;  %v6624_v60 = vld [vmem:[#allocation7 + $0x168] sm:$0xf]  ;;  %v7078_v13 = vld [vmem:[#allocation7 + $0x154] sm:$0xf0] }
 0x7ca   : > { %v4073_v47 = vpop.f32.mrf.mxu2 }
 0x7cb   : > { %v4086_v33 = vadd.f32 %v4073_v47, %v4042_v36  ;;  %v7320_v36 = vpop.eup %7319  ;;  %v4423_v42 = vmax.f32 %v4415_v6, 0.0  ;;  %v9043_v4 = vpop.f32.mrf.mxu0 }
 0x7cc   : > { %v7322_v47 = vpop.eup %7321 }
 0x7cd   : > { %v4094_v0 = vadd.f32 %v4086_v33, %v3981_v62  ;;  %4939 = vmatpush.bf16.msra.mxu2 %v6673_v31  ;;  %v9033_v33 = vadd.f32 1.0, %v7320_v36  ;;  %v9038_v56 = vadd.f32 1.0, %v7322_v47 }
 0x7ce   : > { %v4047_v43 = vpop.f32.mrf.mxu1 }
 0x7cf   : > { %v6427_v48 = vmul.f32 -1.442695, %v4094_v0  ;;  %v4403_v44 = vmul.f32 %v9000_v58, %v4094_v0  ;;  %v7324_v62 = vpop.eup %7323  ;;  %vm4179_vm15 = vweird.f32 %v9038_v56  ;;  %vm4164_vm11 = vweird.f32 %v9033_v33 }
 0x7d0   : > { %v9040_v54 = vadd.f32 1.0, %v7324_v62 }
 0x7d1   : > { %7325 = vpow2.f32 %v6427_v48  ;;  %v4416_v51 = vadd.f32 %v9008_v30, %v4403_v44  ;;  %4940 = vmatpush.bf16.msra.mxu2 %v6657_v3  ;;  %v4434_v48 = vadd.f32 %v4422_v39, %v8926_v63  ;;  %v4435_v63 = vadd.f32 %v4423_v42, %v8939_v9 }
 0x7d2   : > { %v4076_v12 = vpop.f32.mrf.mxu2  ;;  %7327 = vrcp.f32 %v9021_v23  ;;  %vm4194_vm7 = vweird.f32 %v9040_v54 }
 0x7d3   : > { %v4087_v19 = vadd.f32 %v4076_v12, %v4045_v57  ;;  %7329 = vrcp.f32 %v9023_v25  ;;  %v7082_v57 = vld [vmem:[#allocation7 + $0x174] sm:$0xf0]  ;;  %v4424_v46 = vmax.f32 %v4416_v51, 0.0  ;;  %v4457_v12 = vadd.f32 %v4456_v2, %v4433_v26  ;;  %v6592_v51 = vld [vmem:[#allocation7 + $0x128] sm:$0xf] }
 0x7d4   : > { %7331 = vrcp.f32 %v7584_v41  ;;  %v6625_v44 = vor.u32 %v7082_v57, %v6624_v60 }
 0x7d5   : > { %v4095_v15 = vadd.f32 %v4087_v19, %v3984_v22  ;;  %4941 = vmatpush.bf16.msra.mxu2 %v6641_v55  ;;  %v6608_v19 = vld [vmem:[#allocation7 + $0x148] sm:$0xf]  ;;  %v4458_v6 = vadd.f32 %v4457_v12, %v4434_v48  ;;  %v4436_v38 = vadd.f32 %v4424_v46, %v8936_v50  ;;  %v7074_v50 = vld [vmem:[#allocation7 + $0x134] sm:$0xf0] }
 0x7d6   : > { %v6609_v9 = vor.u32 %v7078_v13, %v6608_v19  ;;  %v6593_v41 = vor.u32 %v7074_v50, %v6592_v51  ;;  %v6576_v48 = vld [vmem:[#allocation7 + $0x108] sm:$0xf]  ;;  %v4153_v19 = vand.u32 2147483647, %v9023_v25  ;;  %v4170_v51 = vand.u32 2147483648, %v9033_v33 }
 0x7d7   : > { %v7326_v1 = vpop.eup %7325  ;;  %v6428_v49 = vmul.f32 -1.442695, %v4095_v15  ;;  %v4404_v0 = vmul.f32 %v9000_v58, %v4095_v15  ;;  %v4459_v34 = vadd.f32 %v4458_v6, %v4435_v63 }
 0x7d8   : > { %v9046_v31 = vadd.f32 1.0, %v7326_v1  ;;  %v9048_v17 = vpop.eup %7327 }
 0x7d9   : > { %7333 = vpow2.f32 %v6428_v49  ;;  %v4417_v24 = vadd.f32 %v9008_v30, %v4404_v0  ;;  %v9052_v8 = vpop.eup %7329  ;;  %4942 = vmatpush.bf16.msra.mxu2 %v6625_v44  ;;  %v4460_v37 = vadd.f32 %v4459_v34, %v4436_v38  ;;  %vm4135_vm9 = vweird.f32 %v9048_v17 }
 0x7da   : > { %v4078_v45 = vpop.f32.mrf.mxu2  ;;  %7335 = vrcp.f32 %v9033_v33  ;;  %v9057_v32 = vpop.eup %7331  ;;  %v4145_v21 = vmul.f32 %v9052_v8, %v9023_v25  ;;  %vm4209_vm8 = vweird.f32 %v9046_v31  ;;  %vm4150_vm12 = vweird.f32 %v9052_v8 }
 0x7db   : > { %v4088_v20 = vadd.f32 %v4078_v45, %v4047_v43  ;;  %7337 = vrcp.f32 %v9038_v56  ;;  %v4425_v36 = vmax.f32 %v4417_v24, 0.0  ;;  %v4470_v0 = vmul.f32 64.0, %v9057_v32  ;;  %v7070_v43 = vld [vmem:[#allocation7 + $0x114] sm:$0xf0] }
 0x7dc   : > { %7339 = vrcp.f32 %v9040_v54  ;;  %v4146_v42 = vsub.f32 1.0, %v4145_v21  ;;  %v6577_v63 = vor.u32 %v7070_v43, %v6576_v48  ;;  %vm4474_vm5 = vweird.f32 %v9057_v32 }
 0x7dd   : > { %v4096_v22 = vadd.f32 %v4088_v20, %v3986_v10  ;;  %7341 = vrcp.f32 %v9046_v31  ;;  %v4437_v39 = vadd.f32 %v4425_v36, %v8949_v35  ;;  %4943 = vmatpush.bf16.msra.mxu2 %v6609_v9  ;;  %v4471_v57 = vsub.f32 1.0, %v4470_v0 }
 0x7de   : > { %v4185_v0 = vand.u32 2147483648, %v9038_v56 }
 0x7df   : > { %v7334_v3 = vpop.eup %7333  ;;  %v6429_v27 = vmul.f32 -1.442695, %v4096_v22  ;;  %v4405_v47 = vmul.f32 %v9000_v58, %v4096_v22  ;;  %v4130_v58 = vmul.f32 %v9048_v17, %v9021_v23  ;;  %v4461_v24 = vadd.f32 %v4460_v37, %v4437_v39 }
 0x7e0   : > { %v9064_v15 = vadd.f32 1.0, %v7334_v3  ;;  %v9066_v62 = vpop.eup %7335 }
 0x7e1   : > { %7343 = vpow2.f32 %v6429_v27  ;;  %v4418_v1 = vadd.f32 %v9008_v30, %v4405_v47  ;;  %v9070_v49 = vpop.eup %7337  ;;  %v9080_v30 = vpop.f32.mrf.mxu0  ;;  %v4131_v45 = vsub.f32 1.0, %v4130_v58  ;;  %v4160_v60 = vmul.f32 %v9066_v62, %v9033_v33  ;;  %4944 = vmatpush.bf16.msra.mxu2 %v6593_v41 }
 0x7e2   : > { %7345 = vrcp.f32 %v9064_v15  ;;  %v9076_v55 = vpop.eup %7339  ;;  %v4175_v46 = vmul.f32 %v9070_v49, %v9038_v56  ;;  %v4472_v27 = vmul.f32 %v9057_v32, %v4471_v57  ;;  %v4183_v58 = vand.u32 2147483647, %v9038_v56 }
 0x7e3   : > { %v4426_v26 = vmax.f32 %v4418_v1, 0.0  ;;  %v9078_v35 = vpop.eup %7341  ;;  %v4190_v44 = vmul.f32 %v9076_v55, %v9040_v54  ;;  %v9100_v3 = vmul.f32 %v9048_v17, %v4131_v45  ;;  %v4161_v38 = vsub.f32 1.0, %v4160_v60 }
 0x7e4   : > { %v4205_v12 = vmul.f32 %v9078_v35, %v9046_v31  ;;  %v4176_v47 = vsub.f32 1.0, %v4175_v46  ;;  %v4168_v1 = vand.u32 2147483647, %v9033_v33  ;;  %v4198_v41 = vand.u32 2147483647, %v9040_v54 }
 0x7e5   : > { %v4438_v2 = vadd.f32 %v4426_v26, %v8946_v18  ;;  %v4147_v18 = vmul.f32 %v9052_v8, %v4146_v42  ;;  %4945 = vmatpush.bf16.msra.mxu2 %v6577_v63  ;;  %v4191_v50 = vsub.f32 1.0, %v4190_v44  ;;  %v4162_v42 = vmul.f32 %v9066_v62, %v4161_v38 }
 0x7e6   : > { %v4206_v21 = vsub.f32 1.0, %v4205_v12  ;;  %v4177_v48 = vmul.f32 %v9070_v49, %v4176_v47  ;;  %vm4180_vm6 = vweird.f32 %v9070_v49  ;;  %vm4195_vm10 = vweird.f32 %v9076_v55 }
 0x7e7   : > { %v7344_v10 = vpop.eup %7343  ;;  %v4462_v20 = vadd.f32 %v4461_v24, %v4438_v2  ;;  %v9105_v39 = vadd.f32 %v9052_v8, %v4147_v18  ;;  %v4473_v2 = vadd.f32 %v9057_v32, %v4472_v27  ;;  %v4192_v57 = vmul.f32 %v9076_v55, %v4191_v50 }
 0x7e8   : > { %v9089_v36 = vpop.eup %7345  ;;  %v9092_v22 = vadd.f32 1.0, %v7344_v10  ;;  %v4207_v45 = vmul.f32 %v9078_v35, %v4206_v21  ;;  %v4213_v10 = vand.u32 2147483647, %v9046_v31  ;;  %vm4165_vm14 = vweird.f32 %v9066_v62 }
 0x7e9   : > { %v4463_v13 = vrot.slane %v4462_v20, 4  ;;  %v4220_v6 = vmul.f32 %v9089_v36, %v9064_v15  ;;  %v9115_v24 = vpop.f32.mrf.mxu0  ;;  %vm4225_vm2 = vweird.f32 %v9089_v36  ;;  %vm4210_vm1 = vweird.f32 %v9078_v35 }
 0x7ea   : > { %7347 = vrcp.f32 %v9092_v22  ;;  %v4228_v63 = vand.u32 2147483647, %v9064_v15  ;;  %v4230_v18 = vand.u32 2147483648, %v9064_v15  ;;  %v4475_v44 = vsel %vm4474_vm5, %v9057_v32, %v4473_v2 }
 0x7eb   : > { %v4464_v9 = vadd.f32 %v4463_v13, %v4462_v20  ;;  %v4221_v34 = vsub.f32 1.0, %v4220_v6  ;;  %v4208_v13 = vadd.f32 %v9078_v35, %v4207_v45  ;;  %vm4224_vm0 = vweird.f32 %v9064_v15 }
 0x7ec   : > { %v4193_v27 = vadd.f32 %v9076_v55, %v4192_v57  ;;  %v4215_v47 = vand.u32 2147483648, %v9046_v31  ;;  %vm9143_vm13 = vmor %vm4224_vm0, %vm4225_vm2  ;;  %v4243_v32 = vand.u32 2147483647, %v9092_v22  ;;  %v4245_v21 = vand.u32 2147483648, %v9092_v22 }
 0x7ed   : > { %v4465_v37 = vrot.slane %v4464_v9, 2  ;;  %v4222_v26 = vmul.f32 %v9089_v36, %v4221_v34  ;;  %vm9160_vm2 = vmor %vm4209_vm8, %vm4210_vm1  ;;  %vm4229_vm0 = vcmp.eq.f32.partialorder %v4228_v63, 8.507059e+37  ;;  %vm4239_vm8 = vweird.f32 %v9092_v22 }
 0x7ee   : > { %v4212_v31 = vsel %vm9160_vm2, %v9078_v35, %v4208_v13  ;;  %v4163_v57 = vadd.f32 %v9066_v62, %v4162_v42  ;;  %vm9189_vm2 = vmor %vm4179_vm15, %vm4180_vm6  ;;  %vm4184_vm15 = vcmp.eq.f32.partialorder %v4183_v58, 8.507059e+37  ;;  %v4171_v56 = vor.u32 1.1754944e-38, %v4170_v51 }
 0x7ef   : > { %v4466_v43 = vadd.f32 %v4465_v37, %v4464_v9  ;;  %v4223_v46 = vadd.f32 %v9089_v36, %v4222_v26  ;;  %v4178_v37 = vadd.f32 %v9070_v49, %v4177_v48  ;;  %v4200_v26 = vand.u32 2147483648, %v9040_v54  ;;  %vm9204_vm6 = vmor %vm4164_vm11, %vm4165_vm14 }
 0x7f0   : > { %v7348_v60 = vpop.eup %7347  ;;  %v4246_v54 = vor.u32 1.1754944e-38, %v4245_v21  ;;  %v4138_v9 = vand.u32 2147483647, %v9021_v23  ;;  %vm9222_vm14 = vmor %vm4149_vm3, %vm4150_vm12  ;;  %vm4169_vm11 = vcmp.eq.f32.partialorder %v4168_v1, 8.507059e+37  ;;  %vm4154_vm3 = vcmp.eq.f32.partialorder %v4153_v19, 8.507059e+37 }
 0x7f1   : > { %v4467_v20 = vrot.slane %v4466_v43, 1  ;;  %v4235_v12 = vmul.f32 %v7348_v60, %v9092_v22  ;;  %v4227_v15 = vsel %vm9143_vm13, %v9089_v36, %v4223_v46  ;;  %vm4240_vm5 = vweird.f32 %v7348_v60  ;;  %vm9169_vm13 = vmor %vm4194_vm7, %vm4195_vm10  ;;  %v7091_v36 = vld [vmem:[#allocation7 + $0x1c4] sm:$0xf] }
 0x7f2   : > { %v4216_v46 = vor.u32 1.1754944e-38, %v4215_v47  ;;  %vm4241_vm1 = vmor %vm4239_vm8, %vm4240_vm5  ;;  %v4197_v63 = vsel %vm9169_vm13, %v9076_v55, %v4193_v27  ;;  %vm4214_vm7 = vcmp.eq.f32.partialorder %v4213_v10, 8.507059e+37  ;;  %vm4244_vm10 = vcmp.eq.f32.partialorder %v4243_v32, 8.507059e+37 }
 0x7f3   : > { %v4468_v6 = vadd.f32 %v4467_v20, %v4466_v43  ;;  %v4236_v38 = vsub.f32 1.0, %v4235_v12  ;;  %v4231_v43 = vor.u32 1.1754944e-38, %v4230_v18  ;;  %v4018_v12 = vpop.f32.mrf.mxu0  ;;  %v4201_v42 = vor.u32 1.1754944e-38, %v4200_v26  ;;  %vm9239_vm12 = vmor %vm4134_vm4, %vm4135_vm9  ;;  %v6682_v26 = vld [vmem:[#allocation7 + $0x1f0] sm:$0xf0] }
 0x7f4   : > { %v4217_v18 = vsel %vm4214_vm7, %v4216_v46, %v4212_v31  ;;  %v4182_v55 = vsel %vm9189_vm2, %v9070_v49, %v4178_v37  ;;  %v4186_v49 = vor.u32 1.1754944e-38, %v4185_v0  ;;  %v4140_v32 = vand.u32 2147483648, %v9021_v23  ;;  %v7095_v37 = vld [vmem:[#allocation7 + $0x1e4] sm:$0xf]  ;;  %v6666_v31 = vld [vmem:[#allocation7 + $0x1d0] sm:$0xf0] }
 0x7f5   : > { %v4476_v34 = vmul.f32 %v4475_v44, %v4468_v6  ;;  %v4237_v50 = vmul.f32 %v7348_v60, %v4236_v38  ;;  %v4232_v20 = vsel %vm4229_vm0, %v4231_v43, %v4227_v15  ;;  %vm4199_vm0 = vcmp.eq.f32.partialorder %v4198_v41, 8.507059e+37  ;;  %v6650_v46 = vld [vmem:[#allocation7 + $0x1b0] sm:$0xf0]  ;;  %v7096_v41 = vld [vmem:[#allocation7 + $0x1ec] sm:$0xf] }
 0x7f6   : > { %v4255_v10 = vmul.f32 %v4232_v20, %v9115_v24  ;;  %v4133_v6 = vadd.f32 %v9048_v17, %v9100_v3  ;;  %v4155_v38 = vand.u32 2147483648, %v9023_v25  ;;  %v4202_v27 = vsel %vm4199_vm0, %v4201_v42, %v4197_v63  ;;  %v7079_v63 = vld [vmem:[#allocation7 + $0x164] sm:$0xf]  ;;  %v6658_v0 = vld [vmem:[#allocation7 + $0x1b8] sm:$0xf0] }
 0x7f7   : > { %v9176_v48 = vpack.c.bf16 %v4476_v34, %v4476_v34  ;;  %v4238_v45 = vadd.f32 %v7348_v60, %v4237_v50  ;;  %v4167_v24 = vsel %vm9204_vm6, %v9066_v62, %v4163_v57  ;;  %v4254_v3 = vmul.f32 %v4217_v18, %v9080_v30  ;;  %v7087_v57 = vld [vmem:[#allocation7 + $0x1a4] sm:$0xf]  ;;  %v6626_v15 = vld [vmem:[#allocation7 + $0x178] sm:$0xf0] }
 0x7f8   : > { %v4187_v62 = vsel %vm4184_vm15, %v4186_v49, %v4182_v55  ;;  %v4152_v30 = vsel %vm9222_vm14, %v9052_v8, %v9105_v39  ;;  %v4253_v58 = vmul.f32 %v4202_v27, %v9043_v4  ;;  %v4262_v21 = vpack.c.bf16 %v4217_v18, %v4202_v27  ;;  %v7075_v42 = vld [vmem:[#allocation7 + $0x144] sm:$0xf]  ;;  %v6602_v18 = vld [vmem:[#allocation7 + $0x150] sm:$0xf0]  ;;  %v6690_v49 = vld [vmem:[#allocation7 + $0x1f8] sm:$0xf0] }
 0x7f9   : > { %4894 = vmatmul.bf16.vlgmr.msrb.gmra.mxu2 %v9176_v48  ;;  %v4242_v35 = vsel %vm4241_vm1, %v7348_v60, %v4238_v45  ;;  %v4156_v51 = vor.u32 1.1754944e-38, %v4155_v38  ;;  %v4172_v34 = vsel %vm4169_vm11, %v4171_v56, %v4167_v24  ;;  %v4137_v8 = vsel %vm9239_vm12, %v9048_v17, %v4133_v6  ;;  %v7071_v55 = vld [vmem:[#allocation7 + $0x124] sm:$0xf]  ;;  %v6570_v38 = vld [vmem:[#allocation7 + $0x110] sm:$0xf0] }
 0x7fa   : > { %v4247_v44 = vsel %vm4244_vm10, %v4246_v54, %v4242_v35  ;;  %v4252_v33 = vmul.f32 %v4187_v62, %v9017_v14  ;;  %v4261_v4 = vpack.c.bf16 %v4254_v3, %v4253_v58  ;;  %v4141_v39 = vor.u32 1.1754944e-38, %v4140_v32  ;;  %v6618_v35 = vld [vmem:[#allocation7 + $0x170] sm:$0xf0]  ;;  %v7067_v6 = vld [vmem:[#allocation7 + $0x104] sm:$0xf] }
 0x7fb   : > { %v4256_v60 = vmul.f32 %v4247_v44, %v4018_v12  ;;  %v4264_v13 = vpack.c.bf16 %v4247_v44, %v4232_v20  ;;  %v4157_v1 = vsel %vm4154_vm3, %v4156_v51, %v4152_v30  ;;  %vm4139_vm5 = vcmp.eq.f32.partialorder %v4138_v9, 8.507059e+37  ;;  %v6634_v12 = vld [vmem:[#allocation7 + $0x190] sm:$0xf0]  ;;  %v7092_v3 = vld [vmem:[#allocation7 + $0x1cc] sm:$0xf] }
 0x7fc   : > { %v4251_v23 = vmul.f32 %v4172_v34, %v9002_v53  ;;  %v4260_v50 = vpack.c.bf16 %v4187_v62, %v4172_v34  ;;  %v4142_v2 = vsel %vm4139_vm5, %v4141_v39, %v4137_v8  ;;  %v4250_v43 = vmul.f32 %v4157_v1, %v8991_v61  ;;  %v7377_v61 = vld [vmem:[%s8450_s5] sm:$0xff]  ;;  %v7088_v32 = vld [vmem:[#allocation7 + $0x1ac] sm:$0xf]  ;;  %v6642_v30 = vld [vmem:[#allocation7 + $0x198] sm:$0xf0] }
 0x7fd   : > { %v4263_v47 = vpack.c.bf16 %v4256_v60, %v4255_v10  ;;  %4288 = vmatpush.bf16.msrb.mxu0 %v4264_v13  ;;  %v6685_v25 = vor.u32 %v7095_v37, %v6682_v26  ;;  %v4249_v14 = vmul.f32 %v4142_v2, %v8984_v7  ;;  %v4258_v19 = vpack.c.bf16 %v4157_v1, %v4142_v2  ;;  %v7083_v7 = vld [vmem:[#allocation7 + $0x184] sm:$0xf]  ;;  %v6586_v10 = vld [vmem:[#allocation7 + $0x130] sm:$0xf0]  ;;  %v7378_v60 = vld [vmem:[%s8450_s5 + $0x8] sm:$0xff]  ;;  %s898_s5 = scalar_lea.vmem [#allocation10], %s897_s9 }
 0x7fe   : > { %v4259_v17 = vpack.c.bf16 %v4252_v33, %v4251_v23  ;;  %v6669_v53 = vor.u32 %v7091_v36, %v6666_v31  ;;  %vm9515_vm4 = vcmask 523264   ;;  %v6653_v20 = vor.u32 %v7087_v57, %v6650_v46  ;;  %v7084_v62 = vld [vmem:[#allocation7 + $0x18c] sm:$0xf]  ;;  %v6610_v8 = vld [vmem:[#allocation7 + $0x158] sm:$0xf0]  ;;  %s5306_s29 = sshll.u32 %s898_s5, 4  ;;  %s5307_s29 = int_to_ptr.vmem [resolvable:$true] %s5306_s29 }
 0x7ff   : > { %4269 = vmatpush.bf16.msra.mxu3 %v4263_v47  ;;  %v4257_v45 = vpack.c.bf16 %v4250_v43, %v4249_v14  ;;  %vm9516_vm9 = vmmov %vm9515_vm4  ;;  %v6637_v54 = vor.u32 %v7083_v7, %v6634_v12  ;;  %v6621_v22 = vor.u32 %v7079_v63, %v6618_v35  ;;  %v6605_v44 = vor.u32 %v7075_v42, %v6602_v18  ;;  %v6674_v47 = vld [vmem:[#allocation7 + $0x1d8] sm:$0xf0]  ;;  %v7076_v34 = vld [vmem:[#allocation7 + $0x14c] sm:$0xf] }
 0x800   : > { %vm9517_vm13 = vmmov %vm9515_vm4  ;;  %v6589_v13 = vor.u32 %v7071_v55, %v6586_v10  ;;  %v6573_v27 = vor.u32 %v7067_v6, %v6570_v38  ;;  %v6693_v24 = vor.u32 %v7096_v41, %v6690_v49  ;;  %v6677_v9 = vor.u32 %v7092_v3, %v6674_v47  ;;  %v6594_v39 = vld [vmem:[#allocation7 + $0x138] sm:$0xf0]  ;;  %v7068_v23 = vld [vmem:[#allocation7 + $0x10c] sm:$0xf] }
 0x801   : > { %4289 = vmatpush.bf16.msrb.mxu0 %v4262_v21  ;;  %vm9518_vm8 = vmmov %vm9515_vm4  ;;  %v6661_v56 = vor.u32 %v7088_v32, %v6658_v0  ;;  %v6645_v58 = vor.u32 %v7084_v62, %v6642_v30  ;;  %v7080_v21 = vld [vmem:[#allocation7 + $0x16c] sm:$0xf]  ;;  %v6613_v33 = vor.u32 %v7076_v34, %v6610_v8  ;;  %v6552_v43 = vld [vmem:[#allocation7 + $0xe0] sm:$0xf] }
 0x802   : > { %v6629_v51 = vor.u32 %v7080_v21, %v6626_v15  ;;  %v7061_v57 = vld [vmem:[#allocation7 + $0xcc] sm:$0xf0]  ;;  %v6520_v12 = vld [vmem:[#allocation7 + $0xa0] sm:$0xf]  ;;  %v7055_v35 = vld [vmem:[#allocation7 + $0xa4] sm:$0xf] }
 0x803   : > { %4270 = vmatpush.bf16.msra.mxu3 %v4261_v4  ;;  %v7072_v4 = vld [vmem:[#allocation7 + $0x12c] sm:$0xf]  ;;  %v6504_v10 = vld [vmem:[#allocation7 + $0x80] sm:$0xf]  ;;  %v7051_v38 = vld [vmem:[#allocation7 + $0x84] sm:$0xf] }
 0x804   : > { %v6597_v1 = vor.u32 %v7072_v4, %v6594_v39  ;;  %v6506_v41 = vld [vmem:[#allocation7 + $0x90] sm:$0xf0]  ;;  %v7049_v32 = vld [vmem:[#allocation7 + $0x6c] sm:$0xf0]  ;;  %v7047_v30 = vld [vmem:[#allocation7 + $0x64] sm:$0xf] }
 0x805   : > { %4290 = vmatpush.bf16.msrb.mxu0 %v4260_v50  ;;  %v6578_v50 = vld [vmem:[#allocation7 + $0x118] sm:$0xf0]  ;;  %v6509_v3 = vor.u32 %v7051_v38, %v6506_v41  ;;  %v6472_v4 = vld [vmem:[#allocation7 + $0x40] sm:$0xf]  ;;  %v7045_v39 = vld [vmem:[#allocation7 + $0x4c] sm:$0xf0] }
 0x806   : > { %v6581_v37 = vor.u32 %v7068_v23, %v6578_v50  ;;  %v6473_v50 = vor.u32 %v7045_v39, %v6472_v4  ;;  %v6442_v41 = vld [vmem:[#allocation7 + $0x10] sm:$0xf0]  ;;  %v7060_v39 = vld [vmem:[#allocation7 + $0xcc] sm:$0xf] }
 0x807   : > { %4271 = vmatpush.bf16.msra.mxu3 %v4259_v17  ;;  %v7065_v17 = vld [vmem:[#allocation7 + $0xec] sm:$0xf0] }
 0x808   : > { %v6553_v14 = vor.u32 %v7065_v17, %v6552_v43 }
 0x809   : > { %4291 = vmatpush.bf16.msrb.mxu0 %v4258_v19  ;;  %4946 = vmatmul.bf16.vlgmr.msra.gmra.mxu2 %v9176_v48  ;;  %v6554_v19 = vld [vmem:[#allocation7 + $0xf0] sm:$0xf0] }
 0x80a   : > { %4873 = vmatpush.bf16.msrb.mxu1 %v6553_v14 }
 0x80b   : > { %4272 = vmatpush.bf16.msra.mxu3 %v4257_v45 }
 0x80c   : > { %6432 = vmatmul.msk.bf16.vlgmr.msrb.gmra.mxu0 %vm9515_vm4, %v7377_v61 }
 0x80d   : > { %4912 = vmatpush.bf16.msra.mxu0 %v6685_v25  ;;  %v7063_v25 = vld [vmem:[#allocation7 + $0xe4] sm:$0xf] }
 0x80e   : > { %6430 = vmatmul.msk.bf16.vlgmr.msra.gmra.mxu3 %vm9516_vm9, %v7377_v61  ;;  %v6557_v36 = vor.u32 %v7063_v25, %v6554_v19  ;;  %v7059_v61 = vld [vmem:[#allocation7 + $0xc4] sm:$0xf] }
 0x810   : > { %4899 = vmatpush.bf16.msrb.mxu3 %v6557_v36 }
 0x811   : > { %4913 = vmatpush.bf16.msra.mxu0 %v6669_v53  ;;  %v6536_v53 = vld [vmem:[#allocation7 + $0xc0] sm:$0xf] }
 0x812   : > { %v6537_v46 = vor.u32 %v7061_v57, %v6536_v53  ;;  %v7041_v53 = vld [vmem:[#allocation7 + $0x2c] sm:$0xf0] }
 0x814   : > { %4874 = vmatpush.bf16.msrb.mxu1 %v6537_v46 }
 0x815   : > { %4914 = vmatpush.bf16.msra.mxu0 %v6653_v20  ;;  %v6538_v20 = vld [vmem:[#allocation7 + $0xd0] sm:$0xf0] }
 0x816   : > { %v6541_v7 = vor.u32 %v7059_v61, %v6538_v20  ;;  %v7039_v20 = vld [vmem:[#allocation7 + $0x24] sm:$0xf] }
 0x818   : > { %4900 = vmatpush.bf16.msrb.mxu3 %v6541_v7  ;;  %v6458_v7 = vld [vmem:[#allocation7 + $0x30] sm:$0xf0] }
 0x819   : > { %4915 = vmatpush.bf16.msra.mxu0 %v6637_v54  ;;  %v7057_v54 = vld [vmem:[#allocation7 + $0xac] sm:$0xf0] }
 0x81a   : > { %v6521_v63 = vor.u32 %v7057_v54, %v6520_v12  ;;  %v6461_v54 = vor.u32 %v7039_v20, %v6458_v7  ;;  %v6530_v20 = vld [vmem:[#allocation7 + $0xb8] sm:$0xf0] }
 0x81c   : > { %6433 = vmatmul.msk.bf16.gmra.mxu0 %vm9517_vm13, %v7378_v60  ;;  %4875 = vmatpush.bf16.msrb.mxu1 %v6521_v63  ;;  %v9283_v63 = vld [vmem:[%s9384_s18 + $0x2] ss:$0 sm:$0xff] }
 0x81d   : > { %4916 = vmatpush.bf16.msra.mxu0 %v6621_v22  ;;  %v6522_v22 = vld [vmem:[#allocation7 + $0xb0] sm:$0xf0] }
 0x81e   : > { %6431 = vmatmul.msk.bf16.gmra.mxu3 %vm9518_vm8, %v7378_v60  ;;  %v6525_v42 = vor.u32 %v7055_v35, %v6522_v22  ;;  %v7053_v60 = vld [vmem:[#allocation7 + $0x8c] sm:$0xf0] }
 0x81f   : > { %v6505_v6 = vor.u32 %v7053_v60, %v6504_v10  ;;  %v6440_v60 = vld [vmem:[#allocation7] sm:$0xf] }
 0x820   : > { %4901 = vmatpush.bf16.msrb.mxu3 %v6525_v42 }
 0x821   : > { %4917 = vmatpush.bf16.msra.mxu0 %v6605_v44  ;;  %4876 = vmatpush.bf16.msrb.mxu1 %v6505_v6 }
 0x824   : > { %4902 = vmatpush.bf16.msrb.mxu3 %v6509_v3  ;;  %v7066_v3 = vld [vmem:[#allocation7 + $0xf4] sm:$0xf0] }
 0x825   : > { %4918 = vmatpush.bf16.msra.mxu0 %v6589_v13 }
 0x829   : > { %4919 = vmatpush.bf16.msra.mxu0 %v6573_v27 }
 0x82c   : > { %4920 = vmatmul.bf16.vlgmr.msra.gmra.mxu0 %v9176_v48 }
 0x82d   : > { %4964 = vmatpush.bf16.msrb.mxu0 %v6693_v24 }
 0x831   : > { %4965 = vmatpush.bf16.msrb.mxu0 %v6677_v9  ;;  %v6488_v9 = vld [vmem:[#allocation7 + $0x60] sm:$0xf] }
 0x832   : > { %v6489_v62 = vor.u32 %v7049_v32, %v6488_v9 }
 0x834   : > { %4877 = vmatpush.bf16.msrb.mxu1 %v6489_v62 }
 0x835   : > { %4966 = vmatpush.bf16.msrb.mxu0 %v6661_v56 }
 0x838   : > { %4878 = vmatpush.bf16.msrb.mxu1 %v6473_v50 }
 0x839   : > { %4967 = vmatpush.bf16.msrb.mxu0 %v6645_v58  ;;  %v6490_v58 = vld [vmem:[#allocation7 + $0x70] sm:$0xf0] }
 0x83a   : > { %v6493_v21 = vor.u32 %v7047_v30, %v6490_v58 }
 0x83c   : > { %4903 = vmatpush.bf16.msrb.mxu3 %v6493_v21 }
 0x83d   : > { %4968 = vmatpush.bf16.msrb.mxu0 %v6629_v51 }
 0x841   : > { %4969 = vmatpush.bf16.msrb.mxu0 %v6613_v33 }
 0x845   : > { %4970 = vmatpush.bf16.msrb.mxu0 %v6597_v1 }
 0x849   : > { %4971 = vmatpush.bf16.msrb.mxu0 %v6581_v37  ;;  %v7043_v37 = vld [vmem:[#allocation7 + $0x44] sm:$0xf] }
 0x84c   : > { %4972 = vmatmul.bf16.vlgmr.msrb.gmra.mxu0 %v9176_v48 }
 0x87c   : > { %v9261_v26 = vpop.f32.mrf.mxu2 }
 0x884   : > { %v4897_v2 = vpop.f32.mrf.mxu2 }
 0x885   : > { %v6474_v2 = vld [vmem:[#allocation7 + $0x50] sm:$0xf0] }
 0x886   : > { %v6477_v36 = vor.u32 %v7043_v37, %v6474_v2 }
 0x888   : > { %4904 = vmatpush.bf16.msrb.mxu3 %v6477_v36 }
 0x889   : > { %v4293_v31 = vpop.f32.mrf.mxu0 }
 0x88a   : > { %v4303_v45 = vadd.f32 1e-06, %v4293_v31  ;;  %v9277_v31 = vld [vmem:[%s9383_s17 + $0x2] ss:$0 sm:$0xff] }
 0x88c   : > { %7349 = vrcp.f32 %v4303_v45  ;;  %v9263_v48 = vpop.f32.mrf.mxu2  ;;  %v4318_v24 = vand.u32 2147483648, %v4303_v45  ;;  %v4316_v56 = vand.u32 2147483647, %v4303_v45  ;;  %vm4312_vm7 = vweird.f32 %v4303_v45  ;;  %4905 = vmatpush.bf16.msrb.mxu3 %v6461_v54 }
 0x88e   : > { %v4319_v34 = vor.u32 1.1754944e-38, %v4318_v24  ;;  %vm4317_vm2 = vcmp.eq.f32.partialorder %v4316_v56, 8.507059e+37  ;;  %v6562_v56 = vld [vmem:[#allocation7 + $0xf8] sm:$0xf0] }
 0x891   : > { %v4295_v18 = vpop.f32.mrf.mxu0  ;;  %v4274_v47 = vpop.f32.mrf.mxu3 }
 0x892   : > { %v7350_v44 = vpop.eup %7349  ;;  %v9265_v55 = vadd.f32 1e-06, %v4295_v18 }
 0x893   : > { %v4308_v13 = vmul.f32 %v7350_v44, %v4303_v45  ;;  %vm4313_vm1 = vweird.f32 %v7350_v44  ;;  %v6456_v45 = vld [vmem:[#allocation7 + $0x20] sm:$0xf] }
 0x894   : > { %7351 = vrcp.f32 %v9265_v55  ;;  %v4949_v49 = vpop.f32.mrf.mxu2  ;;  %vm4314_vm10 = vmor %vm4312_vm7, %vm4313_vm1  ;;  %v4331_v17 = vand.u32 2147483647, %v9265_v55  ;;  %v4333_v19 = vand.u32 2147483648, %v9265_v55  ;;  %v6457_v61 = vor.u32 %v7041_v53, %v6456_v45  ;;  %v6528_v53 = vld [vmem:[#allocation7 + $0xa8] sm:$0xf] }
 0x895   : > { %v4309_v27 = vsub.f32 1.0, %v4308_v13  ;;  %vm4327_vm6 = vweird.f32 %v9265_v55  ;;  %v7037_v13 = vld [vmem:[#allocation7 + $0xc] sm:$0xf0]  ;;  %v6560_v49 = vld [vmem:[#allocation7 + $0xe8] sm:$0xf] }
 0x896   : > { %vm9286_vm15 = vcmp.eq.f32.partialorder %v4331_v17, 8.507059e+37  ;;  %4879 = vmatpush.bf16.msrb.mxu1 %v6457_v61  ;;  %v6441_v30 = vor.u32 %v7037_v13, %v6440_v60  ;;  %v6561_v21 = vor.u32 %v7066_v3, %v6560_v49 }
 0x897   : > { %v4310_v0 = vmul.f32 %v7350_v44, %v4309_v27 }
 0x899   : > { %v4298_v15 = vpop.f32.mrf.mxu0  ;;  %v4311_v51 = vadd.f32 %v7350_v44, %v4310_v0  ;;  %v4276_v12 = vpop.f32.mrf.mxu3  ;;  %v7064_v0 = vld [vmem:[#allocation7 + $0xec] sm:$0xf] }
 0x89a   : > { %v7352_v8 = vpop.eup %7351  ;;  %v9268_v33 = vadd.f32 1e-06, %v4298_v15  ;;  %4880 = vmatpush.bf16.msrb.mxu1 %v6441_v30  ;;  %v6565_v4 = vor.u32 %v7064_v0, %v6562_v56  ;;  %v7050_v0 = vld [vmem:[#allocation7 + $0x74] sm:$0xf0]  ;;  %v6498_v30 = vld [vmem:[#allocation7 + $0x78] sm:$0xf0] }
 0x89b   : > { %v4315_v1 = vsel %vm4314_vm10, %v7350_v44, %v4311_v51  ;;  %v4323_v23 = vmul.f32 %v7352_v8, %v9265_v55  ;;  %vm4328_vm0 = vweird.f32 %v7352_v8  ;;  %v7035_v55 = vld [vmem:[#allocation7 + $0x4] sm:$0xf] }
 0x89c   : > { %7353 = vrcp.f32 %v9268_v33  ;;  %v4320_v43 = vsel %vm4317_vm2, %v4319_v34, %v4315_v1  ;;  %vm4329_vm14 = vmor %vm4327_vm6, %vm4328_vm0  ;;  %v4346_v24 = vand.u32 2147483647, %v9268_v33  ;;  %v4348_v32 = vand.u32 2147483648, %v9268_v33  ;;  %v6544_v34 = vld [vmem:[#allocation7 + $0xc8] sm:$0xf] }
 0x89d   : > { %v4321_v25 = vmul.f32 %v4320_v43, %v4274_v47  ;;  %v4324_v14 = vsub.f32 1.0, %v4323_v23  ;;  %v6445_v58 = vor.u32 %v7035_v55, %v6442_v41  ;;  %v6546_v1 = vld [vmem:[#allocation7 + $0xd8] sm:$0xf0]  ;;  %vm4342_vm12 = vweird.f32 %v9268_v33 }
 0x89e   : > { %4925 = vmatpush.bf16.msra.mxu1 %v6561_v21  ;;  %vm4347_vm5 = vcmp.eq.f32.partialorder %v4346_v24, 8.507059e+37  ;;  %v6514_v55 = vld [vmem:[#allocation7 + $0x98] sm:$0xf0] }
 0x89f   : > { %v4367_v57 = vadd.f32 %v4321_v25, %v8956_v40  ;;  %v4325_v46 = vmul.f32 %v7352_v8, %v4324_v14  ;;  %v4334_v40 = vor.u32 1.1754944e-38, %v4333_v19  ;;  %4906 = vmatpush.bf16.msrb.mxu3 %v6445_v58  ;;  %v4349_v25 = vor.u32 1.1754944e-38, %v4348_v32  ;;  %v6496_v32 = vld [vmem:[#allocation7 + $0x68] sm:$0xf] }
 0x8a0   : > { %v6549_v14 = vor.u32 %v7060_v39, %v6546_v1  ;;  %v7044_v1 = vld [vmem:[#allocation7 + $0x4c] sm:$0xf] }
 0x8a1   : > { %v4300_v35 = vpop.f32.mrf.mxu0  ;;  %v4326_v22 = vadd.f32 %v7352_v8, %v4325_v46  ;;  %v4376_v44 = vmul.f32 %v9277_v31, %v4367_v57  ;;  %v4279_v17 = vpop.f32.mrf.mxu3  ;;  %v7058_v57 = vld [vmem:[#allocation7 + $0xb4] sm:$0xf0]  ;;  %v7056_v46 = vld [vmem:[#allocation7 + $0xac] sm:$0xf] }
 0x8a2   : > { %v7354_v18 = vpop.eup %7353  ;;  %v9291_v10 = vadd.f32 1e-06, %v4300_v35  ;;  %v6529_v35 = vor.u32 %v7058_v57, %v6528_v53 }
 0x8a3   : > { %v4330_v6 = vsel %vm4329_vm14, %v7352_v8, %v4326_v22  ;;  %v4338_v38 = vmul.f32 %v7354_v18, %v9268_v33  ;;  %v4385_v62 = vadd.f32 %v9283_v63, %v4376_v44  ;;  %vm4343_vm11 = vweird.f32 %v7354_v18  ;;  %v7062_v8 = vld [vmem:[#allocation7 + $0xd4] sm:$0xf0]  ;;  %4951 = vmatpush.bf16.msra.mxu3 %v6565_v4 }
 0x8a4   : > { %7355 = vrcp.f32 %v9291_v10  ;;  %v4335_v27 = vsel %vm9286_vm15, %v4334_v40, %v4330_v6  ;;  %v6545_v2 = vor.u32 %v7062_v8, %v6544_v34  ;;  %vm4344_vm3 = vmor %vm4342_vm12, %vm4343_vm11  ;;  %v4361_v61 = vand.u32 2147483647, %v9291_v10  ;;  %v7054_v44 = vld [vmem:[#allocation7 + $0x94] sm:$0xf0]  ;;  %v6480_v34 = vld [vmem:[#allocation7 + $0x48] sm:$0xf] }
 0x8a5   : > { %v4336_v47 = vmul.f32 %v4335_v27, %v4276_v12  ;;  %v4339_v9 = vsub.f32 1.0, %v4338_v38  ;;  %v4363_v42 = vand.u32 2147483648, %v9291_v10  ;;  %v6533_v40 = vor.u32 %v7056_v46, %v6530_v20  ;;  %v7052_v38 = vld [vmem:[#allocation7 + $0x8c] sm:$0xf]  ;;  %v7046_v8 = vld [vmem:[#allocation7 + $0x54] sm:$0xf0] }
 0x8a6   : > { %4926 = vmatpush.bf16.msra.mxu1 %v6545_v2  ;;  %vm4357_vm9 = vweird.f32 %v9291_v10  ;;  %vm4362_vm8 = vcmp.eq.f32.partialorder %v4361_v61, 8.507059e+37  ;;  %v6448_v46 = vld [vmem:[#allocation7 + $0x8] sm:$0xf]  ;;  %v7036_v61 = vld [vmem:[#allocation7 + $0xc] sm:$0xf] }
 0x8a7   : > { %v4368_v15 = vadd.f32 %v4336_v47, %v8958_v11  ;;  %v4340_v51 = vmul.f32 %v7354_v18, %v4339_v9  ;;  %v4389_v11 = vmax.f32 %v4385_v62, 0.0  ;;  %4952 = vmatpush.bf16.msra.mxu3 %v6549_v14  ;;  %v4364_v3 = vor.u32 1.1754944e-38, %v4363_v42  ;;  %v7042_v14 = vld [vmem:[#allocation7 + $0x34] sm:$0xf0]  ;;  %v6450_v20 = vld [vmem:[#allocation7 + $0x18] sm:$0xf0] }
 0x8a8   : > { %v7585_v9 = vmov 32.0   ;;  %v7114_v42 = vld [vmem:[#allocation8 + $0x78] sm:$0xff] }
 0x8a9   : > { %v4377_v23 = vmul.f32 %v9277_v31, %v4368_v15  ;;  %v9303_v50 = vpop.f32.mrf.mxu0  ;;  %v4341_v37 = vadd.f32 %v7354_v18, %v4340_v51  ;;  %v4427_v22 = vadd.f32 %v4389_v11, %v8882_v59  ;;  %7357 = vrcp.f32 %v7585_v9  ;;  %v4281_v56 = vpop.f32.mrf.mxu3  ;;  %5255 = vmatpush.bf16.msrb.mxu2 %v7114_v42  ;;  %v7104_v9 = vld [vmem:[#allocation8 + $0x28] sm:$0xff] }
 0x8aa   : > { %v7356_v43 = vpop.eup %7355  ;;  %4927 = vmatpush.bf16.msra.mxu1 %v6529_v35  ;;  %v6497_v15 = vor.u32 %v7050_v0, %v6496_v32  ;;  %v6481_v11 = vor.u32 %v7046_v8, %v6480_v34  ;;  %v7103_v32 = vld [vmem:[#allocation8 + $0x20] sm:$0xff]  ;;  %v7102_v0 = vld [vmem:[#allocation8 + $0x18] sm:$0xff]  ;;  %v7108_v8 = vld [vmem:[#allocation8 + $0x48] sm:$0xff] }
 0x8ab   : > { %v4386_v19 = vadd.f32 %v9283_v63, %v4377_v23  ;;  %v4345_v36 = vsel %vm4344_vm3, %v7354_v18, %v4341_v37  ;;  %v4353_v45 = vmul.f32 %v7356_v43, %v9291_v10  ;;  %v6512_v18 = vld [vmem:[#allocation7 + $0x88] sm:$0xf]  ;;  %vm4358_vm4 = vweird.f32 %v7356_v43  ;;  %4953 = vmatpush.bf16.msra.mxu3 %v6533_v40  ;;  %v7048_v10 = vld [vmem:[#allocation7 + $0x6c] sm:$0xf]  ;;  %v6482_v23 = vld [vmem:[#allocation7 + $0x58] sm:$0xf0] }
 0x8ac   : > { %v4350_v33 = vsel %vm4347_vm5, %v4349_v25, %v4345_v36  ;;  %v6513_v24 = vor.u32 %v7054_v44, %v6512_v18  ;;  %vm4359_vm13 = vmor %vm4357_vm9, %vm4358_vm4  ;;  %v6501_v51 = vor.u32 %v7048_v10, %v6498_v30  ;;  %v6464_v25 = vld [vmem:[#allocation7 + $0x28] sm:$0xf]  ;;  %v7040_v36 = vld [vmem:[#allocation7 + $0x2c] sm:$0xf] }
 0x8ad   : > { %v4390_v7 = vmax.f32 %v4386_v19, 0.0  ;;  %v4351_v12 = vmul.f32 %v4350_v33, %v4279_v17  ;;  %v4354_v54 = vsub.f32 1.0, %v4353_v45  ;;  %v6485_v17 = vor.u32 %v7044_v1, %v6482_v23  ;;  %v6466_v45 = vld [vmem:[#allocation7 + $0x38] sm:$0xf0]  ;;  %v7038_v33 = vld [vmem:[#allocation7 + $0x14] sm:$0xf0] }
 0x8ae   : > { %4928 = vmatpush.bf16.msra.mxu1 %v6513_v24  ;;  %v6469_v57 = vor.u32 %v7040_v36, %v6466_v45  ;;  %v7113_v44 = vld [vmem:[#allocation8 + $0x70] sm:$0xff]  ;;  %v7106_v24 = vld [vmem:[#allocation8 + $0x38] sm:$0xff]  ;;  %v7100_v30 = vld [vmem:[#allocation8 + $0x8] sm:$0xff] }
 0x8af   : > { %v4428_v60 = vadd.f32 %v4390_v7, %v8888_v16  ;;  %v4369_v13 = vadd.f32 %v4351_v12, %v8960_v28  ;;  %v4355_v6 = vmul.f32 %v7356_v43, %v4354_v54  ;;  %v6517_v16 = vor.u32 %v7052_v38, %v6514_v55  ;;  %v7358_v37 = vpop.eup %7357  ;;  %5256 = vmatpush.bf16.msrb.mxu2 %v7113_v44  ;;  %v7101_v10 = vld [vmem:[#allocation8 + $0x10] sm:$0xff]  ;;  %v7119_v34 = vld [vmem:[#allocation8 + $0xa0] sm:$0xff] }
 0x8b0   : > { %v4449_v53 = vmul.f32 32.0, %v7358_v37  ;;  %v6449_v54 = vor.u32 %v7038_v33, %v6448_v46  ;;  %vm4453_vm1 = vweird.f32 %v7358_v37  ;;  %v7107_v1 = vld [vmem:[#allocation8 + $0x40] sm:$0xff] }
 0x8b1   : > { %v4439_v41 = vadd.f32 %v4428_v60, %v4427_v22  ;;  %v4378_v49 = vmul.f32 %v9277_v31, %v4369_v13  ;;  %v4923_v59 = vpop.f32.mrf.mxu0  ;;  %v4356_v27 = vadd.f32 %v7356_v43, %v4355_v6  ;;  %4954 = vmatpush.bf16.msra.mxu3 %v6517_v16  ;;  %v7112_v6 = vld [vmem:[#allocation8 + $0x68] sm:$0xff]  ;;  %v7127_v23 = vld [vmem:[#allocation8 + $0xe0] sm:$0xff] }
 0x8b2   : > { %4929 = vmatpush.bf16.msra.mxu1 %v6497_v15  ;;  %v4450_v7 = vsub.f32 1.0, %v4449_v53  ;;  %v7111_v59 = vld [vmem:[#allocation8 + $0x60] sm:$0xff]  ;;  %v7129_v15 = vld [vmem:[#allocation8 + $0xf0] sm:$0xff] }
 0x8b3   : > { %v4387_v28 = vadd.f32 %v9283_v63, %v4378_v49  ;;  %v4360_v47 = vsel %vm4359_vm13, %v7356_v43, %v4356_v27  ;;  %5257 = vmatpush.bf16.msrb.mxu2 %v7112_v6 }
 0x8b4   : > { %v4365_v62 = vsel %vm4362_vm8, %v4364_v3, %v4360_v47  ;;  %v4451_v40 = vmul.f32 %v7358_v37, %v4450_v7  ;;  %v7122_v3 = vld [vmem:[#allocation8 + $0xb8] sm:$0xff]  ;;  %v7121_v47 = vld [vmem:[#allocation8 + $0xb0] sm:$0xff] }
 0x8b5   : > { %v4391_v58 = vmax.f32 %v4387_v28, 0.0  ;;  %v4366_v21 = vmul.f32 %v4365_v62, %v4281_v56  ;;  %4955 = vmatpush.bf16.msra.mxu3 %v6501_v51  ;;  %v7105_v28 = vld [vmem:[#allocation8 + $0x30] sm:$0xff]  ;;  %v7110_v56 = vld [vmem:[#allocation8 + $0x58] sm:$0xff]  ;;  %v7099_v51 = vld [vmem:[#allocation8] sm:$0xff] }
 0x8b6   : > { %4930 = vmatpush.bf16.msra.mxu1 %v6481_v11  ;;  %v7130_v62 = vld [vmem:[#allocation8 + $0xf8] sm:$0xff]  ;;  %v7125_v11 = vld [vmem:[#allocation8 + $0xd0] sm:$0xff] }
 0x8b7   : > { %v4429_v4 = vadd.f32 %v4391_v58, %v8903_v52  ;;  %v4370_v39 = vadd.f32 %v4366_v21, %v8962_v29  ;;  %v6465_v29 = vor.u32 %v7042_v14, %v6464_v25  ;;  %5258 = vmatpush.bf16.msrb.mxu2 %v7111_v59  ;;  %5281 = vmatpush.bf16.msra.mxu0 %v7130_v62  ;;  %v7120_v58 = vld [vmem:[#allocation8 + $0xa8] sm:$0xff]  ;;  %v7109_v21 = vld [vmem:[#allocation8 + $0x50] sm:$0xff]  ;;  %v4543_v14 = vld [vmem:[%s9388_s22] sm:$0xf] }
 0x8b8   : > { %v7124_v25 = vld [vmem:[#allocation8 + $0xc8] sm:$0xff]  ;;  %v4865_v36 = vperm.slane %v4543_v14, 0 }
 0x8b9   : > { %v4440_v2 = vadd.f32 %v4439_v41, %v4429_v4  ;;  %v4379_v43 = vmul.f32 %v9277_v31, %v4370_v39  ;;  %4956 = vmatpush.bf16.msra.mxu3 %v6485_v17  ;;  %v7128_v4 = vld [vmem:[#allocation8 + $0xe8] sm:$0xff]  ;;  %v7118_v39 = vld [vmem:[#allocation8 + $0x98] sm:$0xff]  ;;  %v7115_v17 = vld [vmem:[#allocation8 + $0x80] sm:$0xff] }
 0x8ba   : > { %4931 = vmatpush.bf16.msra.mxu1 %v6465_v29  ;;  %v4866_v29 = vperm.slane %v4543_v14, 1 }
 0x8bb   : > { %v4388_v19 = vadd.f32 %v9283_v63, %v4379_v43  ;;  %v6453_v63 = vor.u32 %v7036_v61, %v6450_v20  ;;  %5259 = vmatpush.bf16.msrb.mxu2 %v7110_v56  ;;  %5282 = vmatpush.bf16.msra.mxu0 %v7129_v15  ;;  %v7116_v43 = vld [vmem:[#allocation8 + $0x88] sm:$0xff] }
 0x8bd   : > { %v4392_v52 = vmax.f32 %v4388_v19, 0.0  ;;  %4957 = vmatpush.bf16.msra.mxu3 %v6469_v57  ;;  %v7123_v19 = vld [vmem:[#allocation8 + $0xc0] sm:$0xff] }
 0x8be   : > { %4932 = vmatpush.bf16.msra.mxu1 %v6449_v54  ;;  %v4867_v54 = vperm.slane %v4543_v14, 2 }
 0x8bf   : > { %v4430_v31 = vadd.f32 %v4392_v52, %v8906_v5  ;;  %v4452_v5 = vadd.f32 %v7358_v37, %v4451_v40  ;;  %5260 = vmatpush.bf16.msrb.mxu2 %v7109_v21  ;;  %5283 = vmatpush.bf16.msra.mxu0 %v7128_v4 }
 0x8c1   : > { %v4441_v12 = vadd.f32 %v4440_v2, %v4430_v31  ;;  %4958 = vmatpush.bf16.msra.mxu3 %v6453_v63  ;;  %v4454_v41 = vsel %vm4453_vm1, %v7358_v37, %v4452_v5  ;;  %v7117_v37 = vld [vmem:[#allocation8 + $0x90] sm:$0xff]  ;;  %v7126_v2 = vld [vmem:[#allocation8 + $0xd8] sm:$0xff] }
 0x8c3   : > { %v4442_v35 = vrot.slane %v4441_v12, 4  ;;  %5261 = vmatpush.bf16.msrb.mxu2 %v7108_v8  ;;  %5284 = vmatpush.bf16.msra.mxu0 %v7127_v23 }
 0x8c5   : > { %v4443_v18 = vadd.f32 %v4442_v35, %v4441_v12 }
 0x8c7   : > { %v4444_v60 = vrot.slane %v4443_v18, 2  ;;  %5262 = vmatpush.bf16.msrb.mxu2 %v7107_v1  ;;  %5285 = vmatpush.bf16.msra.mxu0 %v7126_v2 }
 0x8c9   : > { %v9322_v22 = vpop.f32.mrf.mxu0  ;;  %v4445_v13 = vadd.f32 %v4444_v60, %v4443_v18  ;;  %v4868_v18 = vperm.slane %v4543_v14, 3 }
 0x8cb   : > { %v4446_v55 = vrot.slane %v4445_v13, 1  ;;  %5286 = vmatpush.bf16.msra.mxu0 %v7125_v11 }
 0x8cd   : > { %v4447_v49 = vadd.f32 %v4446_v55, %v4445_v13 }
 0x8cf   : > { %v4455_v27 = vmul.f32 %v4454_v41, %v4447_v49  ;;  %5287 = vmatpush.bf16.msra.mxu0 %v7124_v25 }
 0x8d1   : > { %v4975_v38 = vpop.f32.mrf.mxu0  ;;  %v4477_v16 = vpack.c.bf16 %v4455_v27, %v4455_v27 }
 0x8d3   : > { %4881 = vmatmul.bf16.vlgmr.msrb.gmra.mxu1 %v4477_v16  ;;  %4907 = vmatmul.bf16.vlgmr.msrb.gmra.mxu3 %v4477_v16 }
 0x8d4   : > { %5242 = vmatpush.bf16.msrb.mxu1 %v7106_v24  ;;  %5268 = vmatpush.bf16.msrb.mxu3 %v7122_v3 }
 0x8d5   : > { %5288 = vmatpush.bf16.msra.mxu0 %v7123_v19 }
 0x8d8   : > { %5243 = vmatpush.bf16.msrb.mxu1 %v7105_v28  ;;  %5269 = vmatpush.bf16.msrb.mxu3 %v7121_v47 }
 0x8dc   : > { %5244 = vmatpush.bf16.msrb.mxu1 %v7104_v9  ;;  %5270 = vmatpush.bf16.msrb.mxu3 %v7120_v58 }
 0x8e0   : > { %5245 = vmatpush.bf16.msrb.mxu1 %v7103_v32  ;;  %5271 = vmatpush.bf16.msrb.mxu3 %v7119_v34 }
 0x8e3   : > { %4933 = vmatmul.bf16.vlgmr.msra.gmra.mxu1 %v4477_v16  ;;  %4959 = vmatmul.bf16.vlgmr.msra.gmra.mxu3 %v4477_v16 }
 0x8e4   : > { %5246 = vmatpush.bf16.msrb.mxu1 %v7102_v0  ;;  %5272 = vmatpush.bf16.msrb.mxu3 %v7118_v39 }
 0x8e8   : > { %5247 = vmatpush.bf16.msrb.mxu1 %v7101_v10  ;;  %5273 = vmatpush.bf16.msrb.mxu3 %v7117_v37 }
 0x8ec   : > { %5248 = vmatpush.bf16.msrb.mxu1 %v7100_v30  ;;  %5274 = vmatpush.bf16.msrb.mxu3 %v7116_v43 }
 0x8f0   : > { %5249 = vmatpush.bf16.msrb.mxu1 %v7099_v51  ;;  %5275 = vmatpush.bf16.msrb.mxu3 %v7115_v17 }
 0x950   : > { %v4882_v45 = vpop.f32.mrf.mxu1 }
 0x951   : > { %v4883_v53 = vadd.f32 %v4882_v45, %v4865_v36 }
 0x953   : > { %v4896_v52 = vadd.f32 %v9261_v26, %v4883_v53 }
 0x955   : > { %v4977_v57 = vmax.f32 %v4896_v52, 0.0 }
 0x956   : > { %v4908_v46 = vpop.f32.mrf.mxu3 }
 0x957   : > { %v4981_v33 = vpack.c.bf16 %v4977_v57, %v4977_v57  ;;  %v4909_v31 = vadd.f32 %v4908_v46, %v4866_v29 }
 0x958   : > { %v4884_v61 = vpop.f32.mrf.mxu1 }
 0x959   : > { %v4922_v20 = vadd.f32 %v9303_v50, %v4909_v31  ;;  %5250 = vmatmul.bf16.vlgmr.msrb.gmra.mxu1 %v4981_v33 }
 0x95b   : > { %v4978_v7 = vmax.f32 %v4922_v20, 0.0 }
 0x95d   : > { %v4982_v12 = vpack.c.bf16 %v4978_v7, %v4978_v7 }
 0x95e   : > { %v4910_v63 = vpop.f32.mrf.mxu3 }
 0x95f   : > { %5263 = vmatmul.bf16.vlgmr.msrb.gmra.mxu2 %v4982_v12 }
 0x960   : > { %v4934_v35 = vpop.f32.mrf.mxu1 }
 0x961   : > { %v4935_v42 = vadd.f32 %v4934_v35, %v4867_v54 }
 0x963   : > { %v4948_v40 = vadd.f32 %v9263_v48, %v4935_v42  ;;  %v5049_v48 = vld [vmem:[%s9522_s24] sm:$0x1] }
 0x965   : > { %v4979_v26 = vmax.f32 %v4948_v40, 0.0 }
 0x966   : > { %v4960_v44 = vpop.f32.mrf.mxu3 }
 0x967   : > { %v4983_v60 = vpack.c.bf16 %v4979_v26, %v4979_v26  ;;  %v4961_v5 = vadd.f32 %v4960_v44, %v4868_v18 }
 0x968   : > { %v4936_v13 = vpop.f32.mrf.mxu1 }
 0x969   : > { %v4974_v50 = vadd.f32 %v9322_v22, %v4961_v5  ;;  %5276 = vmatmul.bf16.vlgmr.msrb.gmra.mxu3 %v4983_v60 }
 0x96b   : > { %v4980_v6 = vmax.f32 %v4974_v50, 0.0 }
 0x96d   : > { %v4984_v38 = vpack.c.bf16 %v4980_v6, %v4980_v6 }
 0x96e   : > { %v4962_v55 = vpop.f32.mrf.mxu3 }
 0x96f   : > { %5289 = vmatmul.bf16.vlgmr.msra.gmra.mxu0 %v4984_v38 }
 0x9d6   : > { %v5251_v41 = vpop.f32.mrf.mxu1 }
 0x9d7   : > { %v5252_v27 = vadd.f32 %v5251_v41, %v5049_v48 }
 0x9de   : > { %v5253_v49 = vpop.f32.mrf.mxu1 }
 0x9e2   : > { %v5264_v59 = vpop.f32.mrf.mxu2 }
 0x9e3   : > { %v5265_v22 = vadd.f32 %v5264_v59, %v5252_v27 }
 0x9ea   : > { %v5266_v24 = vpop.f32.mrf.mxu2 }
 0x9ec   : > { %v5277_v3 = vpop.f32.mrf.mxu3  ;;  %v5290_v16 = vpop.f32.mrf.mxu0 }
 0x9ed   : > { %v5278_v28 = vadd.f32 %v5277_v3, %v5265_v22 }
 0x9ef   : > { %v5291_v47 = vadd.f32 %v5290_v16, %v5278_v28 }
 0x9f1   : > { %5294 = vst [vmem:[%s898_s5] sm:$0x1] %v5291_v47 }
 0x9f2   : > { %7526 = shalt.err (!%p7523_p8)
}
 0x9f3   : > { %7148 = dma.vmem_to_hbm [thread:$0]  (%p7754_p5), %s5307_s29, 16, %s5309_s6, %s5296_s25  }
 0x9f4   : > { %v5279_v9 = vpop.f32.mrf.mxu3  ;;  %v5292_v32 = vpop.f32.mrf.mxu0 }
 0x9f5 PF: > { %s9525_s9 = sld [smem:[#allocation18_spill]] }
 0x9f6   : > { %s9526_s2 = sld [smem:[#allocation15_spill]] }
 0x9fb   : > { %p7175_p9 = scmp.ge.s32.totalorder %s9525_s9, 2 }
 0x9fc   : > { %s5320_s3 = sand.u32 1, %s9526_s2  }
 0x9fd   : > { %p7164_p10 = pnand %p7175_p9, %p7758_p6  ;;  %s5321_s5 = scalar_lea.sflag [#allocation4], %s5320_s3 }
 0x9ff   : > { %p7165_p11 = pneg %p7164_p10 }
 0xa01   : > { %7556 = dma.done.wait (%p7165_p11), %s5321_s5, 16  }
 0xa02   : > { %7558 = vsyncadd (%p7165_p11), %s5321_s5, 4294967280  ;;  %s9528_s30 = sld [smem:[#allocation19_spill]] }
 0xa03   : > { %s9529_s29 = sld [smem:[#allocation16_spill]] }
 0xa04   : > { %s9530_s2 = sld [smem:[#allocation17_spill]] }
 0xa05   : > { %s9531_s6 = sld [smem:[#allocation20_spill]] }
 0xa08   : > { %p38_p5 = scmp.ge.s32.totalorder %s9528_s30, 6  }
 0xa0a   :  { %40 = sbr.rel (!%p38_p5) target bundleno = 21 (0x15), region = 203 }
 0xa0f   :  { %5326 = vsyncpa [#allocation3], 1 }
 0xa10   :  { %5328 = vsyncpa [#allocation3 + $0x1], 1 }
 0xa11   :  { %5329 = vsyncpa [#allocation6], 1 }
 0xa12   :  { %5330 = vsyncpa [#allocation9], 1 }
 0xa13   :  { %5331 = vsyncpa [#allocation4], 1 }
 0xa14   :  { %5333 = vsyncpa [#allocation4 + $0x1], 1 }

</bundles_post_ra>
